<compile_context>
chip_gen: v5e
topology: v5e:2x2
jax: 0.10.0
libtpu: 0.0.40
codegen_flags: <defaults>
</compile_context>

<pallas_src>
import math

import jax
import jax.numpy as jnp
from jax.experimental import pallas as pl
from jax.experimental.pallas import tpu as pltpu

# ----- model hyper-parameters (small, consistent with the module) -----
B = 2           # batch
T = 8           # sequence length
D = 32          # hdim / d_model
H = 4           # attention heads
DH = D // H     # head dim
D_INNER = 64    # FFN inner dim
N_LAYERS = 2    # number of SqueezeformerBlocks
GROUPS = 8      # GroupNorm groups (ConvModule default)
KSIZE = 31      # depthwise conv kernel size
PAD = 15        # depthwise conv padding
EPS = 1e-5      # LayerNorm / GroupNorm eps

# packed (1, D) vector indices inside the per-layer vector pack
#  0 mha_scale  1 mha_shift  2 bo          3 ln1_g  4 ln1_b
#  5 f1_scale   6 f1_shift   7 f1_b2       8 ln2_g  9 ln2_b
# 10 c_scale   11 c_shift   12 pw1_b      13 dw_b
# 14 gn_g      15 gn_b      16 pw2_b      17 ln3_g 18 ln3_b
# 19 f2_scale  20 f2_shift  21 f2_b2      22 ln4_g 23 ln4_b
NVD = 24


# --------------------------------------------------------------------------
# Pallas kernel: full Squeezeformer stack for one batch element.
# --------------------------------------------------------------------------
def squeezeformer_kernel(x_ref, mcol_ref, mrow_ref,
                         vecs_ref, vecsi_ref, attw_ref, attb_ref,
                         ffw1_ref, ffw2_ref, pww_ref, dwk_ref,
                         gmat_ref, rope_ref, out_ref):
    T_ = x_ref.shape[1]
    D_ = x_ref.shape[2]

    x = x_ref[0]                      # (T, D) activations, resident for all layers
    mcol = mcol_ref[0]                # (T, 1) float mask, 1 = valid frame
    key_pad = mrow_ref[0] == 0.0      # (1, T) bool, True = padded key
    cosi = rope_ref[0]                # (T, D)  cos(w_m * i) duplicated on even/odd lanes
    sgnsin = rope_ref[1]              # (T, D)  [+sin(w_m*i), -sin(w_m*i)] interleaved
    pej = rope_ref[2]                 # (T, D)  [sin(w_m*j),  cos(w_m*j)] interleaved
    gm = gmat_ref[...]                # (D, GROUPS) one-hot group map

    inv_sqrt_dh = 1.0 / math.sqrt(DH)
    inv_sqrt2 = 1.0 / math.sqrt(2.0)

    def silu(a):
        return a * (1.0 / (1.0 + jnp.exp(-a)))

    def mm(a, b):       # (M,K) @ (K,N)
        return jax.lax.dot_general(a, b, (((1,), (0,)), ((), ())),
                                   preferred_element_type=jnp.float32)

    def mm_nt(a, b):    # (M,K) @ (N,K)^T
        return jax.lax.dot_general(a, b, (((1,), (1,)), ((), ())),
                                   preferred_element_type=jnp.float32)

    def layer_norm(a, g, b):
        mu = jnp.mean(a, axis=-1, keepdims=True)
        var = jnp.mean((a - mu) * (a - mu), axis=-1, keepdims=True)
        return (a - mu) * jax.lax.rsqrt(var + EPS) * g + b

    for li in range(N_LAYERS):
        V = vecs_ref[li]              # (NVD, D)      per-layer (1,D) vectors
        VI = vecsi_ref[li]            # (2, D_INNER)  FFN1/FFN2 hidden biases
        vec = lambda i: V[i:i + 1, :]  # (1, D) row slice

        x0 = x

        # ------------------ MultiHeadedSelfAttentionModule ------------------
        x2 = vec(0) * x0 + vec(1)                              # Scaling
        # one fused projection: [QP_h | QPS_h | (V@Wo)_h | Q_h | K_h] for all heads
        proj = mm(x2, attw_ref[li]) + attb_ref[li]             # (T, 448)

        acc = jnp.zeros_like(x0)
        for h in range(H):
            o_qp = h * D
            o_qps = H * D + h * D
            o_vo = 2 * H * D + h * D
            o_q = 3 * H * D + h * DH
            o_k = 3 * H * D + H * DH + h * DH
            qp = proj[:, o_qp:o_qp + D]          # (q+v_bias) projected back to pe space
            qps = proj[:, o_qps:o_qps + D]       # same, with even/odd lanes swapped
            vo = proj[:, o_vo:o_vo + D]          # x2 @ (Wv_h @ Wo_h) + bias
            qh = proj[:, o_q:o_q + DH]           # x2 @ Wq_h + (bq_h + u_h)
            kh = proj[:, o_k:o_k + DH]           # x2 @ Wk_h + bk_h

            content = mm_nt(qh, kh)                            # (T, T)
            # relative positional term via sinusoidal rotation identity:
            #   sum_m qp[2m] sin(w(j-i)) + qp[2m+1] cos(w(j-i))  ==  qtil[i] . pej[j]
            qtil = qp * cosi + qps * sgnsin                    # (T, D)
            pos = mm_nt(qtil, pej)                             # (T, T)

            score = (content + pos) * inv_sqrt_dh
            score = jnp.where(key_pad, -1e9, score)
            score = score - jnp.max(score, axis=-1, keepdims=True)
            e = jnp.exp(score)
            p = e * pl.reciprocal(jnp.sum(e, axis=-1, keepdims=True), approx=True)
            acc = acc + mm(p, vo)                              # head output already in D

        x1 = x0 + acc + vec(2)                                 # residual (+ Wo bias)
        y = layer_norm(x1, vec(3), vec(4))                     # ln1

        # ------------------ FFNModule ------------------
        def ffn(a, sci, shi, b1, w1, w2, b2):
            z = sci * a + shi
            hdn = silu(mm(z, w1) + b1)
            return a + mm(hdn, w2) + b2

        y = layer_norm(
            ffn(y, vec(5), vec(6), VI[0:1, :],
                ffw1_ref[li, 0], ffw2_ref[li, 0], vec(7)),
            vec(8), vec(9))                                    # ln2

        # ------------------ ConvModule ------------------
        z = vec(10) * y + vec(11)
        h1 = silu(mm(z, pww_ref[li, 0]) + vec(12)) * mcol      # (T, D)

        # depthwise conv1d (k=31, pad=15, groups=D) via precomputed Toeplitz taps:
        #   dwout[t, d] = sum_s h1[s, d] * dw_w[15 + s - t, d]
        cacc = jnp.zeros_like(h1)
        for s in range(T_):
            cacc = cacc + h1[s:s + 1, :] * dwk_ref[li, s]      # (1,D) x (T,D) FMA
        dwout = (cacc + vec(13)) * mcol

        # GroupNorm(GROUPS, D): stats over (channels-in-group, all time steps)
        gsum = jnp.sum(mm(dwout, gm), axis=0, keepdims=True)           # (1, G)
        gsq = jnp.sum(mm(dwout * dwout, gm), axis=0, keepdims=True)    # (1, G)
        cnt = float(T_ * (D_ // GROUPS))
        gmean = gsum * (1.0 / cnt)
        gvar = gsq * (1.0 / cnt) - gmean * gmean
        ginv = jax.lax.rsqrt(gvar + EPS)
        mean_c = mm_nt(gmean, gm)                                      # (1, D)
        inv_c = mm_nt(ginv, gm)                                        # (1, D)
        gno = (dwout - mean_c) * inv_c * vec(14) + vec(15)

        conv_out = mm(silu(gno), pww_ref[li, 1]) + vec(16)             # dropout = id
        y = layer_norm(y + conv_out, vec(17), vec(18))                 # ln3

        # ------------------ FFN2 + ln4 ------------------
        y = layer_norm(
            ffn(y, vec(19), vec(20), VI[1:2, :],
                ffw1_ref[li, 1], ffw2_ref[li, 1], vec(21)),
            vec(22), vec(23))                                          # ln4

        # ------------------ block output ------------------
        x = (x0 + y) * mcol * inv_sqrt2

    out_ref[0] = x


# --------------------------------------------------------------------------
# pallas_call wrapper: one call for the whole stack, grid over batch only.
# --------------------------------------------------------------------------
def squeezeformer_forward(x, mask_col, mask_row, packed, gmat, rope_tab):
    B_, T_, D_ = x.shape
    inputs = [x, mask_col, mask_row,
              packed["vecD"], packed["vecI"], packed["attn_w"], packed["attn_b"],
              packed["ffn_w1"], packed["ffn_w2"], packed["pw_w"], packed["dwk"],
              gmat, rope_tab]

    def full_spec(a):
        nd = a.ndim
        return pl.BlockSpec(a.shape, lambda b, _nd=nd: (0,) * _nd)

    in_specs = ([pl.BlockSpec((1, T_, D_), lambda b: (b, 0, 0)),
                 pl.BlockSpec((1, T_, 1), lambda b: (b, 0, 0)),
                 pl.BlockSpec((1, 1, T_), lambda b: (b, 0, 0))]
                + [full_spec(a) for a in inputs[3:]])
    out_spec = pl.BlockSpec((1, T_, D_), lambda b: (b, 0, 0))

    return pl.pallas_call(
        squeezeformer_kernel,
        out_shape=jax.ShapeDtypeStruct((B_, T_, D_), jnp.float32),
        grid_spec=pltpu.PrefetchScalarGridSpec(
            num_scalar_prefetch=0,
            grid=(B_,),
            in_specs=in_specs,
            out_specs=out_spec,
        ),
        compiler_params=pltpu.CompilerParams(
            dimension_semantics=("parallel",),       # keeps 2-way split for v7x megacore
            vmem_limit_bytes=32 * 1024 * 1024,
        ),
        input_output_aliases={0: 0},                 # x buffer reused for the output
    )(*inputs)


# --------------------------------------------------------------------------
# deterministic parameter construction + host-side packing (parameter-only glue)
# --------------------------------------------------------------------------
def init_layer_raw(key):
    ks = jax.random.split(key, 14)
    w = lambda k, shape: jax.random.normal(k, shape, jnp.float32) * 0.05
    ones = jnp.ones((D,), jnp.float32)
    zeros = jnp.zeros((D,), jnp.float32)
    zi = jnp.zeros((D_INNER,), jnp.float32)
    return dict(
        mha_scale=ones, mha_shift=zeros,
        Wq=w(ks[0], (D, D)), bq=zeros,
        Wk=w(ks[1], (D, D)), bk=zeros,
        Wv=w(ks[2], (D, D)), bv=zeros,
        u=w(ks[3], (D,)), v=w(ks[4], (D,)),
        Wo=w(ks[5], (D, D)), bo=zeros,
        Wp=w(ks[6], (D, D)),                         # pos_proj (no bias)
        ln1g=ones, ln1b=zeros,
        f1_scale=ones, f1_shift=zeros,
        f1_w1=w(ks[7], (D, D_INNER)), f1_b1=zi,
        f1_w2=w(ks[8], (D_INNER, D)), f1_b2=zeros,
        ln2g=ones, ln2b=zeros,
        c_scale=ones, c_shift=zeros,
        pw1_w=w(ks[9], (D, D)), pw1_b=zeros,
        dw_w=w(ks[10], (KSIZE, D)), dw_b=zeros,
        gn_g=ones, gn_b=zeros,
        pw2_w=w(ks[11], (D, D)), pw2_b=zeros,
        ln3g=ones, ln3b=zeros,
        f2_scale=ones, f2_shift=zeros,
        f2_w1=w(ks[12], (D, D_INNER)), f2_b1=zi,
        f2_w2=w(ks[13], (D_INNER, D)), f2_b2=zeros,
        ln4g=ones, ln4b=zeros,
    )


def pack_layer(r):
    # ---- (1, D) vector pack (order must match the kernel's vec() indices) ----
    vecD = jnp.stack([
        r["mha_scale"], r["mha_shift"], r["bo"],
        r["ln1g"], r["ln1b"],
        r["f1_scale"], r["f1_shift"], r["f1_b2"],
        r["ln2g"], r["ln2b"],
        r["c_scale"], r["c_shift"], r["pw1_b"], r["dw_b"],
        r["gn_g"], r["gn_b"], r["pw2_b"],
        r["ln3g"], r["ln3b"],
        r["f2_scale"], r["f2_shift"], r["f2_b2"],
        r["ln4g"], r["ln4b"],
    ])                                                   # (NVD, D)
    vecI = jnp.stack([r["f1_b1"], r["f2_b1"]])           # (2, D_INNER)

    # ---- fused attention projection  [QP | QPS | V@Wo | Q | K]  ----
    Wq, Wk, Wv, Wo, Wp = r["Wq"], r["Wk"], r["Wv"], r["Wo"], r["Wp"]
    bq, bk, bv, ub, vb = r["bq"], r["bk"], r["bv"], r["u"], r["v"]
    swap = jnp.arange(D) ^ 1                             # even <-> odd permutation
    qp_w, qps_w, vo_w, q_w, k_w = [], [], [], [], []
    qp_b, qps_b, vo_b, q_b, k_b = [], [], [], [], []
    for h in range(H):
        sl = slice(h * DH, (h + 1) * DH)
        WphT = Wp[:, sl].T                               # (DH, D)
        Wqp = Wq[:, sl] @ WphT                           # (D, D)
        bqp = (bq[sl] + vb[sl]) @ WphT                   # (D,)
        qp_w.append(Wqp)
        qp_b.append(bqp)
        qps_w.append(Wqp[:, swap])
        qps_b.append(bqp[swap])
        vo_w.append(Wv[:, sl] @ Wo[sl, :])               # (D, D)
        vo_b.append(bv[sl] @ Wo[sl, :])                  # (D,)
        q_w.append(Wq[:, sl])                            # (D, DH)
        q_b.append(bq[sl] + ub[sl])
        k_w.append(Wk[:, sl])
        k_b.append(bk[sl])
    attn_w = jnp.concatenate(qp_w + qps_w + vo_w + q_w + k_w, axis=1)    # (D, 448)
    attn_b = jnp.concatenate(qp_b + qps_b + vo_b + q_b + k_b)[None, :]   # (1, 448)

    # ---- depthwise conv Toeplitz tap table: WK[s, t, :] = dw_w[15 + s - t, :] ----
    ss = jnp.arange(T)[:, None]
    tt = jnp.arange(T)[None, :]
    dwk = r["dw_w"][PAD + ss - tt]                       # (T, T, D)

    ffn_w1 = jnp.stack([r["f1_w1"], r["f2_w1"]])         # (2, D, D_INNER)
    ffn_w2 = jnp.stack([r["f1_w2"], r["f2_w2"]])         # (2, D_INNER, D)
    pw_w = jnp.stack([r["pw1_w"], r["pw2_w"]])           # (2, D, D)

    return dict(vecD=vecD, vecI=vecI, attn_w=attn_w, attn_b=attn_b,
                dwk=dwk, ffn_w1=ffn_w1, ffn_w2=ffn_w2, pw_w=pw_w)


def stack_layers(layer_packs):
    return {k: jnp.stack([p[k] for p in layer_packs]) for k in layer_packs[0]}


def build_rope_tables():
    # same angular frequencies as the module's sinusoidal pe buffer
    inv_freq = 1.0 / (10000.0 ** (jnp.arange(0, D, 2, dtype=jnp.float32) / D))  # (D/2,)
    pos = jnp.arange(T, dtype=jnp.float32)[:, None]                             # (T, 1)
    ang = pos * inv_freq[None, :]                                               # (T, D/2)
    cosv = jnp.cos(ang)
    sinv = jnp.sin(ang)
    cosi = jnp.repeat(cosv, 2, axis=1)                                          # (T, D)
    sgnsin = jnp.stack([sinv, -sinv], axis=-1).reshape(T, D)                    # (T, D)
    pej = jnp.stack([sinv, cosv], axis=-1).reshape(T, D)                        # (T, D)
    return jnp.stack([cosi, sgnsin, pej])                                       # (3, T, D)


# --------------------------------------------------------------------------
if __name__ == "__main__":
    key = jax.random.PRNGKey(0)
    kx, kp = jax.random.split(key)

    # inputs: x (B, T, D), x_mask (B, T, 1) with batch 1 having 2 padded frames
    x = jax.random.normal(kx, (B, T, D), jnp.float32)
    lengths = jnp.array([T, T - 2])
    tpos = jnp.arange(T)
    mask_col = (tpos[None, :] < lengths[:, None]).astype(jnp.float32)[:, :, None]  # (B,T,1)
    mask_row = jnp.transpose(mask_col, (0, 2, 1))                                  # (B,1,T)

    layer_keys = jax.random.split(kp, N_LAYERS)
    packed = stack_layers([pack_layer(init_layer_raw(k)) for k in layer_keys])

    gmat = (jnp.arange(D)[:, None] // (D // GROUPS) ==
            jnp.arange(GROUPS)[None, :]).astype(jnp.float32)     # (D, GROUPS)
    rope_tab = build_rope_tables()                               # (3, T, D)

    out = squeezeformer_forward(x, mask_col, mask_row, packed, gmat, rope_tab)
    out = jax.block_until_ready(out)

    assert out.shape == (B, T, D)
    assert bool(jnp.all(jnp.isfinite(out)))
    print("KERNEL_OK")
</pallas_src>

<mosaic_0001>
module attributes {stable_mosaic.version = 11 : i64} {
  func.func @squeezeformer_kernel(%arg0: i32, %arg1: memref<1x8x32xf32, #tpu.memory_space<vmem>>, %arg2: memref<1x8x1xf32, #tpu.memory_space<vmem>>, %arg3: memref<1x1x8xf32, #tpu.memory_space<vmem>>, %arg4: memref<2x24x32xf32, #tpu.memory_space<vmem>>, %arg5: memref<2x2x64xf32, #tpu.memory_space<vmem>>, %arg6: memref<2x32x448xf32, #tpu.memory_space<vmem>>, %arg7: memref<2x1x448xf32, #tpu.memory_space<vmem>>, %arg8: memref<2x2x32x64xf32, #tpu.memory_space<vmem>>, %arg9: memref<2x2x64x32xf32, #tpu.memory_space<vmem>>, %arg10: memref<2x2x32x32xf32, #tpu.memory_space<vmem>>, %arg11: memref<2x8x8x32xf32, #tpu.memory_space<vmem>>, %arg12: memref<32x8xf32, #tpu.memory_space<vmem>>, %arg13: memref<3x8x32xf32, #tpu.memory_space<vmem>>, %arg14: memref<1x8x32xf32, #tpu.memory_space<vmem>>) attributes {dimension_semantics = [#tpu.dimension_semantics<parallel>], iteration_bounds = array<i64: 2>, scalar_prefetch = 0 : i64, scratch_operands = 0 : i64, tpu.core_type = #tpu.core_type<tc>, window_params = [{transform_indices = @transform_0, window_bounds = array<i64: 1, 8, 32>}, {transform_indices = @transform_1, window_bounds = array<i64: 1, 8, 1>}, {transform_indices = @transform_2, window_bounds = array<i64: 1, 1, 8>}, {pipeline_mode = #tpu.pipeline_mode<synchronous>, transform_indices = @transform_3, window_bounds = array<i64: 2, 24, 32>}, {pipeline_mode = #tpu.pipeline_mode<synchronous>, transform_indices = @transform_4, window_bounds = array<i64: 2, 2, 64>}, {pipeline_mode = #tpu.pipeline_mode<synchronous>, transform_indices = @transform_5, window_bounds = array<i64: 2, 32, 448>}, {pipeline_mode = #tpu.pipeline_mode<synchronous>, transform_indices = @transform_6, window_bounds = array<i64: 2, 1, 448>}, {pipeline_mode = #tpu.pipeline_mode<synchronous>, transform_indices = @transform_7, window_bounds = array<i64: 2, 2, 32, 64>}, {pipeline_mode = #tpu.pipeline_mode<synchronous>, transform_indices = @transform_8, window_bounds = array<i64: 2, 2, 64, 32>}, {pipeline_mode = #tpu.pipeline_mode<synchronous>, transform_indices = @transform_9, window_bounds = array<i64: 2, 2, 32, 32>}, {pipeline_mode = #tpu.pipeline_mode<synchronous>, transform_indices = @transform_10, window_bounds = array<i64: 2, 8, 8, 32>}, {pipeline_mode = #tpu.pipeline_mode<synchronous>, transform_indices = @transform_11, window_bounds = array<i64: 32, 8>}, {pipeline_mode = #tpu.pipeline_mode<synchronous>, transform_indices = @transform_12, window_bounds = array<i64: 3, 8, 32>}, {transform_indices = @transform_13, window_bounds = array<i64: 1, 8, 32>}]} {
    %c0 = arith.constant 0 : index
    %c0_0 = arith.constant 0 : index
    %c0_1 = arith.constant 0 : index
    %0 = vector.load %arg1[%c0, %c0_0, %c0_1] : memref<1x8x32xf32, #tpu.memory_space<vmem>>, vector<1x8x32xf32>
    %1 = vector.shape_cast %0 : vector<1x8x32xf32> to vector<8x32xf32>
    %c0_2 = arith.constant 0 : index
    %c0_3 = arith.constant 0 : index
    %c0_4 = arith.constant 0 : index
    %2 = vector.load %arg2[%c0_2, %c0_3, %c0_4] : memref<1x8x1xf32, #tpu.memory_space<vmem>>, vector<1x8x1xf32>
    %3 = vector.shape_cast %2 : vector<1x8x1xf32> to vector<8x1xf32>
    %c0_5 = arith.constant 0 : index
    %c0_6 = arith.constant 0 : index
    %c0_7 = arith.constant 0 : index
    %4 = vector.load %arg3[%c0_5, %c0_6, %c0_7] : memref<1x1x8xf32, #tpu.memory_space<vmem>>, vector<1x1x8xf32>
    %5 = vector.shape_cast %4 : vector<1x1x8xf32> to vector<1x8xf32>
    %cst = arith.constant 0.000000e+00 : f32
    %6 = vector.broadcast %cst : f32 to vector<1x8xf32>
    %7 = arith.cmpf oeq, %5, %6 : vector<1x8xf32>
    %c0_8 = arith.constant 0 : index
    %c0_9 = arith.constant 0 : index
    %c0_10 = arith.constant 0 : index
    %8 = vector.load %arg13[%c0_8, %c0_9, %c0_10] : memref<3x8x32xf32, #tpu.memory_space<vmem>>, vector<1x8x32xf32>
    %9 = vector.shape_cast %8 : vector<1x8x32xf32> to vector<8x32xf32>
    %c1 = arith.constant 1 : index
    %c0_11 = arith.constant 0 : index
    %c0_12 = arith.constant 0 : index
    %10 = vector.load %arg13[%c1, %c0_11, %c0_12] : memref<3x8x32xf32, #tpu.memory_space<vmem>>, vector<1x8x32xf32>
    %11 = vector.shape_cast %10 : vector<1x8x32xf32> to vector<8x32xf32>
    %c2 = arith.constant 2 : index
    %c0_13 = arith.constant 0 : index
    %c0_14 = arith.constant 0 : index
    %12 = vector.load %arg13[%c2, %c0_13, %c0_14] : memref<3x8x32xf32, #tpu.memory_space<vmem>>, vector<1x8x32xf32>
    %13 = vector.shape_cast %12 : vector<1x8x32xf32> to vector<8x32xf32>
    %c0_15 = arith.constant 0 : index
    %c0_16 = arith.constant 0 : index
    %14 = vector.load %arg12[%c0_15, %c0_16] : memref<32x8xf32, #tpu.memory_space<vmem>>, vector<32x8xf32>
    %c0_17 = arith.constant 0 : index
    %c0_18 = arith.constant 0 : index
    %c0_19 = arith.constant 0 : index
    %15 = vector.load %arg4[%c0_17, %c0_18, %c0_19] : memref<2x24x32xf32, #tpu.memory_space<vmem>>, vector<1x24x32xf32>
    %16 = vector.shape_cast %15 : vector<1x24x32xf32> to vector<24x32xf32>
    %c0_20 = arith.constant 0 : index
    %c0_21 = arith.constant 0 : index
    %c0_22 = arith.constant 0 : index
    %17 = vector.load %arg5[%c0_20, %c0_21, %c0_22] : memref<2x2x64xf32, #tpu.memory_space<vmem>>, vector<1x2x64xf32>
    %18 = vector.shape_cast %17 : vector<1x2x64xf32> to vector<2x64xf32>
    %19 = vector.extract_strided_slice %16 {offsets = [0, 0], sizes = [1, 32], strides = [1, 1]} : vector<24x32xf32> to vector<1x32xf32>
    %20 = vector.broadcast %19 : vector<1x32xf32> to vector<8x32xf32>
    %21 = arith.mulf %20, %1 : vector<8x32xf32>
    %22 = vector.extract_strided_slice %16 {offsets = [1, 0], sizes = [1, 32], strides = [1, 1]} : vector<24x32xf32> to vector<1x32xf32>
    %23 = vector.broadcast %22 : vector<1x32xf32> to vector<8x32xf32>
    %24 = arith.addf %21, %23 : vector<8x32xf32>
    %c0_23 = arith.constant 0 : index
    %c0_24 = arith.constant 0 : index
    %c0_25 = arith.constant 0 : index
    %25 = vector.load %arg6[%c0_23, %c0_24, %c0_25] : memref<2x32x448xf32, #tpu.memory_space<vmem>>, vector<1x32x448xf32>
    %26 = vector.shape_cast %25 : vector<1x32x448xf32> to vector<32x448xf32>
    %cst_26 = arith.constant dense<0.000000e+00> : vector<8x448xf32>
    %27 = tpu.matmul %24, %26, %cst_26 {dimension_numbers = #tpu.dot_dimension_numbers<[1], [0], [0], [1], [0, 0, 1, 1], [], []>} : vector<8x32xf32>, vector<32x448xf32>, vector<8x448xf32> -> vector<8x448xf32>
    %c0_27 = arith.constant 0 : index
    %c0_28 = arith.constant 0 : index
    %c0_29 = arith.constant 0 : index
    %28 = vector.load %arg7[%c0_27, %c0_28, %c0_29] : memref<2x1x448xf32, #tpu.memory_space<vmem>>, vector<1x1x448xf32>
    %29 = vector.shape_cast %28 : vector<1x1x448xf32> to vector<1x448xf32>
    %30 = vector.broadcast %29 : vector<1x448xf32> to vector<8x448xf32>
    %31 = arith.addf %27, %30 : vector<8x448xf32>
    %cst_30 = arith.constant 0.000000e+00 : f32
    %32 = vector.broadcast %cst_30 : f32 to vector<8x32xf32>
    %33 = vector.extract_strided_slice %31 {offsets = [0, 0], sizes = [8, 32], strides = [1, 1]} : vector<8x448xf32> to vector<8x32xf32>
    %34 = vector.extract_strided_slice %31 {offsets = [0, 128], sizes = [8, 32], strides = [1, 1]} : vector<8x448xf32> to vector<8x32xf32>
    %35 = vector.extract_strided_slice %31 {offsets = [0, 256], sizes = [8, 32], strides = [1, 1]} : vector<8x448xf32> to vector<8x32xf32>
    %36 = vector.extract_strided_slice %31 {offsets = [0, 384], sizes = [8, 8], strides = [1, 1]} : vector<8x448xf32> to vector<8x8xf32>
    %37 = vector.extract_strided_slice %31 {offsets = [0, 416], sizes = [8, 8], strides = [1, 1]} : vector<8x448xf32> to vector<8x8xf32>
    %cst_31 = arith.constant dense<0.000000e+00> : vector<8x8xf32>
    %38 = tpu.matmul %36, %37, %cst_31 {dimension_numbers = #tpu.dot_dimension_numbers<[1], [1], [0], [0], [0, 0, 1, 0], [], []>} : vector<8x8xf32>, vector<8x8xf32>, vector<8x8xf32> -> vector<8x8xf32>
    %39 = arith.mulf %33, %9 : vector<8x32xf32>
    %40 = arith.mulf %34, %11 : vector<8x32xf32>
    %41 = arith.addf %39, %40 : vector<8x32xf32>
    %cst_32 = arith.constant dense<0.000000e+00> : vector<8x8xf32>
    %42 = tpu.matmul %41, %13, %cst_32 {dimension_numbers = #tpu.dot_dimension_numbers<[1], [1], [0], [0], [0, 0, 1, 0], [], []>} : vector<8x32xf32>, vector<8x32xf32>, vector<8x8xf32> -> vector<8x8xf32>
    %43 = arith.addf %38, %42 : vector<8x8xf32>
    %cst_33 = arith.constant 0.353553385 : f32
    %44 = vector.broadcast %cst_33 : f32 to vector<8x8xf32>
    %45 = arith.mulf %43, %44 : vector<8x8xf32>
    %cst_34 = arith.constant -1.000000e+09 : f32
    %46 = vector.shape_cast %7 : vector<1x8xi1> to vector<1x8xi1>
    %47 = vector.broadcast %46 : vector<1x8xi1> to vector<8x8xi1>
    %48 = vector.broadcast %cst_34 : f32 to vector<8x8xf32>
    %49 = arith.select %47, %48, %45 : vector<8x8xi1>, vector<8x8xf32>
    %cst_35 = arith.constant dense<0xFF800000> : vector<8xf32>
    %50 = vector.multi_reduction <maximumf>, %49, %cst_35 [1] : vector<8x8xf32> to vector<8xf32>
    %51 = vector.shape_cast %50 : vector<8xf32> to vector<8x1xf32>
    %52 = vector.broadcast %51 : vector<8x1xf32> to vector<8x8xf32>
    %53 = arith.subf %49, %52 : vector<8x8xf32>
    %54 = math.exp %53 : vector<8x8xf32>
    %cst_36 = arith.constant dense<0.000000e+00> : vector<8xf32>
    %55 = vector.multi_reduction <add>, %54, %cst_36 [1] : vector<8x8xf32> to vector<8xf32>
    %56 = vector.shape_cast %55 : vector<8xf32> to vector<8x1xf32>
    %57 = tpu.reciprocal %56 {approx = true} : vector<8x1xf32> -> vector<8x1xf32>
    %58 = vector.broadcast %57 : vector<8x1xf32> to vector<8x8xf32>
    %59 = arith.mulf %54, %58 : vector<8x8xf32>
    %cst_37 = arith.constant dense<0.000000e+00> : vector<8x32xf32>
    %60 = tpu.matmul %59, %35, %cst_37 {dimension_numbers = #tpu.dot_dimension_numbers<[1], [0], [0], [1], [0, 0, 1, 1], [], []>} : vector<8x8xf32>, vector<8x32xf32>, vector<8x32xf32> -> vector<8x32xf32>
    %61 = arith.addf %32, %60 : vector<8x32xf32>
    %62 = vector.extract_strided_slice %31 {offsets = [0, 32], sizes = [8, 32], strides = [1, 1]} : vector<8x448xf32> to vector<8x32xf32>
    %63 = vector.extract_strided_slice %31 {offsets = [0, 160], sizes = [8, 32], strides = [1, 1]} : vector<8x448xf32> to vector<8x32xf32>
    %64 = vector.extract_strided_slice %31 {offsets = [0, 288], sizes = [8, 32], strides = [1, 1]} : vector<8x448xf32> to vector<8x32xf32>
    %65 = vector.extract_strided_slice %31 {offsets = [0, 392], sizes = [8, 8], strides = [1, 1]} : vector<8x448xf32> to vector<8x8xf32>
    %66 = vector.extract_strided_slice %31 {offsets = [0, 424], sizes = [8, 8], strides = [1, 1]} : vector<8x448xf32> to vector<8x8xf32>
    %cst_38 = arith.constant dense<0.000000e+00> : vector<8x8xf32>
    %67 = tpu.matmul %65, %66, %cst_38 {dimension_numbers = #tpu.dot_dimension_numbers<[1], [1], [0], [0], [0, 0, 1, 0], [], []>} : vector<8x8xf32>, vector<8x8xf32>, vector<8x8xf32> -> vector<8x8xf32>
    %68 = arith.mulf %62, %9 : vector<8x32xf32>
    %69 = arith.mulf %63, %11 : vector<8x32xf32>
    %70 = arith.addf %68, %69 : vector<8x32xf32>
    %cst_39 = arith.constant dense<0.000000e+00> : vector<8x8xf32>
    %71 = tpu.matmul %70, %13, %cst_39 {dimension_numbers = #tpu.dot_dimension_numbers<[1], [1], [0], [0], [0, 0, 1, 0], [], []>} : vector<8x32xf32>, vector<8x32xf32>, vector<8x8xf32> -> vector<8x8xf32>
    %72 = arith.addf %67, %71 : vector<8x8xf32>
    %cst_40 = arith.constant 0.353553385 : f32
    %73 = vector.broadcast %cst_40 : f32 to vector<8x8xf32>
    %74 = arith.mulf %72, %73 : vector<8x8xf32>
    %cst_41 = arith.constant -1.000000e+09 : f32
    %75 = vector.shape_cast %7 : vector<1x8xi1> to vector<1x8xi1>
    %76 = vector.broadcast %75 : vector<1x8xi1> to vector<8x8xi1>
    %77 = vector.broadcast %cst_41 : f32 to vector<8x8xf32>
    %78 = arith.select %76, %77, %74 : vector<8x8xi1>, vector<8x8xf32>
    %cst_42 = arith.constant dense<0xFF800000> : vector<8xf32>
    %79 = vector.multi_reduction <maximumf>, %78, %cst_42 [1] : vector<8x8xf32> to vector<8xf32>
    %80 = vector.shape_cast %79 : vector<8xf32> to vector<8x1xf32>
    %81 = vector.broadcast %80 : vector<8x1xf32> to vector<8x8xf32>
    %82 = arith.subf %78, %81 : vector<8x8xf32>
    %83 = math.exp %82 : vector<8x8xf32>
    %cst_43 = arith.constant dense<0.000000e+00> : vector<8xf32>
    %84 = vector.multi_reduction <add>, %83, %cst_43 [1] : vector<8x8xf32> to vector<8xf32>
    %85 = vector.shape_cast %84 : vector<8xf32> to vector<8x1xf32>
    %86 = tpu.reciprocal %85 {approx = true} : vector<8x1xf32> -> vector<8x1xf32>
    %87 = vector.broadcast %86 : vector<8x1xf32> to vector<8x8xf32>
    %88 = arith.mulf %83, %87 : vector<8x8xf32>
    %cst_44 = arith.constant dense<0.000000e+00> : vector<8x32xf32>
    %89 = tpu.matmul %88, %64, %cst_44 {dimension_numbers = #tpu.dot_dimension_numbers<[1], [0], [0], [1], [0, 0, 1, 1], [], []>} : vector<8x8xf32>, vector<8x32xf32>, vector<8x32xf32> -> vector<8x32xf32>
    %90 = arith.addf %61, %89 : vector<8x32xf32>
    %91 = vector.extract_strided_slice %31 {offsets = [0, 64], sizes = [8, 32], strides = [1, 1]} : vector<8x448xf32> to vector<8x32xf32>
    %92 = vector.extract_strided_slice %31 {offsets = [0, 192], sizes = [8, 32], strides = [1, 1]} : vector<8x448xf32> to vector<8x32xf32>
    %93 = vector.extract_strided_slice %31 {offsets = [0, 320], sizes = [8, 32], strides = [1, 1]} : vector<8x448xf32> to vector<8x32xf32>
    %94 = vector.extract_strided_slice %31 {offsets = [0, 400], sizes = [8, 8], strides = [1, 1]} : vector<8x448xf32> to vector<8x8xf32>
    %95 = vector.extract_strided_slice %31 {offsets = [0, 432], sizes = [8, 8], strides = [1, 1]} : vector<8x448xf32> to vector<8x8xf32>
    %cst_45 = arith.constant dense<0.000000e+00> : vector<8x8xf32>
    %96 = tpu.matmul %94, %95, %cst_45 {dimension_numbers = #tpu.dot_dimension_numbers<[1], [1], [0], [0], [0, 0, 1, 0], [], []>} : vector<8x8xf32>, vector<8x8xf32>, vector<8x8xf32> -> vector<8x8xf32>
    %97 = arith.mulf %91, %9 : vector<8x32xf32>
    %98 = arith.mulf %92, %11 : vector<8x32xf32>
    %99 = arith.addf %97, %98 : vector<8x32xf32>
    %cst_46 = arith.constant dense<0.000000e+00> : vector<8x8xf32>
    %100 = tpu.matmul %99, %13, %cst_46 {dimension_numbers = #tpu.dot_dimension_numbers<[1], [1], [0], [0], [0, 0, 1, 0], [], []>} : vector<8x32xf32>, vector<8x32xf32>, vector<8x8xf32> -> vector<8x8xf32>
    %101 = arith.addf %96, %100 : vector<8x8xf32>
    %cst_47 = arith.constant 0.353553385 : f32
    %102 = vector.broadcast %cst_47 : f32 to vector<8x8xf32>
    %103 = arith.mulf %101, %102 : vector<8x8xf32>
    %cst_48 = arith.constant -1.000000e+09 : f32
    %104 = vector.shape_cast %7 : vector<1x8xi1> to vector<1x8xi1>
    %105 = vector.broadcast %104 : vector<1x8xi1> to vector<8x8xi1>
    %106 = vector.broadcast %cst_48 : f32 to vector<8x8xf32>
    %107 = arith.select %105, %106, %103 : vector<8x8xi1>, vector<8x8xf32>
    %cst_49 = arith.constant dense<0xFF800000> : vector<8xf32>
    %108 = vector.multi_reduction <maximumf>, %107, %cst_49 [1] : vector<8x8xf32> to vector<8xf32>
    %109 = vector.shape_cast %108 : vector<8xf32> to vector<8x1xf32>
    %110 = vector.broadcast %109 : vector<8x1xf32> to vector<8x8xf32>
    %111 = arith.subf %107, %110 : vector<8x8xf32>
    %112 = math.exp %111 : vector<8x8xf32>
    %cst_50 = arith.constant dense<0.000000e+00> : vector<8xf32>
    %113 = vector.multi_reduction <add>, %112, %cst_50 [1] : vector<8x8xf32> to vector<8xf32>
    %114 = vector.shape_cast %113 : vector<8xf32> to vector<8x1xf32>
    %115 = tpu.reciprocal %114 {approx = true} : vector<8x1xf32> -> vector<8x1xf32>
    %116 = vector.broadcast %115 : vector<8x1xf32> to vector<8x8xf32>
    %117 = arith.mulf %112, %116 : vector<8x8xf32>
    %cst_51 = arith.constant dense<0.000000e+00> : vector<8x32xf32>
    %118 = tpu.matmul %117, %93, %cst_51 {dimension_numbers = #tpu.dot_dimension_numbers<[1], [0], [0], [1], [0, 0, 1, 1], [], []>} : vector<8x8xf32>, vector<8x32xf32>, vector<8x32xf32> -> vector<8x32xf32>
    %119 = arith.addf %90, %118 : vector<8x32xf32>
    %120 = vector.extract_strided_slice %31 {offsets = [0, 96], sizes = [8, 32], strides = [1, 1]} : vector<8x448xf32> to vector<8x32xf32>
    %121 = vector.extract_strided_slice %31 {offsets = [0, 224], sizes = [8, 32], strides = [1, 1]} : vector<8x448xf32> to vector<8x32xf32>
    %122 = vector.extract_strided_slice %31 {offsets = [0, 352], sizes = [8, 32], strides = [1, 1]} : vector<8x448xf32> to vector<8x32xf32>
    %123 = vector.extract_strided_slice %31 {offsets = [0, 408], sizes = [8, 8], strides = [1, 1]} : vector<8x448xf32> to vector<8x8xf32>
    %124 = vector.extract_strided_slice %31 {offsets = [0, 440], sizes = [8, 8], strides = [1, 1]} : vector<8x448xf32> to vector<8x8xf32>
    %cst_52 = arith.constant dense<0.000000e+00> : vector<8x8xf32>
    %125 = tpu.matmul %123, %124, %cst_52 {dimension_numbers = #tpu.dot_dimension_numbers<[1], [1], [0], [0], [0, 0, 1, 0], [], []>} : vector<8x8xf32>, vector<8x8xf32>, vector<8x8xf32> -> vector<8x8xf32>
    %126 = arith.mulf %120, %9 : vector<8x32xf32>
    %127 = arith.mulf %121, %11 : vector<8x32xf32>
    %128 = arith.addf %126, %127 : vector<8x32xf32>
    %cst_53 = arith.constant dense<0.000000e+00> : vector<8x8xf32>
    %129 = tpu.matmul %128, %13, %cst_53 {dimension_numbers = #tpu.dot_dimension_numbers<[1], [1], [0], [0], [0, 0, 1, 0], [], []>} : vector<8x32xf32>, vector<8x32xf32>, vector<8x8xf32> -> vector<8x8xf32>
    %130 = arith.addf %125, %129 : vector<8x8xf32>
    %cst_54 = arith.constant 0.353553385 : f32
    %131 = vector.broadcast %cst_54 : f32 to vector<8x8xf32>
    %132 = arith.mulf %130, %131 : vector<8x8xf32>
    %cst_55 = arith.constant -1.000000e+09 : f32
    %133 = vector.shape_cast %7 : vector<1x8xi1> to vector<1x8xi1>
    %134 = vector.broadcast %133 : vector<1x8xi1> to vector<8x8xi1>
    %135 = vector.broadcast %cst_55 : f32 to vector<8x8xf32>
    %136 = arith.select %134, %135, %132 : vector<8x8xi1>, vector<8x8xf32>
    %cst_56 = arith.constant dense<0xFF800000> : vector<8xf32>
    %137 = vector.multi_reduction <maximumf>, %136, %cst_56 [1] : vector<8x8xf32> to vector<8xf32>
    %138 = vector.shape_cast %137 : vector<8xf32> to vector<8x1xf32>
    %139 = vector.broadcast %138 : vector<8x1xf32> to vector<8x8xf32>
    %140 = arith.subf %136, %139 : vector<8x8xf32>
    %141 = math.exp %140 : vector<8x8xf32>
    %cst_57 = arith.constant dense<0.000000e+00> : vector<8xf32>
    %142 = vector.multi_reduction <add>, %141, %cst_57 [1] : vector<8x8xf32> to vector<8xf32>
    %143 = vector.shape_cast %142 : vector<8xf32> to vector<8x1xf32>
    %144 = tpu.reciprocal %143 {approx = true} : vector<8x1xf32> -> vector<8x1xf32>
    %145 = vector.broadcast %144 : vector<8x1xf32> to vector<8x8xf32>
    %146 = arith.mulf %141, %145 : vector<8x8xf32>
    %cst_58 = arith.constant dense<0.000000e+00> : vector<8x32xf32>
    %147 = tpu.matmul %146, %122, %cst_58 {dimension_numbers = #tpu.dot_dimension_numbers<[1], [0], [0], [1], [0, 0, 1, 1], [], []>} : vector<8x8xf32>, vector<8x32xf32>, vector<8x32xf32> -> vector<8x32xf32>
    %148 = arith.addf %119, %147 : vector<8x32xf32>
    %149 = arith.addf %1, %148 : vector<8x32xf32>
    %150 = vector.extract_strided_slice %16 {offsets = [2, 0], sizes = [1, 32], strides = [1, 1]} : vector<24x32xf32> to vector<1x32xf32>
    %151 = vector.broadcast %150 : vector<1x32xf32> to vector<8x32xf32>
    %152 = arith.addf %149, %151 : vector<8x32xf32>
    %153 = vector.extract_strided_slice %16 {offsets = [3, 0], sizes = [1, 32], strides = [1, 1]} : vector<24x32xf32> to vector<1x32xf32>
    %154 = vector.extract_strided_slice %16 {offsets = [4, 0], sizes = [1, 32], strides = [1, 1]} : vector<24x32xf32> to vector<1x32xf32>
    %cst_59 = arith.constant dense<0.000000e+00> : vector<8xf32>
    %155 = vector.multi_reduction <add>, %152, %cst_59 [1] : vector<8x32xf32> to vector<8xf32>
    %156 = vector.shape_cast %155 : vector<8xf32> to vector<8x1xf32>
    %cst_60 = arith.constant 3.200000e+01 : f32
    %157 = vector.broadcast %cst_60 : f32 to vector<8x1xf32>
    %158 = arith.divf %156, %157 : vector<8x1xf32>
    %159 = vector.broadcast %158 : vector<8x1xf32> to vector<8x32xf32>
    %160 = arith.subf %152, %159 : vector<8x32xf32>
    %161 = vector.broadcast %158 : vector<8x1xf32> to vector<8x32xf32>
    %162 = arith.subf %152, %161 : vector<8x32xf32>
    %163 = arith.mulf %160, %162 : vector<8x32xf32>
    %cst_61 = arith.constant dense<0.000000e+00> : vector<8xf32>
    %164 = vector.multi_reduction <add>, %163, %cst_61 [1] : vector<8x32xf32> to vector<8xf32>
    %165 = vector.shape_cast %164 : vector<8xf32> to vector<8x1xf32>
    %cst_62 = arith.constant 3.200000e+01 : f32
    %166 = vector.broadcast %cst_62 : f32 to vector<8x1xf32>
    %167 = arith.divf %165, %166 : vector<8x1xf32>
    %168 = vector.broadcast %158 : vector<8x1xf32> to vector<8x32xf32>
    %169 = arith.subf %152, %168 : vector<8x32xf32>
    %cst_63 = arith.constant 9.99999974E-6 : f32
    %170 = vector.broadcast %cst_63 : f32 to vector<8x1xf32>
    %171 = arith.addf %167, %170 : vector<8x1xf32>
    %172 = math.rsqrt %171 : vector<8x1xf32>
    %173 = vector.broadcast %172 : vector<8x1xf32> to vector<8x32xf32>
    %174 = arith.mulf %169, %173 : vector<8x32xf32>
    %175 = vector.broadcast %153 : vector<1x32xf32> to vector<8x32xf32>
    %176 = arith.mulf %174, %175 : vector<8x32xf32>
    %177 = vector.broadcast %154 : vector<1x32xf32> to vector<8x32xf32>
    %178 = arith.addf %176, %177 : vector<8x32xf32>
    %179 = vector.extract_strided_slice %16 {offsets = [5, 0], sizes = [1, 32], strides = [1, 1]} : vector<24x32xf32> to vector<1x32xf32>
    %180 = vector.extract_strided_slice %16 {offsets = [6, 0], sizes = [1, 32], strides = [1, 1]} : vector<24x32xf32> to vector<1x32xf32>
    %181 = vector.extract_strided_slice %18 {offsets = [0, 0], sizes = [1, 64], strides = [1, 1]} : vector<2x64xf32> to vector<1x64xf32>
    %c0_64 = arith.constant 0 : index
    %c0_65 = arith.constant 0 : index
    %c0_66 = arith.constant 0 : index
    %c0_67 = arith.constant 0 : index
    %182 = vector.load %arg8[%c0_64, %c0_65, %c0_66, %c0_67] : memref<2x2x32x64xf32, #tpu.memory_space<vmem>>, vector<1x1x32x64xf32>
    %183 = vector.shape_cast %182 : vector<1x1x32x64xf32> to vector<32x64xf32>
    %c0_68 = arith.constant 0 : index
    %c0_69 = arith.constant 0 : index
    %c0_70 = arith.constant 0 : index
    %c0_71 = arith.constant 0 : index
    %184 = vector.load %arg9[%c0_68, %c0_69, %c0_70, %c0_71] : memref<2x2x64x32xf32, #tpu.memory_space<vmem>>, vector<1x1x64x32xf32>
    %185 = vector.shape_cast %184 : vector<1x1x64x32xf32> to vector<64x32xf32>
    %186 = vector.extract_strided_slice %16 {offsets = [7, 0], sizes = [1, 32], strides = [1, 1]} : vector<24x32xf32> to vector<1x32xf32>
    %187 = vector.broadcast %179 : vector<1x32xf32> to vector<8x32xf32>
    %188 = arith.mulf %187, %178 : vector<8x32xf32>
    %189 = vector.broadcast %180 : vector<1x32xf32> to vector<8x32xf32>
    %190 = arith.addf %188, %189 : vector<8x32xf32>
    %cst_72 = arith.constant dense<0.000000e+00> : vector<8x64xf32>
    %191 = tpu.matmul %190, %183, %cst_72 {dimension_numbers = #tpu.dot_dimension_numbers<[1], [0], [0], [1], [0, 0, 1, 1], [], []>} : vector<8x32xf32>, vector<32x64xf32>, vector<8x64xf32> -> vector<8x64xf32>
    %192 = vector.broadcast %181 : vector<1x64xf32> to vector<8x64xf32>
    %193 = arith.addf %191, %192 : vector<8x64xf32>
    %cst_73 = arith.constant 0.000000e+00 : f32
    %194 = vector.broadcast %cst_73 : f32 to vector<8x64xf32>
    %195 = arith.subf %194, %193 : vector<8x64xf32>
    %196 = math.exp %195 : vector<8x64xf32>
    %cst_74 = arith.constant 1.000000e+00 : f32
    %197 = vector.broadcast %cst_74 : f32 to vector<8x64xf32>
    %198 = arith.addf %197, %196 : vector<8x64xf32>
    %cst_75 = arith.constant 1.000000e+00 : f32
    %199 = vector.broadcast %cst_75 : f32 to vector<8x64xf32>
    %200 = arith.divf %199, %198 : vector<8x64xf32>
    %201 = arith.mulf %193, %200 : vector<8x64xf32>
    %cst_76 = arith.constant dense<0.000000e+00> : vector<8x32xf32>
    %202 = tpu.matmul %201, %185, %cst_76 {dimension_numbers = #tpu.dot_dimension_numbers<[1], [0], [0], [1], [0, 0, 1, 1], [], []>} : vector<8x64xf32>, vector<64x32xf32>, vector<8x32xf32> -> vector<8x32xf32>
    %203 = arith.addf %178, %202 : vector<8x32xf32>
    %204 = vector.broadcast %186 : vector<1x32xf32> to vector<8x32xf32>
    %205 = arith.addf %203, %204 : vector<8x32xf32>
    %206 = vector.extract_strided_slice %16 {offsets = [8, 0], sizes = [1, 32], strides = [1, 1]} : vector<24x32xf32> to vector<1x32xf32>
    %207 = vector.extract_strided_slice %16 {offsets = [9, 0], sizes = [1, 32], strides = [1, 1]} : vector<24x32xf32> to vector<1x32xf32>
    %cst_77 = arith.constant dense<0.000000e+00> : vector<8xf32>
    %208 = vector.multi_reduction <add>, %205, %cst_77 [1] : vector<8x32xf32> to vector<8xf32>
    %209 = vector.shape_cast %208 : vector<8xf32> to vector<8x1xf32>
    %cst_78 = arith.constant 3.200000e+01 : f32
    %210 = vector.broadcast %cst_78 : f32 to vector<8x1xf32>
    %211 = arith.divf %209, %210 : vector<8x1xf32>
    %212 = vector.broadcast %211 : vector<8x1xf32> to vector<8x32xf32>
    %213 = arith.subf %205, %212 : vector<8x32xf32>
    %214 = vector.broadcast %211 : vector<8x1xf32> to vector<8x32xf32>
    %215 = arith.subf %205, %214 : vector<8x32xf32>
    %216 = arith.mulf %213, %215 : vector<8x32xf32>
    %cst_79 = arith.constant dense<0.000000e+00> : vector<8xf32>
    %217 = vector.multi_reduction <add>, %216, %cst_79 [1] : vector<8x32xf32> to vector<8xf32>
    %218 = vector.shape_cast %217 : vector<8xf32> to vector<8x1xf32>
    %cst_80 = arith.constant 3.200000e+01 : f32
    %219 = vector.broadcast %cst_80 : f32 to vector<8x1xf32>
    %220 = arith.divf %218, %219 : vector<8x1xf32>
    %221 = vector.broadcast %211 : vector<8x1xf32> to vector<8x32xf32>
    %222 = arith.subf %205, %221 : vector<8x32xf32>
    %cst_81 = arith.constant 9.99999974E-6 : f32
    %223 = vector.broadcast %cst_81 : f32 to vector<8x1xf32>
    %224 = arith.addf %220, %223 : vector<8x1xf32>
    %225 = math.rsqrt %224 : vector<8x1xf32>
    %226 = vector.broadcast %225 : vector<8x1xf32> to vector<8x32xf32>
    %227 = arith.mulf %222, %226 : vector<8x32xf32>
    %228 = vector.broadcast %206 : vector<1x32xf32> to vector<8x32xf32>
    %229 = arith.mulf %227, %228 : vector<8x32xf32>
    %230 = vector.broadcast %207 : vector<1x32xf32> to vector<8x32xf32>
    %231 = arith.addf %229, %230 : vector<8x32xf32>
    %232 = vector.extract_strided_slice %16 {offsets = [10, 0], sizes = [1, 32], strides = [1, 1]} : vector<24x32xf32> to vector<1x32xf32>
    %233 = vector.broadcast %232 : vector<1x32xf32> to vector<8x32xf32>
    %234 = arith.mulf %233, %231 : vector<8x32xf32>
    %235 = vector.extract_strided_slice %16 {offsets = [11, 0], sizes = [1, 32], strides = [1, 1]} : vector<24x32xf32> to vector<1x32xf32>
    %236 = vector.broadcast %235 : vector<1x32xf32> to vector<8x32xf32>
    %237 = arith.addf %234, %236 : vector<8x32xf32>
    %c0_82 = arith.constant 0 : index
    %c0_83 = arith.constant 0 : index
    %c0_84 = arith.constant 0 : index
    %c0_85 = arith.constant 0 : index
    %238 = vector.load %arg10[%c0_82, %c0_83, %c0_84, %c0_85] : memref<2x2x32x32xf32, #tpu.memory_space<vmem>>, vector<1x1x32x32xf32>
    %239 = vector.shape_cast %238 : vector<1x1x32x32xf32> to vector<32x32xf32>
    %cst_86 = arith.constant dense<0.000000e+00> : vector<8x32xf32>
    %240 = tpu.matmul %237, %239, %cst_86 {dimension_numbers = #tpu.dot_dimension_numbers<[1], [0], [0], [1], [0, 0, 1, 1], [], []>} : vector<8x32xf32>, vector<32x32xf32>, vector<8x32xf32> -> vector<8x32xf32>
    %241 = vector.extract_strided_slice %16 {offsets = [12, 0], sizes = [1, 32], strides = [1, 1]} : vector<24x32xf32> to vector<1x32xf32>
    %242 = vector.broadcast %241 : vector<1x32xf32> to vector<8x32xf32>
    %243 = arith.addf %240, %242 : vector<8x32xf32>
    %cst_87 = arith.constant 0.000000e+00 : f32
    %244 = vector.broadcast %cst_87 : f32 to vector<8x32xf32>
    %245 = arith.subf %244, %243 : vector<8x32xf32>
    %246 = math.exp %245 : vector<8x32xf32>
    %cst_88 = arith.constant 1.000000e+00 : f32
    %247 = vector.broadcast %cst_88 : f32 to vector<8x32xf32>
    %248 = arith.addf %247, %246 : vector<8x32xf32>
    %cst_89 = arith.constant 1.000000e+00 : f32
    %249 = vector.broadcast %cst_89 : f32 to vector<8x32xf32>
    %250 = arith.divf %249, %248 : vector<8x32xf32>
    %251 = arith.mulf %243, %250 : vector<8x32xf32>
    %252 = vector.broadcast %3 : vector<8x1xf32> to vector<8x32xf32>
    %253 = arith.mulf %251, %252 : vector<8x32xf32>
    %cst_90 = arith.constant 0.000000e+00 : f32
    %254 = vector.broadcast %cst_90 : f32 to vector<8x32xf32>
    %255 = vector.extract_strided_slice %253 {offsets = [0, 0], sizes = [1, 32], strides = [1, 1]} : vector<8x32xf32> to vector<1x32xf32>
    %c0_91 = arith.constant 0 : index
    %c0_92 = arith.constant 0 : index
    %c0_93 = arith.constant 0 : index
    %c0_94 = arith.constant 0 : index
    %256 = vector.load %arg11[%c0_91, %c0_92, %c0_93, %c0_94] : memref<2x8x8x32xf32, #tpu.memory_space<vmem>>, vector<1x1x8x32xf32>
    %257 = vector.shape_cast %256 : vector<1x1x8x32xf32> to vector<8x32xf32>
    %258 = vector.broadcast %255 : vector<1x32xf32> to vector<8x32xf32>
    %259 = arith.mulf %258, %257 : vector<8x32xf32>
    %260 = arith.addf %254, %259 : vector<8x32xf32>
    %261 = vector.extract_strided_slice %253 {offsets = [1, 0], sizes = [1, 32], strides = [1, 1]} : vector<8x32xf32> to vector<1x32xf32>
    %c0_95 = arith.constant 0 : index
    %c1_96 = arith.constant 1 : index
    %c0_97 = arith.constant 0 : index
    %c0_98 = arith.constant 0 : index
    %262 = vector.load %arg11[%c0_95, %c1_96, %c0_97, %c0_98] : memref<2x8x8x32xf32, #tpu.memory_space<vmem>>, vector<1x1x8x32xf32>
    %263 = vector.shape_cast %262 : vector<1x1x8x32xf32> to vector<8x32xf32>
    %264 = vector.broadcast %261 : vector<1x32xf32> to vector<8x32xf32>
    %265 = arith.mulf %264, %263 : vector<8x32xf32>
    %266 = arith.addf %260, %265 : vector<8x32xf32>
    %267 = vector.extract_strided_slice %253 {offsets = [2, 0], sizes = [1, 32], strides = [1, 1]} : vector<8x32xf32> to vector<1x32xf32>
    %c0_99 = arith.constant 0 : index
    %c2_100 = arith.constant 2 : index
    %c0_101 = arith.constant 0 : index
    %c0_102 = arith.constant 0 : index
    %268 = vector.load %arg11[%c0_99, %c2_100, %c0_101, %c0_102] : memref<2x8x8x32xf32, #tpu.memory_space<vmem>>, vector<1x1x8x32xf32>
    %269 = vector.shape_cast %268 : vector<1x1x8x32xf32> to vector<8x32xf32>
    %270 = vector.broadcast %267 : vector<1x32xf32> to vector<8x32xf32>
    %271 = arith.mulf %270, %269 : vector<8x32xf32>
    %272 = arith.addf %266, %271 : vector<8x32xf32>
    %273 = vector.extract_strided_slice %253 {offsets = [3, 0], sizes = [1, 32], strides = [1, 1]} : vector<8x32xf32> to vector<1x32xf32>
    %c0_103 = arith.constant 0 : index
    %c3 = arith.constant 3 : index
    %c0_104 = arith.constant 0 : index
    %c0_105 = arith.constant 0 : index
    %274 = vector.load %arg11[%c0_103, %c3, %c0_104, %c0_105] : memref<2x8x8x32xf32, #tpu.memory_space<vmem>>, vector<1x1x8x32xf32>
    %275 = vector.shape_cast %274 : vector<1x1x8x32xf32> to vector<8x32xf32>
    %276 = vector.broadcast %273 : vector<1x32xf32> to vector<8x32xf32>
    %277 = arith.mulf %276, %275 : vector<8x32xf32>
    %278 = arith.addf %272, %277 : vector<8x32xf32>
    %279 = vector.extract_strided_slice %253 {offsets = [4, 0], sizes = [1, 32], strides = [1, 1]} : vector<8x32xf32> to vector<1x32xf32>
    %c0_106 = arith.constant 0 : index
    %c4 = arith.constant 4 : index
    %c0_107 = arith.constant 0 : index
    %c0_108 = arith.constant 0 : index
    %280 = vector.load %arg11[%c0_106, %c4, %c0_107, %c0_108] : memref<2x8x8x32xf32, #tpu.memory_space<vmem>>, vector<1x1x8x32xf32>
    %281 = vector.shape_cast %280 : vector<1x1x8x32xf32> to vector<8x32xf32>
    %282 = vector.broadcast %279 : vector<1x32xf32> to vector<8x32xf32>
    %283 = arith.mulf %282, %281 : vector<8x32xf32>
    %284 = arith.addf %278, %283 : vector<8x32xf32>
    %285 = vector.extract_strided_slice %253 {offsets = [5, 0], sizes = [1, 32], strides = [1, 1]} : vector<8x32xf32> to vector<1x32xf32>
    %c0_109 = arith.constant 0 : index
    %c5 = arith.constant 5 : index
    %c0_110 = arith.constant 0 : index
    %c0_111 = arith.constant 0 : index
    %286 = vector.load %arg11[%c0_109, %c5, %c0_110, %c0_111] : memref<2x8x8x32xf32, #tpu.memory_space<vmem>>, vector<1x1x8x32xf32>
    %287 = vector.shape_cast %286 : vector<1x1x8x32xf32> to vector<8x32xf32>
    %288 = vector.broadcast %285 : vector<1x32xf32> to vector<8x32xf32>
    %289 = arith.mulf %288, %287 : vector<8x32xf32>
    %290 = arith.addf %284, %289 : vector<8x32xf32>
    %291 = vector.extract_strided_slice %253 {offsets = [6, 0], sizes = [1, 32], strides = [1, 1]} : vector<8x32xf32> to vector<1x32xf32>
    %c0_112 = arith.constant 0 : index
    %c6 = arith.constant 6 : index
    %c0_113 = arith.constant 0 : index
    %c0_114 = arith.constant 0 : index
    %292 = vector.load %arg11[%c0_112, %c6, %c0_113, %c0_114] : memref<2x8x8x32xf32, #tpu.memory_space<vmem>>, vector<1x1x8x32xf32>
    %293 = vector.shape_cast %292 : vector<1x1x8x32xf32> to vector<8x32xf32>
    %294 = vector.broadcast %291 : vector<1x32xf32> to vector<8x32xf32>
    %295 = arith.mulf %294, %293 : vector<8x32xf32>
    %296 = arith.addf %290, %295 : vector<8x32xf32>
    %297 = vector.extract_strided_slice %253 {offsets = [7, 0], sizes = [1, 32], strides = [1, 1]} : vector<8x32xf32> to vector<1x32xf32>
    %c0_115 = arith.constant 0 : index
    %c7 = arith.constant 7 : index
    %c0_116 = arith.constant 0 : index
    %c0_117 = arith.constant 0 : index
    %298 = vector.load %arg11[%c0_115, %c7, %c0_116, %c0_117] : memref<2x8x8x32xf32, #tpu.memory_space<vmem>>, vector<1x1x8x32xf32>
    %299 = vector.shape_cast %298 : vector<1x1x8x32xf32> to vector<8x32xf32>
    %300 = vector.broadcast %297 : vector<1x32xf32> to vector<8x32xf32>
    %301 = arith.mulf %300, %299 : vector<8x32xf32>
    %302 = arith.addf %296, %301 : vector<8x32xf32>
    %303 = vector.extract_strided_slice %16 {offsets = [13, 0], sizes = [1, 32], strides = [1, 1]} : vector<24x32xf32> to vector<1x32xf32>
    %304 = vector.broadcast %303 : vector<1x32xf32> to vector<8x32xf32>
    %305 = arith.addf %302, %304 : vector<8x32xf32>
    %306 = vector.broadcast %3 : vector<8x1xf32> to vector<8x32xf32>
    %307 = arith.mulf %305, %306 : vector<8x32xf32>
    %cst_118 = arith.constant dense<0.000000e+00> : vector<8x8xf32>
    %308 = tpu.matmul %307, %14, %cst_118 {dimension_numbers = #tpu.dot_dimension_numbers<[1], [0], [0], [1], [0, 0, 1, 1], [], []>} : vector<8x32xf32>, vector<32x8xf32>, vector<8x8xf32> -> vector<8x8xf32>
    %cst_119 = arith.constant dense<0.000000e+00> : vector<8xf32>
    %309 = vector.multi_reduction <add>, %308, %cst_119 [0] : vector<8x8xf32> to vector<8xf32>
    %310 = vector.shape_cast %309 : vector<8xf32> to vector<1x8xf32>
    %311 = arith.mulf %307, %307 : vector<8x32xf32>
    %cst_120 = arith.constant dense<0.000000e+00> : vector<8x8xf32>
    %312 = tpu.matmul %311, %14, %cst_120 {dimension_numbers = #tpu.dot_dimension_numbers<[1], [0], [0], [1], [0, 0, 1, 1], [], []>} : vector<8x32xf32>, vector<32x8xf32>, vector<8x8xf32> -> vector<8x8xf32>
    %cst_121 = arith.constant dense<0.000000e+00> : vector<8xf32>
    %313 = vector.multi_reduction <add>, %312, %cst_121 [0] : vector<8x8xf32> to vector<8xf32>
    %314 = vector.shape_cast %313 : vector<8xf32> to vector<1x8xf32>
    %cst_122 = arith.constant 3.125000e-02 : f32
    %315 = vector.broadcast %cst_122 : f32 to vector<1x8xf32>
    %316 = arith.mulf %310, %315 : vector<1x8xf32>
    %cst_123 = arith.constant 3.125000e-02 : f32
    %317 = vector.broadcast %cst_123 : f32 to vector<1x8xf32>
    %318 = arith.mulf %314, %317 : vector<1x8xf32>
    %319 = arith.mulf %316, %316 : vector<1x8xf32>
    %320 = arith.subf %318, %319 : vector<1x8xf32>
    %cst_124 = arith.constant 9.99999974E-6 : f32
    %321 = vector.broadcast %cst_124 : f32 to vector<1x8xf32>
    %322 = arith.addf %320, %321 : vector<1x8xf32>
    %323 = math.rsqrt %322 : vector<1x8xf32>
    %cst_125 = arith.constant dense<0.000000e+00> : vector<1x32xf32>
    %324 = tpu.matmul %316, %14, %cst_125 {dimension_numbers = #tpu.dot_dimension_numbers<[1], [1], [0], [0], [0, 0, 1, 0], [], []>} : vector<1x8xf32>, vector<32x8xf32>, vector<1x32xf32> -> vector<1x32xf32>
    %cst_126 = arith.constant dense<0.000000e+00> : vector<1x32xf32>
    %325 = tpu.matmul %323, %14, %cst_126 {dimension_numbers = #tpu.dot_dimension_numbers<[1], [1], [0], [0], [0, 0, 1, 0], [], []>} : vector<1x8xf32>, vector<32x8xf32>, vector<1x32xf32> -> vector<1x32xf32>
    %326 = vector.broadcast %324 : vector<1x32xf32> to vector<8x32xf32>
    %327 = arith.subf %307, %326 : vector<8x32xf32>
    %328 = vector.broadcast %325 : vector<1x32xf32> to vector<8x32xf32>
    %329 = arith.mulf %327, %328 : vector<8x32xf32>
    %330 = vector.extract_strided_slice %16 {offsets = [14, 0], sizes = [1, 32], strides = [1, 1]} : vector<24x32xf32> to vector<1x32xf32>
    %331 = vector.broadcast %330 : vector<1x32xf32> to vector<8x32xf32>
    %332 = arith.mulf %329, %331 : vector<8x32xf32>
    %333 = vector.extract_strided_slice %16 {offsets = [15, 0], sizes = [1, 32], strides = [1, 1]} : vector<24x32xf32> to vector<1x32xf32>
    %334 = vector.broadcast %333 : vector<1x32xf32> to vector<8x32xf32>
    %335 = arith.addf %332, %334 : vector<8x32xf32>
    %cst_127 = arith.constant 0.000000e+00 : f32
    %336 = vector.broadcast %cst_127 : f32 to vector<8x32xf32>
    %337 = arith.subf %336, %335 : vector<8x32xf32>
    %338 = math.exp %337 : vector<8x32xf32>
    %cst_128 = arith.constant 1.000000e+00 : f32
    %339 = vector.broadcast %cst_128 : f32 to vector<8x32xf32>
    %340 = arith.addf %339, %338 : vector<8x32xf32>
    %cst_129 = arith.constant 1.000000e+00 : f32
    %341 = vector.broadcast %cst_129 : f32 to vector<8x32xf32>
    %342 = arith.divf %341, %340 : vector<8x32xf32>
    %343 = arith.mulf %335, %342 : vector<8x32xf32>
    %c0_130 = arith.constant 0 : index
    %c1_131 = arith.constant 1 : index
    %c0_132 = arith.constant 0 : index
    %c0_133 = arith.constant 0 : index
    %344 = vector.load %arg10[%c0_130, %c1_131, %c0_132, %c0_133] : memref<2x2x32x32xf32, #tpu.memory_space<vmem>>, vector<1x1x32x32xf32>
    %345 = vector.shape_cast %344 : vector<1x1x32x32xf32> to vector<32x32xf32>
    %cst_134 = arith.constant dense<0.000000e+00> : vector<8x32xf32>
    %346 = tpu.matmul %343, %345, %cst_134 {dimension_numbers = #tpu.dot_dimension_numbers<[1], [0], [0], [1], [0, 0, 1, 1], [], []>} : vector<8x32xf32>, vector<32x32xf32>, vector<8x32xf32> -> vector<8x32xf32>
    %347 = vector.extract_strided_slice %16 {offsets = [16, 0], sizes = [1, 32], strides = [1, 1]} : vector<24x32xf32> to vector<1x32xf32>
    %348 = vector.broadcast %347 : vector<1x32xf32> to vector<8x32xf32>
    %349 = arith.addf %346, %348 : vector<8x32xf32>
    %350 = arith.addf %231, %349 : vector<8x32xf32>
    %351 = vector.extract_strided_slice %16 {offsets = [17, 0], sizes = [1, 32], strides = [1, 1]} : vector<24x32xf32> to vector<1x32xf32>
    %352 = vector.extract_strided_slice %16 {offsets = [18, 0], sizes = [1, 32], strides = [1, 1]} : vector<24x32xf32> to vector<1x32xf32>
    %cst_135 = arith.constant dense<0.000000e+00> : vector<8xf32>
    %353 = vector.multi_reduction <add>, %350, %cst_135 [1] : vector<8x32xf32> to vector<8xf32>
    %354 = vector.shape_cast %353 : vector<8xf32> to vector<8x1xf32>
    %cst_136 = arith.constant 3.200000e+01 : f32
    %355 = vector.broadcast %cst_136 : f32 to vector<8x1xf32>
    %356 = arith.divf %354, %355 : vector<8x1xf32>
    %357 = vector.broadcast %356 : vector<8x1xf32> to vector<8x32xf32>
    %358 = arith.subf %350, %357 : vector<8x32xf32>
    %359 = vector.broadcast %356 : vector<8x1xf32> to vector<8x32xf32>
    %360 = arith.subf %350, %359 : vector<8x32xf32>
    %361 = arith.mulf %358, %360 : vector<8x32xf32>
    %cst_137 = arith.constant dense<0.000000e+00> : vector<8xf32>
    %362 = vector.multi_reduction <add>, %361, %cst_137 [1] : vector<8x32xf32> to vector<8xf32>
    %363 = vector.shape_cast %362 : vector<8xf32> to vector<8x1xf32>
    %cst_138 = arith.constant 3.200000e+01 : f32
    %364 = vector.broadcast %cst_138 : f32 to vector<8x1xf32>
    %365 = arith.divf %363, %364 : vector<8x1xf32>
    %366 = vector.broadcast %356 : vector<8x1xf32> to vector<8x32xf32>
    %367 = arith.subf %350, %366 : vector<8x32xf32>
    %cst_139 = arith.constant 9.99999974E-6 : f32
    %368 = vector.broadcast %cst_139 : f32 to vector<8x1xf32>
    %369 = arith.addf %365, %368 : vector<8x1xf32>
    %370 = math.rsqrt %369 : vector<8x1xf32>
    %371 = vector.broadcast %370 : vector<8x1xf32> to vector<8x32xf32>
    %372 = arith.mulf %367, %371 : vector<8x32xf32>
    %373 = vector.broadcast %351 : vector<1x32xf32> to vector<8x32xf32>
    %374 = arith.mulf %372, %373 : vector<8x32xf32>
    %375 = vector.broadcast %352 : vector<1x32xf32> to vector<8x32xf32>
    %376 = arith.addf %374, %375 : vector<8x32xf32>
    %377 = vector.extract_strided_slice %16 {offsets = [19, 0], sizes = [1, 32], strides = [1, 1]} : vector<24x32xf32> to vector<1x32xf32>
    %378 = vector.extract_strided_slice %16 {offsets = [20, 0], sizes = [1, 32], strides = [1, 1]} : vector<24x32xf32> to vector<1x32xf32>
    %379 = vector.extract_strided_slice %18 {offsets = [1, 0], sizes = [1, 64], strides = [1, 1]} : vector<2x64xf32> to vector<1x64xf32>
    %c0_140 = arith.constant 0 : index
    %c1_141 = arith.constant 1 : index
    %c0_142 = arith.constant 0 : index
    %c0_143 = arith.constant 0 : index
    %380 = vector.load %arg8[%c0_140, %c1_141, %c0_142, %c0_143] : memref<2x2x32x64xf32, #tpu.memory_space<vmem>>, vector<1x1x32x64xf32>
    %381 = vector.shape_cast %380 : vector<1x1x32x64xf32> to vector<32x64xf32>
    %c0_144 = arith.constant 0 : index
    %c1_145 = arith.constant 1 : index
    %c0_146 = arith.constant 0 : index
    %c0_147 = arith.constant 0 : index
    %382 = vector.load %arg9[%c0_144, %c1_145, %c0_146, %c0_147] : memref<2x2x64x32xf32, #tpu.memory_space<vmem>>, vector<1x1x64x32xf32>
    %383 = vector.shape_cast %382 : vector<1x1x64x32xf32> to vector<64x32xf32>
    %384 = vector.extract_strided_slice %16 {offsets = [21, 0], sizes = [1, 32], strides = [1, 1]} : vector<24x32xf32> to vector<1x32xf32>
    %385 = vector.broadcast %377 : vector<1x32xf32> to vector<8x32xf32>
    %386 = arith.mulf %385, %376 : vector<8x32xf32>
    %387 = vector.broadcast %378 : vector<1x32xf32> to vector<8x32xf32>
    %388 = arith.addf %386, %387 : vector<8x32xf32>
    %cst_148 = arith.constant dense<0.000000e+00> : vector<8x64xf32>
    %389 = tpu.matmul %388, %381, %cst_148 {dimension_numbers = #tpu.dot_dimension_numbers<[1], [0], [0], [1], [0, 0, 1, 1], [], []>} : vector<8x32xf32>, vector<32x64xf32>, vector<8x64xf32> -> vector<8x64xf32>
    %390 = vector.broadcast %379 : vector<1x64xf32> to vector<8x64xf32>
    %391 = arith.addf %389, %390 : vector<8x64xf32>
    %cst_149 = arith.constant 0.000000e+00 : f32
    %392 = vector.broadcast %cst_149 : f32 to vector<8x64xf32>
    %393 = arith.subf %392, %391 : vector<8x64xf32>
    %394 = math.exp %393 : vector<8x64xf32>
    %cst_150 = arith.constant 1.000000e+00 : f32
    %395 = vector.broadcast %cst_150 : f32 to vector<8x64xf32>
    %396 = arith.addf %395, %394 : vector<8x64xf32>
    %cst_151 = arith.constant 1.000000e+00 : f32
    %397 = vector.broadcast %cst_151 : f32 to vector<8x64xf32>
    %398 = arith.divf %397, %396 : vector<8x64xf32>
    %399 = arith.mulf %391, %398 : vector<8x64xf32>
    %cst_152 = arith.constant dense<0.000000e+00> : vector<8x32xf32>
    %400 = tpu.matmul %399, %383, %cst_152 {dimension_numbers = #tpu.dot_dimension_numbers<[1], [0], [0], [1], [0, 0, 1, 1], [], []>} : vector<8x64xf32>, vector<64x32xf32>, vector<8x32xf32> -> vector<8x32xf32>
    %401 = arith.addf %376, %400 : vector<8x32xf32>
    %402 = vector.broadcast %384 : vector<1x32xf32> to vector<8x32xf32>
    %403 = arith.addf %401, %402 : vector<8x32xf32>
    %404 = vector.extract_strided_slice %16 {offsets = [22, 0], sizes = [1, 32], strides = [1, 1]} : vector<24x32xf32> to vector<1x32xf32>
    %405 = vector.extract_strided_slice %16 {offsets = [23, 0], sizes = [1, 32], strides = [1, 1]} : vector<24x32xf32> to vector<1x32xf32>
    %cst_153 = arith.constant dense<0.000000e+00> : vector<8xf32>
    %406 = vector.multi_reduction <add>, %403, %cst_153 [1] : vector<8x32xf32> to vector<8xf32>
    %407 = vector.shape_cast %406 : vector<8xf32> to vector<8x1xf32>
    %cst_154 = arith.constant 3.200000e+01 : f32
    %408 = vector.broadcast %cst_154 : f32 to vector<8x1xf32>
    %409 = arith.divf %407, %408 : vector<8x1xf32>
    %410 = vector.broadcast %409 : vector<8x1xf32> to vector<8x32xf32>
    %411 = arith.subf %403, %410 : vector<8x32xf32>
    %412 = vector.broadcast %409 : vector<8x1xf32> to vector<8x32xf32>
    %413 = arith.subf %403, %412 : vector<8x32xf32>
    %414 = arith.mulf %411, %413 : vector<8x32xf32>
    %cst_155 = arith.constant dense<0.000000e+00> : vector<8xf32>
    %415 = vector.multi_reduction <add>, %414, %cst_155 [1] : vector<8x32xf32> to vector<8xf32>
    %416 = vector.shape_cast %415 : vector<8xf32> to vector<8x1xf32>
    %cst_156 = arith.constant 3.200000e+01 : f32
    %417 = vector.broadcast %cst_156 : f32 to vector<8x1xf32>
    %418 = arith.divf %416, %417 : vector<8x1xf32>
    %419 = vector.broadcast %409 : vector<8x1xf32> to vector<8x32xf32>
    %420 = arith.subf %403, %419 : vector<8x32xf32>
    %cst_157 = arith.constant 9.99999974E-6 : f32
    %421 = vector.broadcast %cst_157 : f32 to vector<8x1xf32>
    %422 = arith.addf %418, %421 : vector<8x1xf32>
    %423 = math.rsqrt %422 : vector<8x1xf32>
    %424 = vector.broadcast %423 : vector<8x1xf32> to vector<8x32xf32>
    %425 = arith.mulf %420, %424 : vector<8x32xf32>
    %426 = vector.broadcast %404 : vector<1x32xf32> to vector<8x32xf32>
    %427 = arith.mulf %425, %426 : vector<8x32xf32>
    %428 = vector.broadcast %405 : vector<1x32xf32> to vector<8x32xf32>
    %429 = arith.addf %427, %428 : vector<8x32xf32>
    %430 = arith.addf %1, %429 : vector<8x32xf32>
    %431 = vector.broadcast %3 : vector<8x1xf32> to vector<8x32xf32>
    %432 = arith.mulf %430, %431 : vector<8x32xf32>
    %cst_158 = arith.constant 0.707106769 : f32
    %433 = vector.broadcast %cst_158 : f32 to vector<8x32xf32>
    %434 = arith.mulf %432, %433 : vector<8x32xf32>
    %c1_159 = arith.constant 1 : index
    %c0_160 = arith.constant 0 : index
    %c0_161 = arith.constant 0 : index
    %435 = vector.load %arg4[%c1_159, %c0_160, %c0_161] : memref<2x24x32xf32, #tpu.memory_space<vmem>>, vector<1x24x32xf32>
    %436 = vector.shape_cast %435 : vector<1x24x32xf32> to vector<24x32xf32>
    %c1_162 = arith.constant 1 : index
    %c0_163 = arith.constant 0 : index
    %c0_164 = arith.constant 0 : index
    %437 = vector.load %arg5[%c1_162, %c0_163, %c0_164] : memref<2x2x64xf32, #tpu.memory_space<vmem>>, vector<1x2x64xf32>
    %438 = vector.shape_cast %437 : vector<1x2x64xf32> to vector<2x64xf32>
    %439 = vector.extract_strided_slice %436 {offsets = [0, 0], sizes = [1, 32], strides = [1, 1]} : vector<24x32xf32> to vector<1x32xf32>
    %440 = vector.broadcast %439 : vector<1x32xf32> to vector<8x32xf32>
    %441 = arith.mulf %440, %434 : vector<8x32xf32>
    %442 = vector.extract_strided_slice %436 {offsets = [1, 0], sizes = [1, 32], strides = [1, 1]} : vector<24x32xf32> to vector<1x32xf32>
    %443 = vector.broadcast %442 : vector<1x32xf32> to vector<8x32xf32>
    %444 = arith.addf %441, %443 : vector<8x32xf32>
    %c1_165 = arith.constant 1 : index
    %c0_166 = arith.constant 0 : index
    %c0_167 = arith.constant 0 : index
    %445 = vector.load %arg6[%c1_165, %c0_166, %c0_167] : memref<2x32x448xf32, #tpu.memory_space<vmem>>, vector<1x32x448xf32>
    %446 = vector.shape_cast %445 : vector<1x32x448xf32> to vector<32x448xf32>
    %cst_168 = arith.constant dense<0.000000e+00> : vector<8x448xf32>
    %447 = tpu.matmul %444, %446, %cst_168 {dimension_numbers = #tpu.dot_dimension_numbers<[1], [0], [0], [1], [0, 0, 1, 1], [], []>} : vector<8x32xf32>, vector<32x448xf32>, vector<8x448xf32> -> vector<8x448xf32>
    %c1_169 = arith.constant 1 : index
    %c0_170 = arith.constant 0 : index
    %c0_171 = arith.constant 0 : index
    %448 = vector.load %arg7[%c1_169, %c0_170, %c0_171] : memref<2x1x448xf32, #tpu.memory_space<vmem>>, vector<1x1x448xf32>
    %449 = vector.shape_cast %448 : vector<1x1x448xf32> to vector<1x448xf32>
    %450 = vector.broadcast %449 : vector<1x448xf32> to vector<8x448xf32>
    %451 = arith.addf %447, %450 : vector<8x448xf32>
    %cst_172 = arith.constant 0.000000e+00 : f32
    %452 = vector.broadcast %cst_172 : f32 to vector<8x32xf32>
    %453 = vector.extract_strided_slice %451 {offsets = [0, 0], sizes = [8, 32], strides = [1, 1]} : vector<8x448xf32> to vector<8x32xf32>
    %454 = vector.extract_strided_slice %451 {offsets = [0, 128], sizes = [8, 32], strides = [1, 1]} : vector<8x448xf32> to vector<8x32xf32>
    %455 = vector.extract_strided_slice %451 {offsets = [0, 256], sizes = [8, 32], strides = [1, 1]} : vector<8x448xf32> to vector<8x32xf32>
    %456 = vector.extract_strided_slice %451 {offsets = [0, 384], sizes = [8, 8], strides = [1, 1]} : vector<8x448xf32> to vector<8x8xf32>
    %457 = vector.extract_strided_slice %451 {offsets = [0, 416], sizes = [8, 8], strides = [1, 1]} : vector<8x448xf32> to vector<8x8xf32>
    %cst_173 = arith.constant dense<0.000000e+00> : vector<8x8xf32>
    %458 = tpu.matmul %456, %457, %cst_173 {dimension_numbers = #tpu.dot_dimension_numbers<[1], [1], [0], [0], [0, 0, 1, 0], [], []>} : vector<8x8xf32>, vector<8x8xf32>, vector<8x8xf32> -> vector<8x8xf32>
    %459 = arith.mulf %453, %9 : vector<8x32xf32>
    %460 = arith.mulf %454, %11 : vector<8x32xf32>
    %461 = arith.addf %459, %460 : vector<8x32xf32>
    %cst_174 = arith.constant dense<0.000000e+00> : vector<8x8xf32>
    %462 = tpu.matmul %461, %13, %cst_174 {dimension_numbers = #tpu.dot_dimension_numbers<[1], [1], [0], [0], [0, 0, 1, 0], [], []>} : vector<8x32xf32>, vector<8x32xf32>, vector<8x8xf32> -> vector<8x8xf32>
    %463 = arith.addf %458, %462 : vector<8x8xf32>
    %cst_175 = arith.constant 0.353553385 : f32
    %464 = vector.broadcast %cst_175 : f32 to vector<8x8xf32>
    %465 = arith.mulf %463, %464 : vector<8x8xf32>
    %cst_176 = arith.constant -1.000000e+09 : f32
    %466 = vector.shape_cast %7 : vector<1x8xi1> to vector<1x8xi1>
    %467 = vector.broadcast %466 : vector<1x8xi1> to vector<8x8xi1>
    %468 = vector.broadcast %cst_176 : f32 to vector<8x8xf32>
    %469 = arith.select %467, %468, %465 : vector<8x8xi1>, vector<8x8xf32>
    %cst_177 = arith.constant dense<0xFF800000> : vector<8xf32>
    %470 = vector.multi_reduction <maximumf>, %469, %cst_177 [1] : vector<8x8xf32> to vector<8xf32>
    %471 = vector.shape_cast %470 : vector<8xf32> to vector<8x1xf32>
    %472 = vector.broadcast %471 : vector<8x1xf32> to vector<8x8xf32>
    %473 = arith.subf %469, %472 : vector<8x8xf32>
    %474 = math.exp %473 : vector<8x8xf32>
    %cst_178 = arith.constant dense<0.000000e+00> : vector<8xf32>
    %475 = vector.multi_reduction <add>, %474, %cst_178 [1] : vector<8x8xf32> to vector<8xf32>
    %476 = vector.shape_cast %475 : vector<8xf32> to vector<8x1xf32>
    %477 = tpu.reciprocal %476 {approx = true} : vector<8x1xf32> -> vector<8x1xf32>
    %478 = vector.broadcast %477 : vector<8x1xf32> to vector<8x8xf32>
    %479 = arith.mulf %474, %478 : vector<8x8xf32>
    %cst_179 = arith.constant dense<0.000000e+00> : vector<8x32xf32>
    %480 = tpu.matmul %479, %455, %cst_179 {dimension_numbers = #tpu.dot_dimension_numbers<[1], [0], [0], [1], [0, 0, 1, 1], [], []>} : vector<8x8xf32>, vector<8x32xf32>, vector<8x32xf32> -> vector<8x32xf32>
    %481 = arith.addf %452, %480 : vector<8x32xf32>
    %482 = vector.extract_strided_slice %451 {offsets = [0, 32], sizes = [8, 32], strides = [1, 1]} : vector<8x448xf32> to vector<8x32xf32>
    %483 = vector.extract_strided_slice %451 {offsets = [0, 160], sizes = [8, 32], strides = [1, 1]} : vector<8x448xf32> to vector<8x32xf32>
    %484 = vector.extract_strided_slice %451 {offsets = [0, 288], sizes = [8, 32], strides = [1, 1]} : vector<8x448xf32> to vector<8x32xf32>
    %485 = vector.extract_strided_slice %451 {offsets = [0, 392], sizes = [8, 8], strides = [1, 1]} : vector<8x448xf32> to vector<8x8xf32>
    %486 = vector.extract_strided_slice %451 {offsets = [0, 424], sizes = [8, 8], strides = [1, 1]} : vector<8x448xf32> to vector<8x8xf32>
    %cst_180 = arith.constant dense<0.000000e+00> : vector<8x8xf32>
    %487 = tpu.matmul %485, %486, %cst_180 {dimension_numbers = #tpu.dot_dimension_numbers<[1], [1], [0], [0], [0, 0, 1, 0], [], []>} : vector<8x8xf32>, vector<8x8xf32>, vector<8x8xf32> -> vector<8x8xf32>
    %488 = arith.mulf %482, %9 : vector<8x32xf32>
    %489 = arith.mulf %483, %11 : vector<8x32xf32>
    %490 = arith.addf %488, %489 : vector<8x32xf32>
    %cst_181 = arith.constant dense<0.000000e+00> : vector<8x8xf32>
    %491 = tpu.matmul %490, %13, %cst_181 {dimension_numbers = #tpu.dot_dimension_numbers<[1], [1], [0], [0], [0, 0, 1, 0], [], []>} : vector<8x32xf32>, vector<8x32xf32>, vector<8x8xf32> -> vector<8x8xf32>
    %492 = arith.addf %487, %491 : vector<8x8xf32>
    %cst_182 = arith.constant 0.353553385 : f32
    %493 = vector.broadcast %cst_182 : f32 to vector<8x8xf32>
    %494 = arith.mulf %492, %493 : vector<8x8xf32>
    %cst_183 = arith.constant -1.000000e+09 : f32
    %495 = vector.shape_cast %7 : vector<1x8xi1> to vector<1x8xi1>
    %496 = vector.broadcast %495 : vector<1x8xi1> to vector<8x8xi1>
    %497 = vector.broadcast %cst_183 : f32 to vector<8x8xf32>
    %498 = arith.select %496, %497, %494 : vector<8x8xi1>, vector<8x8xf32>
    %cst_184 = arith.constant dense<0xFF800000> : vector<8xf32>
    %499 = vector.multi_reduction <maximumf>, %498, %cst_184 [1] : vector<8x8xf32> to vector<8xf32>
    %500 = vector.shape_cast %499 : vector<8xf32> to vector<8x1xf32>
    %501 = vector.broadcast %500 : vector<8x1xf32> to vector<8x8xf32>
    %502 = arith.subf %498, %501 : vector<8x8xf32>
    %503 = math.exp %502 : vector<8x8xf32>
    %cst_185 = arith.constant dense<0.000000e+00> : vector<8xf32>
    %504 = vector.multi_reduction <add>, %503, %cst_185 [1] : vector<8x8xf32> to vector<8xf32>
    %505 = vector.shape_cast %504 : vector<8xf32> to vector<8x1xf32>
    %506 = tpu.reciprocal %505 {approx = true} : vector<8x1xf32> -> vector<8x1xf32>
    %507 = vector.broadcast %506 : vector<8x1xf32> to vector<8x8xf32>
    %508 = arith.mulf %503, %507 : vector<8x8xf32>
    %cst_186 = arith.constant dense<0.000000e+00> : vector<8x32xf32>
    %509 = tpu.matmul %508, %484, %cst_186 {dimension_numbers = #tpu.dot_dimension_numbers<[1], [0], [0], [1], [0, 0, 1, 1], [], []>} : vector<8x8xf32>, vector<8x32xf32>, vector<8x32xf32> -> vector<8x32xf32>
    %510 = arith.addf %481, %509 : vector<8x32xf32>
    %511 = vector.extract_strided_slice %451 {offsets = [0, 64], sizes = [8, 32], strides = [1, 1]} : vector<8x448xf32> to vector<8x32xf32>
    %512 = vector.extract_strided_slice %451 {offsets = [0, 192], sizes = [8, 32], strides = [1, 1]} : vector<8x448xf32> to vector<8x32xf32>
    %513 = vector.extract_strided_slice %451 {offsets = [0, 320], sizes = [8, 32], strides = [1, 1]} : vector<8x448xf32> to vector<8x32xf32>
    %514 = vector.extract_strided_slice %451 {offsets = [0, 400], sizes = [8, 8], strides = [1, 1]} : vector<8x448xf32> to vector<8x8xf32>
    %515 = vector.extract_strided_slice %451 {offsets = [0, 432], sizes = [8, 8], strides = [1, 1]} : vector<8x448xf32> to vector<8x8xf32>
    %cst_187 = arith.constant dense<0.000000e+00> : vector<8x8xf32>
    %516 = tpu.matmul %514, %515, %cst_187 {dimension_numbers = #tpu.dot_dimension_numbers<[1], [1], [0], [0], [0, 0, 1, 0], [], []>} : vector<8x8xf32>, vector<8x8xf32>, vector<8x8xf32> -> vector<8x8xf32>
    %517 = arith.mulf %511, %9 : vector<8x32xf32>
    %518 = arith.mulf %512, %11 : vector<8x32xf32>
    %519 = arith.addf %517, %518 : vector<8x32xf32>
    %cst_188 = arith.constant dense<0.000000e+00> : vector<8x8xf32>
    %520 = tpu.matmul %519, %13, %cst_188 {dimension_numbers = #tpu.dot_dimension_numbers<[1], [1], [0], [0], [0, 0, 1, 0], [], []>} : vector<8x32xf32>, vector<8x32xf32>, vector<8x8xf32> -> vector<8x8xf32>
    %521 = arith.addf %516, %520 : vector<8x8xf32>
    %cst_189 = arith.constant 0.353553385 : f32
    %522 = vector.broadcast %cst_189 : f32 to vector<8x8xf32>
    %523 = arith.mulf %521, %522 : vector<8x8xf32>
    %cst_190 = arith.constant -1.000000e+09 : f32
    %524 = vector.shape_cast %7 : vector<1x8xi1> to vector<1x8xi1>
    %525 = vector.broadcast %524 : vector<1x8xi1> to vector<8x8xi1>
    %526 = vector.broadcast %cst_190 : f32 to vector<8x8xf32>
    %527 = arith.select %525, %526, %523 : vector<8x8xi1>, vector<8x8xf32>
    %cst_191 = arith.constant dense<0xFF800000> : vector<8xf32>
    %528 = vector.multi_reduction <maximumf>, %527, %cst_191 [1] : vector<8x8xf32> to vector<8xf32>
    %529 = vector.shape_cast %528 : vector<8xf32> to vector<8x1xf32>
    %530 = vector.broadcast %529 : vector<8x1xf32> to vector<8x8xf32>
    %531 = arith.subf %527, %530 : vector<8x8xf32>
    %532 = math.exp %531 : vector<8x8xf32>
    %cst_192 = arith.constant dense<0.000000e+00> : vector<8xf32>
    %533 = vector.multi_reduction <add>, %532, %cst_192 [1] : vector<8x8xf32> to vector<8xf32>
    %534 = vector.shape_cast %533 : vector<8xf32> to vector<8x1xf32>
    %535 = tpu.reciprocal %534 {approx = true} : vector<8x1xf32> -> vector<8x1xf32>
    %536 = vector.broadcast %535 : vector<8x1xf32> to vector<8x8xf32>
    %537 = arith.mulf %532, %536 : vector<8x8xf32>
    %cst_193 = arith.constant dense<0.000000e+00> : vector<8x32xf32>
    %538 = tpu.matmul %537, %513, %cst_193 {dimension_numbers = #tpu.dot_dimension_numbers<[1], [0], [0], [1], [0, 0, 1, 1], [], []>} : vector<8x8xf32>, vector<8x32xf32>, vector<8x32xf32> -> vector<8x32xf32>
    %539 = arith.addf %510, %538 : vector<8x32xf32>
    %540 = vector.extract_strided_slice %451 {offsets = [0, 96], sizes = [8, 32], strides = [1, 1]} : vector<8x448xf32> to vector<8x32xf32>
    %541 = vector.extract_strided_slice %451 {offsets = [0, 224], sizes = [8, 32], strides = [1, 1]} : vector<8x448xf32> to vector<8x32xf32>
    %542 = vector.extract_strided_slice %451 {offsets = [0, 352], sizes = [8, 32], strides = [1, 1]} : vector<8x448xf32> to vector<8x32xf32>
    %543 = vector.extract_strided_slice %451 {offsets = [0, 408], sizes = [8, 8], strides = [1, 1]} : vector<8x448xf32> to vector<8x8xf32>
    %544 = vector.extract_strided_slice %451 {offsets = [0, 440], sizes = [8, 8], strides = [1, 1]} : vector<8x448xf32> to vector<8x8xf32>
    %cst_194 = arith.constant dense<0.000000e+00> : vector<8x8xf32>
    %545 = tpu.matmul %543, %544, %cst_194 {dimension_numbers = #tpu.dot_dimension_numbers<[1], [1], [0], [0], [0, 0, 1, 0], [], []>} : vector<8x8xf32>, vector<8x8xf32>, vector<8x8xf32> -> vector<8x8xf32>
    %546 = arith.mulf %540, %9 : vector<8x32xf32>
    %547 = arith.mulf %541, %11 : vector<8x32xf32>
    %548 = arith.addf %546, %547 : vector<8x32xf32>
    %cst_195 = arith.constant dense<0.000000e+00> : vector<8x8xf32>
    %549 = tpu.matmul %548, %13, %cst_195 {dimension_numbers = #tpu.dot_dimension_numbers<[1], [1], [0], [0], [0, 0, 1, 0], [], []>} : vector<8x32xf32>, vector<8x32xf32>, vector<8x8xf32> -> vector<8x8xf32>
    %550 = arith.addf %545, %549 : vector<8x8xf32>
    %cst_196 = arith.constant 0.353553385 : f32
    %551 = vector.broadcast %cst_196 : f32 to vector<8x8xf32>
    %552 = arith.mulf %550, %551 : vector<8x8xf32>
    %cst_197 = arith.constant -1.000000e+09 : f32
    %553 = vector.shape_cast %7 : vector<1x8xi1> to vector<1x8xi1>
    %554 = vector.broadcast %553 : vector<1x8xi1> to vector<8x8xi1>
    %555 = vector.broadcast %cst_197 : f32 to vector<8x8xf32>
    %556 = arith.select %554, %555, %552 : vector<8x8xi1>, vector<8x8xf32>
    %cst_198 = arith.constant dense<0xFF800000> : vector<8xf32>
    %557 = vector.multi_reduction <maximumf>, %556, %cst_198 [1] : vector<8x8xf32> to vector<8xf32>
    %558 = vector.shape_cast %557 : vector<8xf32> to vector<8x1xf32>
    %559 = vector.broadcast %558 : vector<8x1xf32> to vector<8x8xf32>
    %560 = arith.subf %556, %559 : vector<8x8xf32>
    %561 = math.exp %560 : vector<8x8xf32>
    %cst_199 = arith.constant dense<0.000000e+00> : vector<8xf32>
    %562 = vector.multi_reduction <add>, %561, %cst_199 [1] : vector<8x8xf32> to vector<8xf32>
    %563 = vector.shape_cast %562 : vector<8xf32> to vector<8x1xf32>
    %564 = tpu.reciprocal %563 {approx = true} : vector<8x1xf32> -> vector<8x1xf32>
    %565 = vector.broadcast %564 : vector<8x1xf32> to vector<8x8xf32>
    %566 = arith.mulf %561, %565 : vector<8x8xf32>
    %cst_200 = arith.constant dense<0.000000e+00> : vector<8x32xf32>
    %567 = tpu.matmul %566, %542, %cst_200 {dimension_numbers = #tpu.dot_dimension_numbers<[1], [0], [0], [1], [0, 0, 1, 1], [], []>} : vector<8x8xf32>, vector<8x32xf32>, vector<8x32xf32> -> vector<8x32xf32>
    %568 = arith.addf %539, %567 : vector<8x32xf32>
    %569 = arith.addf %434, %568 : vector<8x32xf32>
    %570 = vector.extract_strided_slice %436 {offsets = [2, 0], sizes = [1, 32], strides = [1, 1]} : vector<24x32xf32> to vector<1x32xf32>
    %571 = vector.broadcast %570 : vector<1x32xf32> to vector<8x32xf32>
    %572 = arith.addf %569, %571 : vector<8x32xf32>
    %573 = vector.extract_strided_slice %436 {offsets = [3, 0], sizes = [1, 32], strides = [1, 1]} : vector<24x32xf32> to vector<1x32xf32>
    %574 = vector.extract_strided_slice %436 {offsets = [4, 0], sizes = [1, 32], strides = [1, 1]} : vector<24x32xf32> to vector<1x32xf32>
    %cst_201 = arith.constant dense<0.000000e+00> : vector<8xf32>
    %575 = vector.multi_reduction <add>, %572, %cst_201 [1] : vector<8x32xf32> to vector<8xf32>
    %576 = vector.shape_cast %575 : vector<8xf32> to vector<8x1xf32>
    %cst_202 = arith.constant 3.200000e+01 : f32
    %577 = vector.broadcast %cst_202 : f32 to vector<8x1xf32>
    %578 = arith.divf %576, %577 : vector<8x1xf32>
    %579 = vector.broadcast %578 : vector<8x1xf32> to vector<8x32xf32>
    %580 = arith.subf %572, %579 : vector<8x32xf32>
    %581 = vector.broadcast %578 : vector<8x1xf32> to vector<8x32xf32>
    %582 = arith.subf %572, %581 : vector<8x32xf32>
    %583 = arith.mulf %580, %582 : vector<8x32xf32>
    %cst_203 = arith.constant dense<0.000000e+00> : vector<8xf32>
    %584 = vector.multi_reduction <add>, %583, %cst_203 [1] : vector<8x32xf32> to vector<8xf32>
    %585 = vector.shape_cast %584 : vector<8xf32> to vector<8x1xf32>
    %cst_204 = arith.constant 3.200000e+01 : f32
    %586 = vector.broadcast %cst_204 : f32 to vector<8x1xf32>
    %587 = arith.divf %585, %586 : vector<8x1xf32>
    %588 = vector.broadcast %578 : vector<8x1xf32> to vector<8x32xf32>
    %589 = arith.subf %572, %588 : vector<8x32xf32>
    %cst_205 = arith.constant 9.99999974E-6 : f32
    %590 = vector.broadcast %cst_205 : f32 to vector<8x1xf32>
    %591 = arith.addf %587, %590 : vector<8x1xf32>
    %592 = math.rsqrt %591 : vector<8x1xf32>
    %593 = vector.broadcast %592 : vector<8x1xf32> to vector<8x32xf32>
    %594 = arith.mulf %589, %593 : vector<8x32xf32>
    %595 = vector.broadcast %573 : vector<1x32xf32> to vector<8x32xf32>
    %596 = arith.mulf %594, %595 : vector<8x32xf32>
    %597 = vector.broadcast %574 : vector<1x32xf32> to vector<8x32xf32>
    %598 = arith.addf %596, %597 : vector<8x32xf32>
    %599 = vector.extract_strided_slice %436 {offsets = [5, 0], sizes = [1, 32], strides = [1, 1]} : vector<24x32xf32> to vector<1x32xf32>
    %600 = vector.extract_strided_slice %436 {offsets = [6, 0], sizes = [1, 32], strides = [1, 1]} : vector<24x32xf32> to vector<1x32xf32>
    %601 = vector.extract_strided_slice %438 {offsets = [0, 0], sizes = [1, 64], strides = [1, 1]} : vector<2x64xf32> to vector<1x64xf32>
    %c1_206 = arith.constant 1 : index
    %c0_207 = arith.constant 0 : index
    %c0_208 = arith.constant 0 : index
    %c0_209 = arith.constant 0 : index
    %602 = vector.load %arg8[%c1_206, %c0_207, %c0_208, %c0_209] : memref<2x2x32x64xf32, #tpu.memory_space<vmem>>, vector<1x1x32x64xf32>
    %603 = vector.shape_cast %602 : vector<1x1x32x64xf32> to vector<32x64xf32>
    %c1_210 = arith.constant 1 : index
    %c0_211 = arith.constant 0 : index
    %c0_212 = arith.constant 0 : index
    %c0_213 = arith.constant 0 : index
    %604 = vector.load %arg9[%c1_210, %c0_211, %c0_212, %c0_213] : memref<2x2x64x32xf32, #tpu.memory_space<vmem>>, vector<1x1x64x32xf32>
    %605 = vector.shape_cast %604 : vector<1x1x64x32xf32> to vector<64x32xf32>
    %606 = vector.extract_strided_slice %436 {offsets = [7, 0], sizes = [1, 32], strides = [1, 1]} : vector<24x32xf32> to vector<1x32xf32>
    %607 = vector.broadcast %599 : vector<1x32xf32> to vector<8x32xf32>
    %608 = arith.mulf %607, %598 : vector<8x32xf32>
    %609 = vector.broadcast %600 : vector<1x32xf32> to vector<8x32xf32>
    %610 = arith.addf %608, %609 : vector<8x32xf32>
    %cst_214 = arith.constant dense<0.000000e+00> : vector<8x64xf32>
    %611 = tpu.matmul %610, %603, %cst_214 {dimension_numbers = #tpu.dot_dimension_numbers<[1], [0], [0], [1], [0, 0, 1, 1], [], []>} : vector<8x32xf32>, vector<32x64xf32>, vector<8x64xf32> -> vector<8x64xf32>
    %612 = vector.broadcast %601 : vector<1x64xf32> to vector<8x64xf32>
    %613 = arith.addf %611, %612 : vector<8x64xf32>
    %cst_215 = arith.constant 0.000000e+00 : f32
    %614 = vector.broadcast %cst_215 : f32 to vector<8x64xf32>
    %615 = arith.subf %614, %613 : vector<8x64xf32>
    %616 = math.exp %615 : vector<8x64xf32>
    %cst_216 = arith.constant 1.000000e+00 : f32
    %617 = vector.broadcast %cst_216 : f32 to vector<8x64xf32>
    %618 = arith.addf %617, %616 : vector<8x64xf32>
    %cst_217 = arith.constant 1.000000e+00 : f32
    %619 = vector.broadcast %cst_217 : f32 to vector<8x64xf32>
    %620 = arith.divf %619, %618 : vector<8x64xf32>
    %621 = arith.mulf %613, %620 : vector<8x64xf32>
    %cst_218 = arith.constant dense<0.000000e+00> : vector<8x32xf32>
    %622 = tpu.matmul %621, %605, %cst_218 {dimension_numbers = #tpu.dot_dimension_numbers<[1], [0], [0], [1], [0, 0, 1, 1], [], []>} : vector<8x64xf32>, vector<64x32xf32>, vector<8x32xf32> -> vector<8x32xf32>
    %623 = arith.addf %598, %622 : vector<8x32xf32>
    %624 = vector.broadcast %606 : vector<1x32xf32> to vector<8x32xf32>
    %625 = arith.addf %623, %624 : vector<8x32xf32>
    %626 = vector.extract_strided_slice %436 {offsets = [8, 0], sizes = [1, 32], strides = [1, 1]} : vector<24x32xf32> to vector<1x32xf32>
    %627 = vector.extract_strided_slice %436 {offsets = [9, 0], sizes = [1, 32], strides = [1, 1]} : vector<24x32xf32> to vector<1x32xf32>
    %cst_219 = arith.constant dense<0.000000e+00> : vector<8xf32>
    %628 = vector.multi_reduction <add>, %625, %cst_219 [1] : vector<8x32xf32> to vector<8xf32>
    %629 = vector.shape_cast %628 : vector<8xf32> to vector<8x1xf32>
    %cst_220 = arith.constant 3.200000e+01 : f32
    %630 = vector.broadcast %cst_220 : f32 to vector<8x1xf32>
    %631 = arith.divf %629, %630 : vector<8x1xf32>
    %632 = vector.broadcast %631 : vector<8x1xf32> to vector<8x32xf32>
    %633 = arith.subf %625, %632 : vector<8x32xf32>
    %634 = vector.broadcast %631 : vector<8x1xf32> to vector<8x32xf32>
    %635 = arith.subf %625, %634 : vector<8x32xf32>
    %636 = arith.mulf %633, %635 : vector<8x32xf32>
    %cst_221 = arith.constant dense<0.000000e+00> : vector<8xf32>
    %637 = vector.multi_reduction <add>, %636, %cst_221 [1] : vector<8x32xf32> to vector<8xf32>
    %638 = vector.shape_cast %637 : vector<8xf32> to vector<8x1xf32>
    %cst_222 = arith.constant 3.200000e+01 : f32
    %639 = vector.broadcast %cst_222 : f32 to vector<8x1xf32>
    %640 = arith.divf %638, %639 : vector<8x1xf32>
    %641 = vector.broadcast %631 : vector<8x1xf32> to vector<8x32xf32>
    %642 = arith.subf %625, %641 : vector<8x32xf32>
    %cst_223 = arith.constant 9.99999974E-6 : f32
    %643 = vector.broadcast %cst_223 : f32 to vector<8x1xf32>
    %644 = arith.addf %640, %643 : vector<8x1xf32>
    %645 = math.rsqrt %644 : vector<8x1xf32>
    %646 = vector.broadcast %645 : vector<8x1xf32> to vector<8x32xf32>
    %647 = arith.mulf %642, %646 : vector<8x32xf32>
    %648 = vector.broadcast %626 : vector<1x32xf32> to vector<8x32xf32>
    %649 = arith.mulf %647, %648 : vector<8x32xf32>
    %650 = vector.broadcast %627 : vector<1x32xf32> to vector<8x32xf32>
    %651 = arith.addf %649, %650 : vector<8x32xf32>
    %652 = vector.extract_strided_slice %436 {offsets = [10, 0], sizes = [1, 32], strides = [1, 1]} : vector<24x32xf32> to vector<1x32xf32>
    %653 = vector.broadcast %652 : vector<1x32xf32> to vector<8x32xf32>
    %654 = arith.mulf %653, %651 : vector<8x32xf32>
    %655 = vector.extract_strided_slice %436 {offsets = [11, 0], sizes = [1, 32], strides = [1, 1]} : vector<24x32xf32> to vector<1x32xf32>
    %656 = vector.broadcast %655 : vector<1x32xf32> to vector<8x32xf32>
    %657 = arith.addf %654, %656 : vector<8x32xf32>
    %c1_224 = arith.constant 1 : index
    %c0_225 = arith.constant 0 : index
    %c0_226 = arith.constant 0 : index
    %c0_227 = arith.constant 0 : index
    %658 = vector.load %arg10[%c1_224, %c0_225, %c0_226, %c0_227] : memref<2x2x32x32xf32, #tpu.memory_space<vmem>>, vector<1x1x32x32xf32>
    %659 = vector.shape_cast %658 : vector<1x1x32x32xf32> to vector<32x32xf32>
    %cst_228 = arith.constant dense<0.000000e+00> : vector<8x32xf32>
    %660 = tpu.matmul %657, %659, %cst_228 {dimension_numbers = #tpu.dot_dimension_numbers<[1], [0], [0], [1], [0, 0, 1, 1], [], []>} : vector<8x32xf32>, vector<32x32xf32>, vector<8x32xf32> -> vector<8x32xf32>
    %661 = vector.extract_strided_slice %436 {offsets = [12, 0], sizes = [1, 32], strides = [1, 1]} : vector<24x32xf32> to vector<1x32xf32>
    %662 = vector.broadcast %661 : vector<1x32xf32> to vector<8x32xf32>
    %663 = arith.addf %660, %662 : vector<8x32xf32>
    %cst_229 = arith.constant 0.000000e+00 : f32
    %664 = vector.broadcast %cst_229 : f32 to vector<8x32xf32>
    %665 = arith.subf %664, %663 : vector<8x32xf32>
    %666 = math.exp %665 : vector<8x32xf32>
    %cst_230 = arith.constant 1.000000e+00 : f32
    %667 = vector.broadcast %cst_230 : f32 to vector<8x32xf32>
    %668 = arith.addf %667, %666 : vector<8x32xf32>
    %cst_231 = arith.constant 1.000000e+00 : f32
    %669 = vector.broadcast %cst_231 : f32 to vector<8x32xf32>
    %670 = arith.divf %669, %668 : vector<8x32xf32>
    %671 = arith.mulf %663, %670 : vector<8x32xf32>
    %672 = vector.broadcast %3 : vector<8x1xf32> to vector<8x32xf32>
    %673 = arith.mulf %671, %672 : vector<8x32xf32>
    %cst_232 = arith.constant 0.000000e+00 : f32
    %674 = vector.broadcast %cst_232 : f32 to vector<8x32xf32>
    %675 = vector.extract_strided_slice %673 {offsets = [0, 0], sizes = [1, 32], strides = [1, 1]} : vector<8x32xf32> to vector<1x32xf32>
    %c1_233 = arith.constant 1 : index
    %c0_234 = arith.constant 0 : index
    %c0_235 = arith.constant 0 : index
    %c0_236 = arith.constant 0 : index
    %676 = vector.load %arg11[%c1_233, %c0_234, %c0_235, %c0_236] : memref<2x8x8x32xf32, #tpu.memory_space<vmem>>, vector<1x1x8x32xf32>
    %677 = vector.shape_cast %676 : vector<1x1x8x32xf32> to vector<8x32xf32>
    %678 = vector.broadcast %675 : vector<1x32xf32> to vector<8x32xf32>
    %679 = arith.mulf %678, %677 : vector<8x32xf32>
    %680 = arith.addf %674, %679 : vector<8x32xf32>
    %681 = vector.extract_strided_slice %673 {offsets = [1, 0], sizes = [1, 32], strides = [1, 1]} : vector<8x32xf32> to vector<1x32xf32>
    %c1_237 = arith.constant 1 : index
    %c1_238 = arith.constant 1 : index
    %c0_239 = arith.constant 0 : index
    %c0_240 = arith.constant 0 : index
    %682 = vector.load %arg11[%c1_237, %c1_238, %c0_239, %c0_240] : memref<2x8x8x32xf32, #tpu.memory_space<vmem>>, vector<1x1x8x32xf32>
    %683 = vector.shape_cast %682 : vector<1x1x8x32xf32> to vector<8x32xf32>
    %684 = vector.broadcast %681 : vector<1x32xf32> to vector<8x32xf32>
    %685 = arith.mulf %684, %683 : vector<8x32xf32>
    %686 = arith.addf %680, %685 : vector<8x32xf32>
    %687 = vector.extract_strided_slice %673 {offsets = [2, 0], sizes = [1, 32], strides = [1, 1]} : vector<8x32xf32> to vector<1x32xf32>
    %c1_241 = arith.constant 1 : index
    %c2_242 = arith.constant 2 : index
    %c0_243 = arith.constant 0 : index
    %c0_244 = arith.constant 0 : index
    %688 = vector.load %arg11[%c1_241, %c2_242, %c0_243, %c0_244] : memref<2x8x8x32xf32, #tpu.memory_space<vmem>>, vector<1x1x8x32xf32>
    %689 = vector.shape_cast %688 : vector<1x1x8x32xf32> to vector<8x32xf32>
    %690 = vector.broadcast %687 : vector<1x32xf32> to vector<8x32xf32>
    %691 = arith.mulf %690, %689 : vector<8x32xf32>
    %692 = arith.addf %686, %691 : vector<8x32xf32>
    %693 = vector.extract_strided_slice %673 {offsets = [3, 0], sizes = [1, 32], strides = [1, 1]} : vector<8x32xf32> to vector<1x32xf32>
    %c1_245 = arith.constant 1 : index
    %c3_246 = arith.constant 3 : index
    %c0_247 = arith.constant 0 : index
    %c0_248 = arith.constant 0 : index
    %694 = vector.load %arg11[%c1_245, %c3_246, %c0_247, %c0_248] : memref<2x8x8x32xf32, #tpu.memory_space<vmem>>, vector<1x1x8x32xf32>
    %695 = vector.shape_cast %694 : vector<1x1x8x32xf32> to vector<8x32xf32>
    %696 = vector.broadcast %693 : vector<1x32xf32> to vector<8x32xf32>
    %697 = arith.mulf %696, %695 : vector<8x32xf32>
    %698 = arith.addf %692, %697 : vector<8x32xf32>
    %699 = vector.extract_strided_slice %673 {offsets = [4, 0], sizes = [1, 32], strides = [1, 1]} : vector<8x32xf32> to vector<1x32xf32>
    %c1_249 = arith.constant 1 : index
    %c4_250 = arith.constant 4 : index
    %c0_251 = arith.constant 0 : index
    %c0_252 = arith.constant 0 : index
    %700 = vector.load %arg11[%c1_249, %c4_250, %c0_251, %c0_252] : memref<2x8x8x32xf32, #tpu.memory_space<vmem>>, vector<1x1x8x32xf32>
    %701 = vector.shape_cast %700 : vector<1x1x8x32xf32> to vector<8x32xf32>
    %702 = vector.broadcast %699 : vector<1x32xf32> to vector<8x32xf32>
    %703 = arith.mulf %702, %701 : vector<8x32xf32>
    %704 = arith.addf %698, %703 : vector<8x32xf32>
    %705 = vector.extract_strided_slice %673 {offsets = [5, 0], sizes = [1, 32], strides = [1, 1]} : vector<8x32xf32> to vector<1x32xf32>
    %c1_253 = arith.constant 1 : index
    %c5_254 = arith.constant 5 : index
    %c0_255 = arith.constant 0 : index
    %c0_256 = arith.constant 0 : index
    %706 = vector.load %arg11[%c1_253, %c5_254, %c0_255, %c0_256] : memref<2x8x8x32xf32, #tpu.memory_space<vmem>>, vector<1x1x8x32xf32>
    %707 = vector.shape_cast %706 : vector<1x1x8x32xf32> to vector<8x32xf32>
    %708 = vector.broadcast %705 : vector<1x32xf32> to vector<8x32xf32>
    %709 = arith.mulf %708, %707 : vector<8x32xf32>
    %710 = arith.addf %704, %709 : vector<8x32xf32>
    %711 = vector.extract_strided_slice %673 {offsets = [6, 0], sizes = [1, 32], strides = [1, 1]} : vector<8x32xf32> to vector<1x32xf32>
    %c1_257 = arith.constant 1 : index
    %c6_258 = arith.constant 6 : index
    %c0_259 = arith.constant 0 : index
    %c0_260 = arith.constant 0 : index
    %712 = vector.load %arg11[%c1_257, %c6_258, %c0_259, %c0_260] : memref<2x8x8x32xf32, #tpu.memory_space<vmem>>, vector<1x1x8x32xf32>
    %713 = vector.shape_cast %712 : vector<1x1x8x32xf32> to vector<8x32xf32>
    %714 = vector.broadcast %711 : vector<1x32xf32> to vector<8x32xf32>
    %715 = arith.mulf %714, %713 : vector<8x32xf32>
    %716 = arith.addf %710, %715 : vector<8x32xf32>
    %717 = vector.extract_strided_slice %673 {offsets = [7, 0], sizes = [1, 32], strides = [1, 1]} : vector<8x32xf32> to vector<1x32xf32>
    %c1_261 = arith.constant 1 : index
    %c7_262 = arith.constant 7 : index
    %c0_263 = arith.constant 0 : index
    %c0_264 = arith.constant 0 : index
    %718 = vector.load %arg11[%c1_261, %c7_262, %c0_263, %c0_264] : memref<2x8x8x32xf32, #tpu.memory_space<vmem>>, vector<1x1x8x32xf32>
    %719 = vector.shape_cast %718 : vector<1x1x8x32xf32> to vector<8x32xf32>
    %720 = vector.broadcast %717 : vector<1x32xf32> to vector<8x32xf32>
    %721 = arith.mulf %720, %719 : vector<8x32xf32>
    %722 = arith.addf %716, %721 : vector<8x32xf32>
    %723 = vector.extract_strided_slice %436 {offsets = [13, 0], sizes = [1, 32], strides = [1, 1]} : vector<24x32xf32> to vector<1x32xf32>
    %724 = vector.broadcast %723 : vector<1x32xf32> to vector<8x32xf32>
    %725 = arith.addf %722, %724 : vector<8x32xf32>
    %726 = vector.broadcast %3 : vector<8x1xf32> to vector<8x32xf32>
    %727 = arith.mulf %725, %726 : vector<8x32xf32>
    %cst_265 = arith.constant dense<0.000000e+00> : vector<8x8xf32>
    %728 = tpu.matmul %727, %14, %cst_265 {dimension_numbers = #tpu.dot_dimension_numbers<[1], [0], [0], [1], [0, 0, 1, 1], [], []>} : vector<8x32xf32>, vector<32x8xf32>, vector<8x8xf32> -> vector<8x8xf32>
    %cst_266 = arith.constant dense<0.000000e+00> : vector<8xf32>
    %729 = vector.multi_reduction <add>, %728, %cst_266 [0] : vector<8x8xf32> to vector<8xf32>
    %730 = vector.shape_cast %729 : vector<8xf32> to vector<1x8xf32>
    %731 = arith.mulf %727, %727 : vector<8x32xf32>
    %cst_267 = arith.constant dense<0.000000e+00> : vector<8x8xf32>
    %732 = tpu.matmul %731, %14, %cst_267 {dimension_numbers = #tpu.dot_dimension_numbers<[1], [0], [0], [1], [0, 0, 1, 1], [], []>} : vector<8x32xf32>, vector<32x8xf32>, vector<8x8xf32> -> vector<8x8xf32>
    %cst_268 = arith.constant dense<0.000000e+00> : vector<8xf32>
    %733 = vector.multi_reduction <add>, %732, %cst_268 [0] : vector<8x8xf32> to vector<8xf32>
    %734 = vector.shape_cast %733 : vector<8xf32> to vector<1x8xf32>
    %cst_269 = arith.constant 3.125000e-02 : f32
    %735 = vector.broadcast %cst_269 : f32 to vector<1x8xf32>
    %736 = arith.mulf %730, %735 : vector<1x8xf32>
    %cst_270 = arith.constant 3.125000e-02 : f32
    %737 = vector.broadcast %cst_270 : f32 to vector<1x8xf32>
    %738 = arith.mulf %734, %737 : vector<1x8xf32>
    %739 = arith.mulf %736, %736 : vector<1x8xf32>
    %740 = arith.subf %738, %739 : vector<1x8xf32>
    %cst_271 = arith.constant 9.99999974E-6 : f32
    %741 = vector.broadcast %cst_271 : f32 to vector<1x8xf32>
    %742 = arith.addf %740, %741 : vector<1x8xf32>
    %743 = math.rsqrt %742 : vector<1x8xf32>
    %cst_272 = arith.constant dense<0.000000e+00> : vector<1x32xf32>
    %744 = tpu.matmul %736, %14, %cst_272 {dimension_numbers = #tpu.dot_dimension_numbers<[1], [1], [0], [0], [0, 0, 1, 0], [], []>} : vector<1x8xf32>, vector<32x8xf32>, vector<1x32xf32> -> vector<1x32xf32>
    %cst_273 = arith.constant dense<0.000000e+00> : vector<1x32xf32>
    %745 = tpu.matmul %743, %14, %cst_273 {dimension_numbers = #tpu.dot_dimension_numbers<[1], [1], [0], [0], [0, 0, 1, 0], [], []>} : vector<1x8xf32>, vector<32x8xf32>, vector<1x32xf32> -> vector<1x32xf32>
    %746 = vector.broadcast %744 : vector<1x32xf32> to vector<8x32xf32>
    %747 = arith.subf %727, %746 : vector<8x32xf32>
    %748 = vector.broadcast %745 : vector<1x32xf32> to vector<8x32xf32>
    %749 = arith.mulf %747, %748 : vector<8x32xf32>
    %750 = vector.extract_strided_slice %436 {offsets = [14, 0], sizes = [1, 32], strides = [1, 1]} : vector<24x32xf32> to vector<1x32xf32>
    %751 = vector.broadcast %750 : vector<1x32xf32> to vector<8x32xf32>
    %752 = arith.mulf %749, %751 : vector<8x32xf32>
    %753 = vector.extract_strided_slice %436 {offsets = [15, 0], sizes = [1, 32], strides = [1, 1]} : vector<24x32xf32> to vector<1x32xf32>
    %754 = vector.broadcast %753 : vector<1x32xf32> to vector<8x32xf32>
    %755 = arith.addf %752, %754 : vector<8x32xf32>
    %cst_274 = arith.constant 0.000000e+00 : f32
    %756 = vector.broadcast %cst_274 : f32 to vector<8x32xf32>
    %757 = arith.subf %756, %755 : vector<8x32xf32>
    %758 = math.exp %757 : vector<8x32xf32>
    %cst_275 = arith.constant 1.000000e+00 : f32
    %759 = vector.broadcast %cst_275 : f32 to vector<8x32xf32>
    %760 = arith.addf %759, %758 : vector<8x32xf32>
    %cst_276 = arith.constant 1.000000e+00 : f32
    %761 = vector.broadcast %cst_276 : f32 to vector<8x32xf32>
    %762 = arith.divf %761, %760 : vector<8x32xf32>
    %763 = arith.mulf %755, %762 : vector<8x32xf32>
    %c1_277 = arith.constant 1 : index
    %c1_278 = arith.constant 1 : index
    %c0_279 = arith.constant 0 : index
    %c0_280 = arith.constant 0 : index
    %764 = vector.load %arg10[%c1_277, %c1_278, %c0_279, %c0_280] : memref<2x2x32x32xf32, #tpu.memory_space<vmem>>, vector<1x1x32x32xf32>
    %765 = vector.shape_cast %764 : vector<1x1x32x32xf32> to vector<32x32xf32>
    %cst_281 = arith.constant dense<0.000000e+00> : vector<8x32xf32>
    %766 = tpu.matmul %763, %765, %cst_281 {dimension_numbers = #tpu.dot_dimension_numbers<[1], [0], [0], [1], [0, 0, 1, 1], [], []>} : vector<8x32xf32>, vector<32x32xf32>, vector<8x32xf32> -> vector<8x32xf32>
    %767 = vector.extract_strided_slice %436 {offsets = [16, 0], sizes = [1, 32], strides = [1, 1]} : vector<24x32xf32> to vector<1x32xf32>
    %768 = vector.broadcast %767 : vector<1x32xf32> to vector<8x32xf32>
    %769 = arith.addf %766, %768 : vector<8x32xf32>
    %770 = arith.addf %651, %769 : vector<8x32xf32>
    %771 = vector.extract_strided_slice %436 {offsets = [17, 0], sizes = [1, 32], strides = [1, 1]} : vector<24x32xf32> to vector<1x32xf32>
    %772 = vector.extract_strided_slice %436 {offsets = [18, 0], sizes = [1, 32], strides = [1, 1]} : vector<24x32xf32> to vector<1x32xf32>
    %cst_282 = arith.constant dense<0.000000e+00> : vector<8xf32>
    %773 = vector.multi_reduction <add>, %770, %cst_282 [1] : vector<8x32xf32> to vector<8xf32>
    %774 = vector.shape_cast %773 : vector<8xf32> to vector<8x1xf32>
    %cst_283 = arith.constant 3.200000e+01 : f32
    %775 = vector.broadcast %cst_283 : f32 to vector<8x1xf32>
    %776 = arith.divf %774, %775 : vector<8x1xf32>
    %777 = vector.broadcast %776 : vector<8x1xf32> to vector<8x32xf32>
    %778 = arith.subf %770, %777 : vector<8x32xf32>
    %779 = vector.broadcast %776 : vector<8x1xf32> to vector<8x32xf32>
    %780 = arith.subf %770, %779 : vector<8x32xf32>
    %781 = arith.mulf %778, %780 : vector<8x32xf32>
    %cst_284 = arith.constant dense<0.000000e+00> : vector<8xf32>
    %782 = vector.multi_reduction <add>, %781, %cst_284 [1] : vector<8x32xf32> to vector<8xf32>
    %783 = vector.shape_cast %782 : vector<8xf32> to vector<8x1xf32>
    %cst_285 = arith.constant 3.200000e+01 : f32
    %784 = vector.broadcast %cst_285 : f32 to vector<8x1xf32>
    %785 = arith.divf %783, %784 : vector<8x1xf32>
    %786 = vector.broadcast %776 : vector<8x1xf32> to vector<8x32xf32>
    %787 = arith.subf %770, %786 : vector<8x32xf32>
    %cst_286 = arith.constant 9.99999974E-6 : f32
    %788 = vector.broadcast %cst_286 : f32 to vector<8x1xf32>
    %789 = arith.addf %785, %788 : vector<8x1xf32>
    %790 = math.rsqrt %789 : vector<8x1xf32>
    %791 = vector.broadcast %790 : vector<8x1xf32> to vector<8x32xf32>
    %792 = arith.mulf %787, %791 : vector<8x32xf32>
    %793 = vector.broadcast %771 : vector<1x32xf32> to vector<8x32xf32>
    %794 = arith.mulf %792, %793 : vector<8x32xf32>
    %795 = vector.broadcast %772 : vector<1x32xf32> to vector<8x32xf32>
    %796 = arith.addf %794, %795 : vector<8x32xf32>
    %797 = vector.extract_strided_slice %436 {offsets = [19, 0], sizes = [1, 32], strides = [1, 1]} : vector<24x32xf32> to vector<1x32xf32>
    %798 = vector.extract_strided_slice %436 {offsets = [20, 0], sizes = [1, 32], strides = [1, 1]} : vector<24x32xf32> to vector<1x32xf32>
    %799 = vector.extract_strided_slice %438 {offsets = [1, 0], sizes = [1, 64], strides = [1, 1]} : vector<2x64xf32> to vector<1x64xf32>
    %c1_287 = arith.constant 1 : index
    %c1_288 = arith.constant 1 : index
    %c0_289 = arith.constant 0 : index
    %c0_290 = arith.constant 0 : index
    %800 = vector.load %arg8[%c1_287, %c1_288, %c0_289, %c0_290] : memref<2x2x32x64xf32, #tpu.memory_space<vmem>>, vector<1x1x32x64xf32>
    %801 = vector.shape_cast %800 : vector<1x1x32x64xf32> to vector<32x64xf32>
    %c1_291 = arith.constant 1 : index
    %c1_292 = arith.constant 1 : index
    %c0_293 = arith.constant 0 : index
    %c0_294 = arith.constant 0 : index
    %802 = vector.load %arg9[%c1_291, %c1_292, %c0_293, %c0_294] : memref<2x2x64x32xf32, #tpu.memory_space<vmem>>, vector<1x1x64x32xf32>
    %803 = vector.shape_cast %802 : vector<1x1x64x32xf32> to vector<64x32xf32>
    %804 = vector.extract_strided_slice %436 {offsets = [21, 0], sizes = [1, 32], strides = [1, 1]} : vector<24x32xf32> to vector<1x32xf32>
    %805 = vector.broadcast %797 : vector<1x32xf32> to vector<8x32xf32>
    %806 = arith.mulf %805, %796 : vector<8x32xf32>
    %807 = vector.broadcast %798 : vector<1x32xf32> to vector<8x32xf32>
    %808 = arith.addf %806, %807 : vector<8x32xf32>
    %cst_295 = arith.constant dense<0.000000e+00> : vector<8x64xf32>
    %809 = tpu.matmul %808, %801, %cst_295 {dimension_numbers = #tpu.dot_dimension_numbers<[1], [0], [0], [1], [0, 0, 1, 1], [], []>} : vector<8x32xf32>, vector<32x64xf32>, vector<8x64xf32> -> vector<8x64xf32>
    %810 = vector.broadcast %799 : vector<1x64xf32> to vector<8x64xf32>
    %811 = arith.addf %809, %810 : vector<8x64xf32>
    %cst_296 = arith.constant 0.000000e+00 : f32
    %812 = vector.broadcast %cst_296 : f32 to vector<8x64xf32>
    %813 = arith.subf %812, %811 : vector<8x64xf32>
    %814 = math.exp %813 : vector<8x64xf32>
    %cst_297 = arith.constant 1.000000e+00 : f32
    %815 = vector.broadcast %cst_297 : f32 to vector<8x64xf32>
    %816 = arith.addf %815, %814 : vector<8x64xf32>
    %cst_298 = arith.constant 1.000000e+00 : f32
    %817 = vector.broadcast %cst_298 : f32 to vector<8x64xf32>
    %818 = arith.divf %817, %816 : vector<8x64xf32>
    %819 = arith.mulf %811, %818 : vector<8x64xf32>
    %cst_299 = arith.constant dense<0.000000e+00> : vector<8x32xf32>
    %820 = tpu.matmul %819, %803, %cst_299 {dimension_numbers = #tpu.dot_dimension_numbers<[1], [0], [0], [1], [0, 0, 1, 1], [], []>} : vector<8x64xf32>, vector<64x32xf32>, vector<8x32xf32> -> vector<8x32xf32>
    %821 = arith.addf %796, %820 : vector<8x32xf32>
    %822 = vector.broadcast %804 : vector<1x32xf32> to vector<8x32xf32>
    %823 = arith.addf %821, %822 : vector<8x32xf32>
    %824 = vector.extract_strided_slice %436 {offsets = [22, 0], sizes = [1, 32], strides = [1, 1]} : vector<24x32xf32> to vector<1x32xf32>
    %825 = vector.extract_strided_slice %436 {offsets = [23, 0], sizes = [1, 32], strides = [1, 1]} : vector<24x32xf32> to vector<1x32xf32>
    %cst_300 = arith.constant dense<0.000000e+00> : vector<8xf32>
    %826 = vector.multi_reduction <add>, %823, %cst_300 [1] : vector<8x32xf32> to vector<8xf32>
    %827 = vector.shape_cast %826 : vector<8xf32> to vector<8x1xf32>
    %cst_301 = arith.constant 3.200000e+01 : f32
    %828 = vector.broadcast %cst_301 : f32 to vector<8x1xf32>
    %829 = arith.divf %827, %828 : vector<8x1xf32>
    %830 = vector.broadcast %829 : vector<8x1xf32> to vector<8x32xf32>
    %831 = arith.subf %823, %830 : vector<8x32xf32>
    %832 = vector.broadcast %829 : vector<8x1xf32> to vector<8x32xf32>
    %833 = arith.subf %823, %832 : vector<8x32xf32>
    %834 = arith.mulf %831, %833 : vector<8x32xf32>
    %cst_302 = arith.constant dense<0.000000e+00> : vector<8xf32>
    %835 = vector.multi_reduction <add>, %834, %cst_302 [1] : vector<8x32xf32> to vector<8xf32>
    %836 = vector.shape_cast %835 : vector<8xf32> to vector<8x1xf32>
    %cst_303 = arith.constant 3.200000e+01 : f32
    %837 = vector.broadcast %cst_303 : f32 to vector<8x1xf32>
    %838 = arith.divf %836, %837 : vector<8x1xf32>
    %839 = vector.broadcast %829 : vector<8x1xf32> to vector<8x32xf32>
    %840 = arith.subf %823, %839 : vector<8x32xf32>
    %cst_304 = arith.constant 9.99999974E-6 : f32
    %841 = vector.broadcast %cst_304 : f32 to vector<8x1xf32>
    %842 = arith.addf %838, %841 : vector<8x1xf32>
    %843 = math.rsqrt %842 : vector<8x1xf32>
    %844 = vector.broadcast %843 : vector<8x1xf32> to vector<8x32xf32>
    %845 = arith.mulf %840, %844 : vector<8x32xf32>
    %846 = vector.broadcast %824 : vector<1x32xf32> to vector<8x32xf32>
    %847 = arith.mulf %845, %846 : vector<8x32xf32>
    %848 = vector.broadcast %825 : vector<1x32xf32> to vector<8x32xf32>
    %849 = arith.addf %847, %848 : vector<8x32xf32>
    %850 = arith.addf %434, %849 : vector<8x32xf32>
    %851 = vector.broadcast %3 : vector<8x1xf32> to vector<8x32xf32>
    %852 = arith.mulf %850, %851 : vector<8x32xf32>
    %cst_305 = arith.constant 0.707106769 : f32
    %853 = vector.broadcast %cst_305 : f32 to vector<8x32xf32>
    %854 = arith.mulf %852, %853 : vector<8x32xf32>
    %c0_306 = arith.constant 0 : index
    %c0_307 = arith.constant 0 : index
    %c0_308 = arith.constant 0 : index
    %855 = vector.load %arg14[%c0_306, %c0_307, %c0_308] : memref<1x8x32xf32, #tpu.memory_space<vmem>>, vector<1x8x32xf32>
    %856 = vector.shape_cast %855 : vector<1x8x32xf32> to vector<8x32xf32>
    %857 = vector.shape_cast %854 : vector<8x32xf32> to vector<1x8x32xf32>
    tpu.vector_store %arg14[%c0_306, %c0_307, %c0_308], %857 {strides = array<i32>} : memref<1x8x32xf32, #tpu.memory_space<vmem>>, vector<1x8x32xf32>,
    return
  }
  func.func @transform_0(%arg0: i32) -> (i32, i32, i32) {
    %c0_i32 = arith.constant 0 : i32
    %c0_i32_0 = arith.constant 0 : i32
    %c0_i32_1 = arith.constant 0 : i32
    return %arg0, %c0_i32, %c0_i32_0 : i32, i32, i32
  }
  func.func @transform_1(%arg0: i32) -> (i32, i32, i32) {
    %c0_i32 = arith.constant 0 : i32
    %c0_i32_0 = arith.constant 0 : i32
    %c0_i32_1 = arith.constant 0 : i32
    return %arg0, %c0_i32, %c0_i32_0 : i32, i32, i32
  }
  func.func @transform_2(%arg0: i32) -> (i32, i32, i32) {
    %c0_i32 = arith.constant 0 : i32
    %c0_i32_0 = arith.constant 0 : i32
    %c0_i32_1 = arith.constant 0 : i32
    return %arg0, %c0_i32, %c0_i32_0 : i32, i32, i32
  }
  func.func @transform_3(%arg0: i32) -> (i32, i32, i32) {
    %c0_i32 = arith.constant 0 : i32
    %c0_i32_0 = arith.constant 0 : i32
    %c0_i32_1 = arith.constant 0 : i32
    %c0_i32_2 = arith.constant 0 : i32
    return %c0_i32, %c0_i32_0, %c0_i32_1 : i32, i32, i32
  }
  func.func @transform_4(%arg0: i32) -> (i32, i32, i32) {
    %c0_i32 = arith.constant 0 : i32
    %c0_i32_0 = arith.constant 0 : i32
    %c0_i32_1 = arith.constant 0 : i32
    %c0_i32_2 = arith.constant 0 : i32
    return %c0_i32, %c0_i32_0, %c0_i32_1 : i32, i32, i32
  }
  func.func @transform_5(%arg0: i32) -> (i32, i32, i32) {
    %c0_i32 = arith.constant 0 : i32
    %c0_i32_0 = arith.constant 0 : i32
    %c0_i32_1 = arith.constant 0 : i32
    %c0_i32_2 = arith.constant 0 : i32
    return %c0_i32, %c0_i32_0, %c0_i32_1 : i32, i32, i32
  }
  func.func @transform_6(%arg0: i32) -> (i32, i32, i32) {
    %c0_i32 = arith.constant 0 : i32
    %c0_i32_0 = arith.constant 0 : i32
    %c0_i32_1 = arith.constant 0 : i32
    %c0_i32_2 = arith.constant 0 : i32
    return %c0_i32, %c0_i32_0, %c0_i32_1 : i32, i32, i32
  }
  func.func @transform_7(%arg0: i32) -> (i32, i32, i32, i32) {
    %c0_i32 = arith.constant 0 : i32
    %c0_i32_0 = arith.constant 0 : i32
    %c0_i32_1 = arith.constant 0 : i32
    %c0_i32_2 = arith.constant 0 : i32
    %c0_i32_3 = arith.constant 0 : i32
    return %c0_i32, %c0_i32_0, %c0_i32_1, %c0_i32_2 : i32, i32, i32, i32
  }
  func.func @transform_8(%arg0: i32) -> (i32, i32, i32, i32) {
    %c0_i32 = arith.constant 0 : i32
    %c0_i32_0 = arith.constant 0 : i32
    %c0_i32_1 = arith.constant 0 : i32
    %c0_i32_2 = arith.constant 0 : i32
    %c0_i32_3 = arith.constant 0 : i32
    return %c0_i32, %c0_i32_0, %c0_i32_1, %c0_i32_2 : i32, i32, i32, i32
  }
  func.func @transform_9(%arg0: i32) -> (i32, i32, i32, i32) {
    %c0_i32 = arith.constant 0 : i32
    %c0_i32_0 = arith.constant 0 : i32
    %c0_i32_1 = arith.constant 0 : i32
    %c0_i32_2 = arith.constant 0 : i32
    %c0_i32_3 = arith.constant 0 : i32
    return %c0_i32, %c0_i32_0, %c0_i32_1, %c0_i32_2 : i32, i32, i32, i32
  }
  func.func @transform_10(%arg0: i32) -> (i32, i32, i32, i32) {
    %c0_i32 = arith.constant 0 : i32
    %c0_i32_0 = arith.constant 0 : i32
    %c0_i32_1 = arith.constant 0 : i32
    %c0_i32_2 = arith.constant 0 : i32
    %c0_i32_3 = arith.constant 0 : i32
    return %c0_i32, %c0_i32_0, %c0_i32_1, %c0_i32_2 : i32, i32, i32, i32
  }
  func.func @transform_11(%arg0: i32) -> (i32, i32) {
    %c0_i32 = arith.constant 0 : i32
    %c0_i32_0 = arith.constant 0 : i32
    %c0_i32_1 = arith.constant 0 : i32
    return %c0_i32, %c0_i32_0 : i32, i32
  }
  func.func @transform_12(%arg0: i32) -> (i32, i32, i32) {
    %c0_i32 = arith.constant 0 : i32
    %c0_i32_0 = arith.constant 0 : i32
    %c0_i32_1 = arith.constant 0 : i32
    %c0_i32_2 = arith.constant 0 : i32
    return %c0_i32, %c0_i32_0, %c0_i32_1 : i32, i32, i32
  }
  func.func @transform_13(%arg0: i32) -> (i32, i32, i32) {
    %c0_i32 = arith.constant 0 : i32
    %c0_i32_0 = arith.constant 0 : i32
    %c0_i32_1 = arith.constant 0 : i32
    return %arg0, %c0_i32, %c0_i32_0 : i32, i32, i32
  }
}

</mosaic_0001>

<bundles_post_ra>
// kernel: tpu_custom_call.1
= control target key start
LH: loop header
LB: loop body
LE: loop exit
PB: predicated region body
PF: predicated region fallthrough
CT: control target
= control target key end

     0   :  { %s4469_s0 = inlined_call_operand.hbm [shape: f32[2,8,32], index: 0, kind: input, shape index: {}, may-alias: {0,13}]   ;;  %s4470_s1 = inlined_call_operand.vmem [shape: f32[2,8,1], index: 1, kind: input, shape index: {}]   ;;  %s4471_s2 = inlined_call_operand.hbm [shape: f32[2,1,8], index: 2, kind: input, shape index: {}]   ;;  %s4472_s3 = inlined_call_operand.vmem [shape: f32[2,24,32], index: 3, kind: input, shape index: {}]   ;;  %s4473_s4 = inlined_call_operand.hbm [shape: f32[2,2,64], index: 4, kind: input, shape index: {}]   ;;  %s4474_s5 = inlined_call_operand.vmem [shape: f32[2,32,448], index: 5, kind: input, shape index: {}]   ;;  %s4475_s6 = inlined_call_operand.vmem [shape: f32[2,1,448], index: 6, kind: input, shape index: {}]   ;;  %s4476_s7 = inlined_call_operand.vmem [shape: f32[2,2,32,64], index: 7, kind: input, shape index: {}]   ;;  %s4477_s8 = inlined_call_operand.vmem [shape: f32[2,2,64,32], index: 8, kind: input, shape index: {}]   ;;  %s4478_s9 = inlined_call_operand.hbm [shape: f32[2,2,32,32], index: 9, kind: input, shape index: {}]   ;;  %s4479_s10 = inlined_call_operand.hbm [shape: f32[2,8,8,32], index: 10, kind: input, shape index: {}]   ;;  %s4480_s11 = inlined_call_operand.vmem [shape: f32[32,8], index: 11, kind: input, shape index: {}]   ;;  %s4481_s12 = inlined_call_operand.vmem [shape: f32[3,8,32], index: 12, kind: input, shape index: {}]   ;;  %s4482_s13 = inlined_call_operand.hbm [shape: f32[2,8,32], index: 13, kind: output, shape index: {}, may-alias: {0,13}]  }
   0x1   :  { %4497 = sst [smem:[#allocation24_spill]] %s4473_s4 }
   0x2   :  { %4498 = sst [smem:[#allocation25_spill]] %s4478_s9 }
   0x3   :  { %4499 = sst [smem:[#allocation26_spill]] %s4479_s10 }
   0x4   :  { %4500 = sst [smem:[#allocation27_spill]] %s4480_s11 }
   0x5   :  { %4501 = sst [smem:[#allocation28_spill]] %s4482_s13 }
   0x6   :  { %18 = vsyncpa [#allocation3], 0 }
   0x7   :  { %20 = vsyncpa [#allocation3 + $0x1], 0 }
   0x8   :  { %21 = vsyncpa [#allocation6], 0 }
   0x9   :  { %23 = vsyncpa [#allocation6 + $0x1], 0 }
   0xa   :  { %24 = vsyncpa [#allocation9], 0 }
   0xb   :  { %25 = vsyncpa [#allocation4], 0 }
   0xc   :  { %27 = vsyncpa [#allocation4 + $0x1], 0  ;;  %s3557_s25 = smov 0   ;;  %s3559_s26 = smov 0  }
   0xd   :  { %s3561_s27 = smov 0   ;;  %s3563_s28 = smov 0  }
   0xe LB: > { %4502 = sst [smem:[#allocation17_spill]] %s3455_s25  ;;  %s3581_s15 = sadd.s32 4294967295, %s3467_s28   ;;  %s3467_s28 = sphi %s3563_s28, %s4531_s28   ;;  %s3463_s27 = sphi %s3561_s27, %s4533_s27   ;;  %s3459_s26 = sphi %s3559_s26, %s4535_s26   ;;  %s3455_s25 = sphi %s3557_s25, %s4534_s25  }
   0xf   : > { %4503 = sst [smem:[#allocation18_spill]] %s3463_s27  ;;  %p2886_p0 = scmp.ge.s32.totalorder %s3467_s28, 1 }
  0x10   : > { %4504 = sst [smem:[#allocation19_spill]] %s3467_s28  ;;  %p54_p1 = scmp.eq.s32.totalorder %s3581_s15, 0 }
  0x11   : > { %s4505_s4 = sld [smem:[#allocation24_spill]]  ;;  %p352_p2 = scmp.lt.s32.totalorder %s3467_s28, 3 }
  0x12   : > { %s3469_s17 = smov [#allocation7]   ;;  %s4507_s9 = sld [smem:[#allocation25_spill]] }
  0x13   : > { %p3586_p3 = pnand %p2886_p0, %p352_p2  ;;  %s368_s18 = sshll.u32 %s3469_s17, 4  ;;  %s369_s18 = int_to_ptr.vmem [resolvable:$true] %s368_s18 }
  0x14   : > { %s3470_s23 = smov [#allocation8]   ;;  %s3471_s29 = smov 32  }
  0x15   : > { %p3064_p4 = pneg %p3586_p3  ;;  %s394_s24 = sshll.u32 %s3470_s23, 4  ;;  %s395_s24 = int_to_ptr.vmem [resolvable:$true] %s394_s24 }
  0x16   : > { %s3472_s30 = smov 2   ;;  %s3473_s17 = smov 128  }
  0x17   : > { %s366_s14 = sshll.u32 %s4505_s4, 4  ;;  %p3598_p6 = pnand %p3064_p4, %p54_p1  ;;  %s367_s14 = int_to_ptr.hbm [resolvable:$true] %s366_s14 }
  0x18   : > { %s392_s21 = sshll.u32 %s4507_s9, 4  ;;  %s3474_s19 = smov 8   ;;  %s393_s21 = int_to_ptr.hbm [resolvable:$true] %s392_s21 }
  0x19   : > { %3067 = dma.hbm_to_vmem [thread:$0]  (!%p3598_p6), %s367_s14, 64, %s369_s18, [#allocation6], %s3471_s29, %s3471_s29, %s3472_s30  }
  0x1a   : > { %3070 = dma.hbm_to_vmem [thread:$0]  (!%p3598_p6), %s393_s21, 2048, %s395_s24, [#allocation9], %s3473_s17, %s3473_s17, %s3474_s19  }
  0x1b   : > { %s4509_s10 = sld [smem:[#allocation26_spill]]  ;;  %s3475_s9 = smov [#allocation10]  }
  0x1c   : > { %s408_s13 = sshll.u32 %s3475_s9, 4  ;;  %s2885_s14 = sadd.s32 4294967294, %s3467_s28   ;;  %s409_s13 = int_to_ptr.vmem [resolvable:$true] %s408_s13 }
  0x1d   : > { %s3613_s18 = sadd.s32 1, %s3467_s28   ;;  %s40_s29 = sadd.s32 1, %s3463_s27 }
  0x1e   : > { %4510 = sst [smem:[#allocation20_spill]] %s3613_s18  ;;  %s37_s21 = ssub.s32 %s3467_s28, %s3613_s18 }
  0x1f   : > { %p47_p7 = scmp.ne.s32.totalorder %s3463_s27, %s3459_s26  ;;  %p38_p8 = scmp.eq.s32.totalorder %s37_s21, 0 }
  0x20   : > { %p48_p9 = scmp.eq.s32.totalorder %s3467_s28, 0  ;;  %p53_p10 = scmp.ne.s32.totalorder %s3459_s26, %s3455_s25 }
  0x21   : > { %s406_s23 = sshll.u32 %s4509_s10, 4  ;;  %p339_p11 = scmp.eq.s32.totalorder %s3581_s15, 1  ;;  %s407_s23 = int_to_ptr.hbm [resolvable:$true] %s406_s23 }
  0x22   : > { %3073 = dma.hbm_to_vmem [thread:$0]  (!%p3598_p6), %s407_s23, 2048, %s409_s13, [#allocation9], %s3473_s17, %s3473_s17, %s3474_s19  }
  0x23   : > { %s3625_s4 = scalar_select %p38_p8, %s3463_s27, %s40_s29  }
  0x24   : > { %p3627_p12 = por %p48_p9, %p47_p7  ;;  %p3633_p13 = por %p54_p1, %p53_p10 }
  0x25   : > { %4511 = sst [smem:[#allocation21_spill]] %s3625_s4  ;;  %p3637_p0 = por %p339_p11, %p47_p7 }
  0x26   : > { %p345_p2 = scmp.eq.s32.totalorder %s2885_s14, 1  ;;  %p3088_p4 = scmp.lt.s32.totalorder %s3467_s28, 2 }
  0x27   : > { %s4514_s22 = scalar_select %p3637_p0, 1, 0 }
  0x28   : > { %s3643_s24 = sand.u32 1, %s3463_s27   ;;  %p3645_p6 = por %p345_p2, %p53_p10 }
  0x29   : > { %4515 = sst [smem:[#allocation22_spill]] %s4514_s22  ;;  %s2891_s17 = sshll.u32 %s3643_s24, 3 }
  0x2a   : > { %s4516_s30 = scalar_select %p3645_p6, 1, 0 }
  0x2b   : > { %s2892_s19 = sshll.u32 %s3467_s28, 3  ;;  %s432_s10 = scalar_lea.vmem [#allocation2], %s2891_s17 }
  0x2c   : > { %4517 = sst [smem:[#allocation23_spill]] %s4516_s30  ;;  %s436_s29 = scalar_lea.hbm %s4469_s0, %s2892_s19 }
  0x2d   : > { %s438_s21 = sshll.u32 %s436_s29, 4  ;;  %s440_s4 = sshll.u32 %s432_s10, 4  ;;  %s439_s21 = int_to_ptr.hbm [resolvable:$true] %s438_s21  ;;  %s441_s4 = int_to_ptr.vmem [resolvable:$true] %s440_s4 }
  0x2e   : > { %p3656_p7 = pnand %p3088_p4, %p3627_p12  ;;  %s454_s27 = sand.u32 1, %s3467_s28  }
  0x2f   : > { %s460_s25 = scalar_lea.hbm %s4471_s2, %s3467_s28  ;;  %s429_s22 = scalar_lea.sflag [#allocation3], %s3643_s24 }
  0x30   : > { %s3329_s20 = sshra.s32 %s439_s21, 4  ;;  %p3333_p9 = pneg %p3656_p7  ;;  %s3330_s20 = int_to_ptr.hbm [resolvable:$true] %s3329_s20 }
  0x31   : > { %s3331_s19 = scalar_lea.hbm %s3330_s20, 8  ;;  %s3336_s17 = scalar_lea.hbm %s4469_s0, 16 }
  0x32   : > { %p3332_p8 = scmp.ne.s32.totalorder %s3330_s20, %s3331_s19  ;;  %p3337_p12 = scmp.lt.s32.totalorder %s3330_s20, %s4469_s0 }
  0x33   : > { %p3338_p2 = scmp.lt.s32.totalorder %s3336_s17, %s3331_s19 }
  0x34   : > { %p3334_p10 = pnand %p3333_p9, %p3332_p8 }
  0x35   : > { %p3339_p4 = por %p3338_p2, %p3337_p12 }
  0x36   : > { %p3335_p11 = pneg %p3334_p10 }
  0x38   : > { %p3340_p5 = pnand %p3339_p4, %p3335_p11 }
  0x3a   : > { %3343 = shalt.err (!%p3340_p5)
}
  0x3b   : > { %3077 = dma.hbm_to_vmem [thread:$0]  (!%p3656_p7), %s439_s21, 128, %s441_s4, %s429_s22  }
  0x3c   : > { %s462_s18 = sshll.u32 %s460_s25, 4  ;;  %s457_s30 = scalar_lea.vmem [#allocation5], %s3643_s24  ;;  %s463_s18 = int_to_ptr.hbm [resolvable:$true] %s462_s18 }
  0x3d   : > { %s464_s28 = sshll.u32 %s457_s30, 4  ;;  %s455_s10 = scalar_lea.sflag [#allocation6], %s454_s27  ;;  %s465_s28 = int_to_ptr.vmem [resolvable:$true] %s464_s28 }
  0x3e   : > { %s3359_s9 = sshra.s32 %s463_s18, 4  ;;  %s3366_s17 = scalar_lea.hbm %s4471_s2, 2  ;;  %s3360_s9 = int_to_ptr.hbm [resolvable:$true] %s3359_s9 }
  0x3f   : > { %s3361_s11 = scalar_lea.hbm %s3360_s9, 1  ;;  %p3367_p5 = scmp.lt.s32.totalorder %s3360_s9, %s4471_s2 }
  0x40   : > { %p3362_p8 = scmp.ne.s32.totalorder %s3360_s9, %s3361_s11  ;;  %p3368_p12 = scmp.lt.s32.totalorder %s3366_s17, %s3361_s11 }
  0x42   : > { %p3364_p10 = pnand %p3362_p8, %p3333_p9  ;;  %p3369_p2 = por %p3368_p12, %p3367_p5 }
  0x44   : > { %p3365_p11 = pneg %p3364_p10 }
  0x46   : > { %p3370_p4 = pnand %p3369_p2, %p3365_p11 }
  0x48   : > { %3373 = shalt.err (!%p3370_p4)
}
  0x49   : > { %3080 = dma.hbm_to_vmem [thread:$0]  (!%p3656_p7), %s463_s18, 16, %s465_s28, %s455_s10  }
  0x4a   : > { %473 = sbr.rel (%p3586_p3) target bundleno = 7174 (0x1c06), region = 72  ;;  %s3694_s25 = sand.u32 (!%p3586_p3), 1, %s3459_s26  }
  0x4b   : > { %s4493_s27 = sshll.u32 (!%p3586_p3), %s3694_s25, 3  ;;  %s476_s22 = scalar_lea.sflag (!%p3586_p3), [#allocation3], %s3694_s25 }
  0x4c   : > { %s3700_s11 = scalar_lea.vmem (!%p3586_p3), [#allocation2], %s4493_s27 }
  0x4f   : > { %3434 = dma.done.wait (%p3633_p13), %s476_s22, 128  }
  0x50   : > { %3436 = vsyncadd (%p3633_p13), %s476_s22, 4294967168  ;;  %s485_s28 = sand.u32 1, %s3581_s15   ;;  %s488_s24 = scalar_lea.vmem [#allocation5], %s3694_s25 }
  0x51   : > { %s486_s16 = scalar_lea.sflag [#allocation6], %s485_s28 }
  0x52   : > { %3438 = dma.done.wait (%p3633_p13), %s486_s16, 16  }
  0x53   : > { %3440 = vsyncadd (%p3633_p13), %s486_s16, 4294967280 }
  0x54   : > { %3442 = dma.done.wait (%p54_p1), [#allocation6], 64  }
  0x55   : > { %3444 = vsyncadd (%p54_p1), [#allocation6], 4294967232 }
  0x56   : > { %3446 = dma.done.wait (%p54_p1), [#allocation9], 4096  }
  0x57   : > { %3448 = vsyncadd (%p54_p1), [#allocation9], 4294963200  ;;  %v592_v0 = vld [vmem:[%s4474_s5 + $0x60] sm:$0xff]  ;;  %v593_v1 = vld [vmem:[%s4474_s5 + $0x68] sm:$0xff]  ;;  %s4495_s28 = smov 32   ;;  %vm606_vm0 = vcmask 261120  }
  0x58   : > { %v594_v2 = vld [vmem:[%s4474_s5 + $0x70] sm:$0xff]  ;;  %622 = vmatpush.msra.mxu0 %v592_v0  ;;  %642 = vmatpush.msra.mxu1 %v593_v1  ;;  %v588_v3 = vld [vmem:[%s4474_s5 + $0x40] sm:$0xff]  ;;  %v589_v4 = vld [vmem:[%s4474_s5 + $0x48] sm:$0xff]  ;;  %s3477_s16 = smov 64   ;;  %s3478_s20 = smov 96   ;;  %vm722_vm1 = vcmask 64512  }
  0x59   : > { %v590_v5 = vld [vmem:[%s4474_s5 + $0x50] sm:$0xff]  ;;  %662 = vmatpush.msra.mxu3 %v594_v2  ;;  %v584_v6 = vld [vmem:[%s4474_s5 + $0x20] sm:$0xff]  ;;  %v585_v7 = vld [vmem:[%s4474_s5 + $0x28] sm:$0xff]  ;;  %s3479_s23 = smov 88   ;;  %s3480_s4 = smov 120   ;;  %v3483_v59 = vmov 0  }
  0x5a   : > { %623 = vmatpush.msra.mxu0 %v588_v3  ;;  %643 = vmatpush.msra.mxu1 %v589_v4  ;;  %v586_v8 = vld [vmem:[%s4474_s5 + $0x30] sm:$0xff]  ;;  %v580_v9 = vld [vmem:[%s4474_s5] sm:$0xff]  ;;  %v581_v10 = vld [vmem:[%s4474_s5 + $0x8] sm:$0xff]  ;;  %s3481_s22 = smov 104   ;;  %s3482_s21 = smov 80   ;;  %vm1190_vm12 = vcmask 523264  }
  0x5b   : > { %663 = vmatpush.msra.mxu3 %v590_v5  ;;  %v3754_v11 = vld [vmem:[%s3700_s11] sm:$0xff]  ;;  %v582_v13 = vld [vmem:[%s4474_s5 + $0x10] sm:$0xff]  ;;  %v595_v17 = vld [vmem:[%s4474_s5 + $0x78] sm:$0xff]  ;;  %3143 = vset.pattern.permute.xlu2 %v3483_v59  ;;  %s3485_s18 = smov 112   ;;  %p555_p1 = scmp.lt.s32.totalorder %s3581_s15, 1 }
  0x5c   : > { %v3759_v12 = vld [vmem:[%s4472_s3] sm:$0xff]  ;;  %624 = vmatpush.msra.mxu0 %v584_v6  ;;  %644 = vmatpush.msra.mxu1 %v585_v7  ;;  %v591_v20 = vld [vmem:[%s4474_s5 + $0x58] sm:$0xff]  ;;  %v2900_v21 = vld [vmem:[%s4481_s12 + $0x8] sm:$0xff]  ;;  %s4524_s9 = sld [smem:[#allocation28_spill]]  ;;  %s4526_s17 = sshll.u32 %s3694_s25, 3 }
  0x5d   : > { %v576_v14 = vperm.slane %v3759_v12, 0  ;;  %v578_v15 = vperm.slane %v3759_v12, 1  ;;  %v3769_v16 = vld [vmem:[%s4481_s12] sm:$0xff]  ;;  %664 = vmatpush.msra.mxu3 %v586_v8  ;;  %v587_v22 = vld [vmem:[%s4474_s5 + $0x38] sm:$0xff]  ;;  %v3845_v49 = vld [vmem:[%s4481_s12 + $0x10] sm:$0xff]  ;;  %3144 = vset.pattern.permute.xlu0 %v3483_v59  ;;  %s556_s13 = scalar_select %p555_p1, %s3581_s15, 1 }
  0x5e   : > { %764 = vrot.lane.b32.xlu1 %v3769_v16, %s4495_s28  ;;  %625 = vmatpush.msra.mxu0 %v580_v9  ;;  %v583_v23 = vld [vmem:[%s4474_s5 + $0x18] sm:$0xff]  ;;  %v596_v25 = vld [vmem:[%s4475_s6] sm:$0xf]  ;;  %s554_s14 = scalar_lea.vmem [#allocation11], %s4526_s17 }
  0x5f   : > { %645 = vmatpush.msra.mxu1 %v581_v10  ;;  %v577_v18 = vmul.f32 %v576_v14, %v3754_v11  ;;  %665 = vmatpush.msra.mxu3 %v582_v13  ;;  %v598_v27 = vperm.slane %v596_v25, 0  ;;  %v599_v28 = vperm.slane %v596_v25, 1  ;;  %v600_v36 = vperm.slane %v596_v25, 2  ;;  %v561_v60 = vld [vmem:[%s488_s24] sm:$0x1]  ;;  %s4494_s24 = smov 72  }
  0x60   : > { %890 = vrot.lane.b32.xlu2 %v3769_v16, %s3477_s16  ;;  %v601_v44 = vperm.slane %v596_v25, 3  ;;  %2906 = vmatpush.xpose.msk.msrb.mxu0 %vm606_vm0, %v3845_v49  ;;  %vm562_vm2 = vcmp.eq.f32.partialorder %v561_v60, 0.0  ;;  %s2899_s30 = sshll.u32 %s556_s13, 3  ;;  %s3043_s13 = sshll.u32 %s3581_s15, 3 }
  0x61   : > { %v579_v19 = vadd.f32 %v578_v15, %v577_v18  ;;  %682 = vmatpush.msrb.mxu3 %v595_v17  ;;  %2910 = vmatpush.xpose.msk.msra.mxu2 %vm606_vm0, %v3845_v49  ;;  %v748_v61 = vsel %vm562_vm2, 1, %v3483_v59  ;;  %s558_s19 = scalar_lea.vmem %s4470_s1, %s2899_s30  ;;  %s4521_s30 = sld [smem:[#allocation27_spill]] }
  0x62   : > { %v749_v63 = vperm.slane %v748_v61, 0  ;;  %s2753_s29 = sshll.u32 %s554_s14, 4  ;;  %s2741_s15 = scalar_lea.sflag [#allocation4], %s3694_s25  ;;  %s2754_s29 = int_to_ptr.vmem [resolvable:$true] %s2753_s29 }
  0x63   : > { %2902 = vmatmul.msk.f32.vlgmr.msra.gmra.mxu0 %vm606_vm0, %v579_v19  ;;  %2903 = vmatmul.msk.f32.vlgmr.msra.gmra.mxu1 %vm606_vm0, %v579_v19 }
  0x64   : > { %2904 = vmatmul.msk.f32.vlgmr.msra.gmra.mxu3 %vm606_vm0, %v579_v19  ;;  %vm3869_vm3 = vcmp.eq.s32.totalorder %v749_v63, 1 }
  0x65   : > { %683 = vmatpush.msrb.mxu3 %v591_v20  ;;  %2916 = vmatpush.xpose.msk.msrb.mxu2 %vm606_vm0, %v3845_v49 }
  0x66   : > { %769 = vrot.lane.b32.xlu1 %v2900_v21, %s4495_s28 }
  0x67   : > { %684 = vmatpush.msrb.mxu3 %v587_v22 }
  0x68   : > { %894 = vrot.lane.b32.xlu2 %v2900_v21, %s3477_s16 }
  0x69   : > { %685 = vmatpush.msrb.mxu3 %v583_v23 }
  0x6c   : > { %2905 = vmatmul.msk.f32.vlgmr.msrb.gmra.mxu3 %vm606_vm0, %v579_v19 }
  0x6e   : > { %992 = vrot.lane.b32.xlu1 %v3769_v16, %s3478_s20 }
  0x70   : > { %996 = vrot.lane.b32.xlu2 %v2900_v21, %s3478_s20 }
  0xba   : > { %v3805_v26 = vpop.permute.xlu2 %890 }
  0xc2   : > { %v3817_v37 = vpop.permute.xlu2 %894 }
  0xca   : > { %v3879_v14 = vpop.permute.xlu2 %996 }
  0xd0   : > { %v3800_v24 = vpop.permute.xlu1 %764 }
  0xd8   : > { %v3811_v33 = vpop.permute.xlu1 %769 }
  0xe0   : > { %v627_v29 = vpop.f32.mrf.mxu0  ;;  %v647_v30 = vpop.f32.mrf.mxu1 }
  0xe1   : > { %v3807_v31 = vadd.f32 %v627_v29, %v598_v27  ;;  %v3809_v32 = vadd.f32 %v647_v30, %v599_v28  ;;  %v3854_v51 = vpop.permute.xlu1 %992 }
  0xe3   : > { %v767_v34 = vmul.f32 %v3800_v24, %v3807_v31  ;;  %v772_v35 = vmul.f32 %v3811_v33, %v3809_v32  ;;  %v893_v40 = vmul.f32 %v3805_v26, %v3807_v31  ;;  %v897_v42 = vmul.f32 %v3817_v37, %v3809_v32 }
  0xe4   : > { %v690_v47 = vmul.f32 %v3807_v31, %v3769_v16  ;;  %v691_v48 = vmul.f32 %v2900_v21, %v3809_v32  ;;  %v995_v15 = vmul.f32 %v3854_v51, %v3807_v31  ;;  %v999_v16 = vmul.f32 %v3879_v14, %v3809_v32 }
  0xe5   : > { %v773_v38 = vadd.f32 %v772_v35, %v767_v34  ;;  %v898_v43 = vadd.f32 %v897_v42, %v893_v40 }
  0xe6   : > { %v692_v50 = vadd.f32 %v691_v48, %v690_v47  ;;  %v1000_v17 = vadd.f32 %v999_v16, %v995_v15 }
  0xe7   : > { %v667_v39 = vpop.f32.mrf.mxu3  ;;  %775 = vrot.lane.b32.xlu1 %v773_v38, %s3478_s20 }
  0xe8   : > { %v3821_v41 = vadd.f32 %v667_v39, %v600_v36  ;;  %2907 = vmatmul.msk.f32.vlgmr.msrb.gmra.mxu0 %vm606_vm0, %v692_v50 }
  0xef   : > { %v687_v45 = vpop.f32.mrf.mxu3  ;;  %900 = vrot.lane.b32.xlu1 %v898_v43, %s3477_s16 }
  0xf0   : > { %v3826_v46 = vadd.f32 %v687_v45, %v601_v44 }
  0xf2   : > { %720 = vrot.lane.b32.xlu0 %v3826_v46, %s3478_s20 }
  0xf7   : > { %801 = vrot.lane.b32.xlu1 %v3826_v46, %s3479_s23 }
  0xff   : > { %799 = vrot.lane.b32.xlu1 %v3826_v46, %s3480_s4 }
 0x107   : > { %1026 = vrot.lane.b32.xlu1 %v3826_v46, %s3481_s22 }
 0x10f   : > { %926 = vrot.lane.b32.xlu1 %v3826_v46, %s3482_s21 }
 0x159   : > { %v776_v52 = vpop.permute.xlu1 %775 }
 0x15a   : > { %2911 = vmatmul.msk.f32.vlgmr.msra.gmra.mxu2 %vm606_vm0, %v776_v52 }
 0x161   : > { %v901_v53 = vpop.permute.xlu1 %900 }
 0x162   : > { %2917 = vmatmul.msk.f32.vlgmr.msrb.gmra.mxu2 %vm606_vm0, %v901_v53 }
 0x164   : > { %v721_v54 = vpop.permute.xlu0 %720 }
 0x165   : > { %2908 = vmatpush.xpose.msk.msrb.mxu1 %vm722_vm1, %v721_v54  ;;  %v716_v62 = vpop.f32.mrf.mxu0 }
 0x168   : > { %2909 = vmatmul.msk.f32.vlgmr.msrb.gmra.mxu1 %vm722_vm1, %v3826_v46 }
 0x169   : > { %885 = vmatpush.msra.mxu1 %v3821_v41  ;;  %v802_v55 = vpop.permute.xlu1 %801 }
 0x16a   : > { %2912 = vmatpush.xpose.msk.msra.mxu3 %vm722_vm1, %v802_v55 }
 0x16b   : > { %2921 = vmatpush.xpose.msk.msrb.mxu1 %vm606_vm0, %v3845_v49 }
 0x171   : > { %v800_v56 = vpop.permute.xlu1 %799 }
 0x172   : > { %2913 = vmatmul.msk.f32.vlgmr.msra.gmra.mxu3 %vm722_vm1, %v800_v56 }
 0x179   : > { %v1027_v57 = vpop.permute.xlu1 %1026 }
 0x181   : > { %v927_v58 = vpop.permute.xlu1 %926 }
 0x182   : > { %2918 = vmatpush.xpose.msk.msrb.mxu3 %vm722_vm1, %v927_v58 }
 0x1dd   : > { %v796_v6 = vpop.f32.mrf.mxu2 }
 0x1e5   : > { %v744_v0 = vpop.f32.mrf.mxu1  ;;  %v921_v38 = vpop.f32.mrf.mxu2 }
 0x1e6   : > { %v745_v1 = vadd.f32 %v744_v0, %v716_v62 }
 0x1e8   : > { %v747_v3 = vmul.f32 0.35355338, %v745_v1 }
 0x1ea   : > { %v751_v4 = vsel %vm3869_vm3, -1e+09, %v747_v3 }
 0x1eb   : > { %v752_v5 = vsel %vm722_vm1, %v751_v4, -inf }
 0x1ec   : > { %753 = vmax.xlane.f32.xlu0 %v752_v5 }
 0x1f5   : > { %v824_v7 = vpop.f32.mrf.mxu3 }
 0x1f6   : > { %v825_v8 = vadd.f32 %v824_v7, %v796_v6 }
 0x1f8   : > { %v827_v9 = vmul.f32 0.35355338, %v825_v8 }
 0x1fa   : > { %v828_v10 = vsel %vm3869_vm3, -1e+09, %v827_v9 }
 0x1fb   : > { %v829_v13 = vsel %vm722_vm1, %v828_v10, -inf }
 0x1fc   : > { %830 = vmax.xlane.f32.xlu1 %v829_v13 }
 0x200   : > { %1028 = vrot.lane.b32.xlu0 %v3826_v46, %s4494_s24 }
 0x208   : > { %1002 = vrot.lane.b32.xlu0 %v1000_v17, %s4495_s28 }
 0x25f   : > { %v754_v18 = vpop.xlane.xlu0 %753 }
 0x260   : > { %v755_v19 = vsub.f32 %v751_v4, %v754_v18 }
 0x262   : > { %v756_v20 = vmul.f32 1.442695, %v755_v19 }
 0x264   : > { %3145 = vpow2.f32 %v756_v20 }
 0x26a   : > { %v3146_v21 = vpop.eup %3145 }
 0x26b   : > { %v758_v22 = vsel %vm722_vm1, %v3146_v21, 0.0 }
 0x26c   : > { %759 = vadd.xlane.f32.xlu2 %v758_v22 }
 0x26f   : > { %v831_v23 = vpop.xlane.xlu1 %830 }
 0x270   : > { %v832_v25 = vsub.f32 %v828_v10, %v831_v23 }
 0x272   : > { %v1029_v27 = vpop.permute.xlu0 %1028  ;;  %v833_v28 = vmul.f32 1.442695, %v832_v25 }
 0x273   : > { %2923 = vmatpush.xpose.msk.msra.mxu2 %vm722_vm1, %v1029_v27  ;;  %v3486_v27 = vmov 32.0  }
 0x274   : > { %3147 = vpow2.f32 %v833_v28 }
 0x276   : > { %2924 = vmatmul.msk.f32.vlgmr.msra.gmra.mxu2 %vm722_vm1, %v1027_v57 }
 0x27a   : > { %v3148_v29 = vpop.eup %3147  ;;  %v1003_v36 = vpop.permute.xlu0 %1002 }
 0x27b   : > { %v835_v30 = vsel %vm722_vm1, %v3148_v29, 0.0 }
 0x27c   : > { %836 = vadd.xlane.f32.xlu1 %v835_v30 }
 0x284   : > { %924 = vrot.lane.b32.xlu2 %v3826_v46, %s3485_s18 }
 0x2df   : > { %v760_v31 = vpop.xlane.xlu2 %759 }
 0x2e0   : > { %3149 = vrcp.f32 %v760_v31 }
 0x2e6   : > { %v3150_v32 = vpop.eup %3149 }
 0x2e7   : > { %v762_v34 = vmul.f32 %v3150_v32, %v3146_v21  ;;  %v925_v35 = vpop.permute.xlu2 %924  ;;  %v1095_v21 = vperm.slane %v3759_v12, 2 }
 0x2e8   : > { %2919 = vmatmul.msk.f32.vlgmr.msrb.gmra.mxu3 %vm722_vm1, %v925_v35 }
 0x2e9   : > { %2915 = vmatmul.msk.f32.vlgmr.msra.gmra.mxu1 %vm722_vm1, %v762_v34 }
 0x2ef   : > { %v837_v0 = vpop.xlane.xlu1 %836 }
 0x2f1   : > { %2922 = vmatmul.msk.f32.vlgmr.msrb.gmra.mxu1 %vm606_vm0, %v1003_v36 }
 0x2f9   : > { %v1051_v43 = vpop.f32.mrf.mxu2 }
 0x366   : > { %v887_v39 = vpop.f32.mrf.mxu1 }
 0x36b   : > { %v949_v40 = vpop.f32.mrf.mxu3 }
 0x36c   : > { %v950_v42 = vadd.f32 %v949_v40, %v921_v38  ;;  %v1133_v40 = vld [vmem:[%s4476_s7 + $0x18] sm:$0xff] }
 0x36e   : > { %v952_v44 = vmul.f32 0.35355338, %v950_v42  ;;  %v1023_v45 = vpop.f32.mrf.mxu1  ;;  %v1132_v42 = vld [vmem:[%s4476_s7 + $0x10] sm:$0xff] }
 0x36f   : > { %v1052_v46 = vadd.f32 %v1051_v43, %v1023_v45  ;;  %v1131_v43 = vld [vmem:[%s4476_s7 + $0x8] sm:$0xff] }
 0x370   : > { %v953_v47 = vsel %vm3869_vm3, -1e+09, %v952_v44  ;;  %v1130_v44 = vld [vmem:[%s4476_s7] sm:$0xff] }
 0x371   : > { %v1054_v48 = vmul.f32 0.35355338, %v1052_v46  ;;  %v954_v50 = vsel %vm722_vm1, %v953_v47, -inf }
 0x372   : > { %955 = vmax.xlane.f32.xlu2 %v954_v50 }
 0x373   : > { %v1055_v52 = vsel %vm3869_vm3, -1e+09, %v1054_v48 }
 0x374   : > { %v1056_v53 = vsel %vm722_vm1, %v1055_v52, -inf }
 0x375   : > { %1057 = vmax.xlane.f32.xlu0 %v1056_v53 }
 0x38a   : > { %965 = vrot.lane.b32.xlu2 %v3821_v41, %s3477_s16 }
 0x3e5   : > { %v956_v54 = vpop.xlane.xlu2 %955 }
 0x3e6   : > { %v957_v55 = vsub.f32 %v953_v47, %v956_v54 }
 0x3e8   : > { %v958_v56 = vmul.f32 1.442695, %v957_v55  ;;  %v1058_v57 = vpop.xlane.xlu0 %1057 }
 0x3e9   : > { %v1059_v58 = vsub.f32 %v1055_v52, %v1058_v57 }
 0x3ea   : > { %3151 = vpow2.f32 %v958_v56  ;;  %v1126_v56 = vperm.slane %v3759_v12, 3 }
 0x3eb   : > { %v1060_v59 = vmul.f32 1.442695, %v1059_v58  ;;  %v1128_v58 = vperm.slane %v3759_v12, 4 }
 0x3ed   : > { %3153 = vpow2.f32 %v1060_v59  ;;  %v966_v8 = vpop.permute.xlu2 %965 }
 0x3ee   : > { %3155 = vrcp.f32 %v837_v0 }
 0x3f0   : > { %v3152_v60 = vpop.eup %3151 }
 0x3f1   : > { %v960_v61 = vsel %vm722_vm1, %v3152_v60, 0.0 }
 0x3f2   : > { %961 = vadd.xlane.f32.xlu1 %v960_v61  ;;  %v1142_v61 = vperm.slane %v3759_v12, 5 }
 0x3f3   : > { %v3154_v62 = vpop.eup %3153 }
 0x3f4   : > { %v1062_v63 = vsel %vm722_vm1, %v3154_v62, 0.0  ;;  %v3156_v4 = vpop.eup %3155 }
 0x3f5   : > { %1063 = vadd.xlane.f32.xlu0 %v1062_v63  ;;  %v839_v6 = vmul.f32 %v3156_v4, %v3148_v29  ;;  %v1144_v63 = vperm.slane %v3759_v12, 6  ;;  %v1140_v4 = vld [vmem:[%s4477_s8 + $0x30] sm:$0xff] }
 0x409   : > { %841 = vrot.lane.b32.xlu0 %v3821_v41, %s3478_s20 }
 0x40b   : > { %1067 = vrot.lane.b32.xlu1 %v3821_v41, %s4495_s28 }
 0x465   : > { %v962_v3 = vpop.xlane.xlu1 %961 }
 0x468   : > { %v1064_v1 = vpop.xlane.xlu0 %1063 }
 0x469   : > { %3157 = vrcp.f32 %v1064_v1 }
 0x46a   : > { %3159 = vrcp.f32 %v962_v3  ;;  %v1141_v3 = vld [vmem:[%s4477_s8 + $0x38] sm:$0xff] }
 0x46b   : > { %3161 = vrcp.f32 %v3486_v27  ;;  %1202 = vmatpush.msra.mxu1 %v1141_v3 }
 0x46d   : > { %1203 = vmatpush.msra.mxu1 %v1140_v4 }
 0x46f   : > { %v3158_v5 = vpop.eup %3157 }
 0x470   : > { %v1066_v9 = vmul.f32 %v3158_v5, %v3154_v62  ;;  %v3160_v41 = vpop.eup %3159  ;;  %v1139_v5 = vld [vmem:[%s4477_s8 + $0x28] sm:$0xff] }
 0x471   : > { %v964_v13 = vmul.f32 %v3160_v41, %v3152_v60  ;;  %v3162_v28 = vpop.eup %3161  ;;  %1204 = vmatpush.msra.mxu1 %v1139_v5 }
 0x472   : > { %v1101_v29 = vmul.f32 32.0, %v3162_v28  ;;  %vm1105_vm4 = vweird.f32 %v3162_v28 }
 0x474   : > { %v1102_v30 = vsub.f32 1.0, %v1101_v29 }
 0x476   : > { %v1103_v31 = vmul.f32 %v3162_v28, %v1102_v30 }
 0x478   : > { %v1104_v32 = vadd.f32 %v3162_v28, %v1103_v31 }
 0x47a   : > { %v3917_v34 = vsel %vm1105_vm4, %v3162_v28, %v1104_v32 }
 0x47b   : > { %v842_v7 = vpop.permute.xlu0 %841 }
 0x47c   : > { %862 = vmatpush.msra.mxu0 %v842_v7  ;;  %v1138_v7 = vld [vmem:[%s4477_s8 + $0x20] sm:$0xff] }
 0x47d   : > { %v1068_v10 = vpop.permute.xlu1 %1067  ;;  %2914 = vmatmul.msk.f32.vlgmr.msra.gmra.mxu0 %vm722_vm1, %v839_v6  ;;  %v3948_v6 = vld [vmem:[#allocation7] sm:$0x3]  ;;  %1205 = vmatpush.msra.mxu1 %v1138_v7 }
 0x47e   : > { %986 = vmatpush.msrb.mxu0 %v966_v8  ;;  %1088 = vmatpush.msra.mxu3 %v1068_v10  ;;  %v1137_v8 = vld [vmem:[%s4477_s8 + $0x18] sm:$0xff]  ;;  %v1136_v10 = vld [vmem:[%s4477_s8 + $0x10] sm:$0xff] }
 0x47f   : > { %2925 = vmatmul.msk.f32.vlgmr.msra.gmra.mxu3 %vm722_vm1, %v1066_v9  ;;  %v1146_v9 = vperm.slane %v3948_v6, 0  ;;  %1206 = vmatpush.msra.mxu1 %v1137_v8 }
 0x480   : > { %1162 = vmatpush.msra.mxu0 %v1133_v40 }
 0x481   : > { %1207 = vmatpush.msra.mxu1 %v1136_v10 }
 0x482   : > { %1163 = vmatpush.msra.mxu0 %v1132_v42 }
 0x484   : > { %1164 = vmatpush.msra.mxu0 %v1131_v43 }
 0x485   : > { %2920 = vmatmul.msk.f32.vlgmr.msrb.gmra.mxu0 %vm722_vm1, %v964_v13  ;;  %v1135_v13 = vld [vmem:[%s4477_s8 + $0x8] sm:$0xff] }
 0x486   : > { %1165 = vmatpush.msra.mxu0 %v1130_v44  ;;  %1208 = vmatpush.msra.mxu1 %v1135_v13 }
 0x4fa   : > { %v864_v15 = vpop.f32.mrf.mxu0 }
 0x4fb   : > { %v888_v16 = vadd.f32 %v887_v39, %v864_v15 }
 0x502   : > { %v988_v17 = vpop.f32.mrf.mxu0  ;;  %v1090_v19 = vpop.f32.mrf.mxu3 }
 0x503   : > { %v991_v18 = vadd.f32 %v988_v17, %v888_v16  ;;  %v1134_v16 = vld [vmem:[%s4477_s8] sm:$0xff] }
 0x504   : > { %1209 = vmatpush.msra.mxu1 %v1134_v16 }
 0x505   : > { %v1093_v20 = vadd.f32 %v1090_v19, %v991_v18 }
 0x507   : > { %v1094_v22 = vadd.f32 %v1093_v20, %v3754_v11 }
 0x509   : > { %v1096_v23 = vadd.f32 %v1095_v21, %v1094_v22 }
 0x50b   : > { %v1097_v25 = vsel %vm606_vm0, %v1096_v23, 0.0 }
 0x50c   : > { %1098 = vadd.xlane.f32.xlu0 %v1097_v25 }
 0x57f   : > { %v1099_v35 = vpop.xlane.xlu0 %1098 }
 0x580   : > { %v1107_v36 = vmul.f32 %v3917_v34, %v1099_v35 }
 0x582   : > { %v1108_v38 = vsub.f32 %v1096_v23, %v1107_v36  ;;  %v1215_v36 = vperm.slane %v3759_v12, 7  ;;  %v1248_v12 = vld [vmem:[#allocation8 + $0x8] sm:$0xff] }
 0x584   : > { %v1109_v39 = vmul.f32 %v1108_v38, %v1108_v38 }
 0x586   : > { %v1110_v11 = vsel %vm606_vm0, %v1109_v39, 0.0 }
 0x587   : > { %1111 = vadd.xlane.f32.xlu2 %v1110_v11 }
 0x5fa   : > { %v1112_v45 = vpop.xlane.xlu2 %1111 }
 0x5fb   : > { %v1113_v46 = vmul.f32 %v1112_v45, %v3917_v34 }
 0x5fd   : > { %v1114_v47 = vadd.f32 1e-05, %v1113_v46 }
 0x5ff   : > { %3163 = vrsqrt.f32 %v1114_v47  ;;  %vm1121_vm6 = vweird.f32 %v1114_v47 }
 0x605   : > { %v3164_v48 = vpop.eup %3163 }
 0x606   : > { %v1116_v50 = vmul.f32 %v3164_v48, %v1114_v47  ;;  %vm1122_vm5 = vweird.f32 %v3164_v48  ;;  %v1250_v47 = vld [vmem:[#allocation8 + $0x18] sm:$0xff] }
 0x607   : > { %vm1123_vm7 = vmor %vm1121_vm6, %vm1122_vm5  ;;  %1267 = vmatpush.msrb.mxu2 %v1250_v47  ;;  %v1311_v47 = vld [vmem:[#allocation10 + $0x10] sm:$0xff] }
 0x608   : > { %v1117_v52 = vmul.f32 %v3164_v48, %v1116_v50  ;;  %v1247_v50 = vld [vmem:[#allocation8] sm:$0xff] }
 0x60a   : > { %v1118_v53 = vmul.f32 0.5, %v1117_v52 }
 0x60c   : > { %v1119_v54 = vsub.f32 1.5, %v1118_v53 }
 0x60e   : > { %v1120_v55 = vmul.f32 %v3164_v48, %v1119_v54  ;;  %v560_v54 = vld [vmem:[%s558_s19] sm:$0xff]  ;;  %s2751_s19 = scalar_lea.hbm %s4524_s9, %s3043_s13 }
 0x60f   : > { %1297 = vperm.xlu2 %3143, %v560_v54   ;;  %s2755_s28 = sshll.u32 %s2751_s19, 4  ;;  %s2756_s28 = int_to_ptr.hbm [resolvable:$true] %s2755_s28 }
 0x610   : > { %v1124_v57 = vsel %vm1123_vm7, %v3164_v48, %v1120_v55  ;;  %v1249_v48 = vld [vmem:[#allocation8 + $0x10] sm:$0xff] }
 0x611   : > { %v1125_v59 = vmul.f32 %v1124_v57, %v1108_v38  ;;  %1268 = vmatpush.msrb.mxu2 %v1249_v48 }
 0x613   : > { %v1127_v60 = vmul.f32 %v1126_v56, %v1125_v59  ;;  %1269 = vmatpush.msrb.mxu2 %v1248_v12 }
 0x615   : > { %v1129_v62 = vadd.f32 %v1128_v58, %v1127_v60  ;;  %1270 = vmatpush.msrb.mxu2 %v1247_v50  ;;  %v3980_v60 = vld [vmem:[%s4472_s3 + $0x8] sm:$0xff] }
 0x616   : > { %v1243_v5 = vperm.slane %v3980_v60, 2  ;;  %v1245_v8 = vperm.slane %v3980_v60, 3 }
 0x617   : > { %v1143_v0 = vmul.f32 %v1142_v61, %v1129_v62 }
 0x619   : > { %v1145_v1 = vadd.f32 %v1144_v63, %v1143_v0  ;;  %v1239_v63 = vperm.slane %v3980_v60, 0 }
 0x61b   : > { %2926 = vmatmul.msk.f32.vlgmr.msra.gmra.mxu0 %vm606_vm0, %v1145_v1  ;;  %v1241_v1 = vperm.slane %v3980_v60, 1 }
 0x698   : > { %v1167_v41 = vpop.f32.mrf.mxu0 }
 0x699   : > { %v1168_v15 = vadd.f32 %v1167_v41, %v1146_v9  ;;  %v1251_v41 = vperm.slane %v3980_v60, 4 }
 0x69b   : > { %v1170_v17 = vsub.f32 0.0, %v1168_v15 }
 0x69d   : > { %v1171_v18 = vmul.f32 1.442695, %v1170_v17 }
 0x69f   : > { %3165 = vpow2.f32 %v1171_v18 }
 0x6a5   : > { %v3166_v19 = vpop.eup %3165 }
 0x6a6   : > { %v1173_v20 = vadd.f32 1.0, %v3166_v19 }
 0x6a8   : > { %3167 = vrcp.f32 %v1173_v20  ;;  %v1185_v25 = vand.u32 2147483648, %v1173_v20  ;;  %v1183_v28 = vand.u32 2147483647, %v1173_v20  ;;  %vm1179_vm9 = vweird.f32 %v1173_v20 }
 0x6aa   : > { %v1186_v30 = vor.u32 1.1754944e-38, %v1185_v25  ;;  %vm1184_vm11 = vcmp.eq.f32.partialorder %v1183_v28, 8.507059e+37  ;;  %v4010_v25 = vld [vmem:[%s4521_s30 + $0x8] sm:$0xff]  ;;  %v4016_v28 = vld [vmem:[%s4521_s30] sm:$0xff] }
 0x6ae   : > { %v3168_v21 = vpop.eup %3167 }
 0x6af   : > { %v1175_v22 = vmul.f32 %v3168_v21, %v1173_v20  ;;  %vm1180_vm8 = vweird.f32 %v3168_v21  ;;  %v3994_v20 = vld [vmem:[%s4521_s30 + $0x18] sm:$0xff] }
 0x6b0   : > { %vm1181_vm10 = vmor %vm1179_vm9, %vm1180_vm8  ;;  %1358 = vmatpush.msrb.mxu3 %v3994_v20  ;;  %1389 = vmatpush.msrb.mxu0 %v3994_v20 }
 0x6b1   : > { %v1176_v23 = vsub.f32 1.0, %v1175_v22  ;;  %v4001_v22 = vld [vmem:[%s4521_s30 + $0x10] sm:$0xff]  ;;  %2931 = vmatpush.xpose.msk.msra.mxu2 %vm722_vm1, %v3994_v20 }
 0x6b2   : > { %1359 = vmatpush.msrb.mxu3 %v4001_v22  ;;  %1390 = vmatpush.msrb.mxu0 %v4001_v22 }
 0x6b3   : > { %v1177_v27 = vmul.f32 %v3168_v21, %v1176_v23 }
 0x6b4   : > { %1360 = vmatpush.msrb.mxu3 %v4010_v25  ;;  %1391 = vmatpush.msrb.mxu0 %v4010_v25 }
 0x6b5   : > { %v1178_v29 = vadd.f32 %v3168_v21, %v1177_v27  ;;  %2932 = vmatpush.xpose.msk.msra.mxu2 %vm722_vm1, %v4001_v22 }
 0x6b6   : > { %1361 = vmatpush.msrb.mxu3 %v4016_v28  ;;  %1392 = vmatpush.msrb.mxu0 %v4016_v28 }
 0x6b7   : > { %v1182_v31 = vsel %vm1181_vm10, %v3168_v21, %v1178_v29 }
 0x6b8   : > { %v1187_v32 = vsel %vm1184_vm11, %v1186_v30, %v1182_v31  ;;  %2936 = vmatpush.xpose.msk.msra.mxu3 %vm722_vm1, %v3994_v20 }
 0x6b9   : > { %v1189_v35 = vmul.f32 %v1187_v32, %v1168_v15  ;;  %2933 = vmatpush.xpose.msk.msra.mxu2 %vm722_vm1, %v4010_v25 }
 0x6bb   : > { %2927 = vmatmul.msk.f32.vlgmr.msra.gmra.mxu1 %vm1190_vm12, %v1189_v35 }
 0x6bc   : > { %2937 = vmatpush.xpose.msk.msra.mxu3 %vm722_vm1, %v4001_v22 }
 0x6bd   : > { %2934 = vmatpush.xpose.msk.msra.mxu2 %vm722_vm1, %v4016_v28 }
 0x6c0   : > { %2938 = vmatpush.xpose.msk.msra.mxu3 %vm722_vm1, %v4010_v25 }
 0x6c4   : > { %2939 = vmatpush.xpose.msk.msra.mxu3 %vm722_vm1, %v4016_v28 }
 0x738   : > { %v1211_v38 = vpop.f32.mrf.mxu1 }
 0x739   : > { %v1214_v39 = vadd.f32 %v1211_v38, %v1129_v62 }
 0x73b   : > { %v1216_v11 = vadd.f32 %v1215_v36, %v1214_v39  ;;  %v4027_v39 = vpop.permute.xlu2 %1297 }
 0x73d   : > { %v1217_v40 = vsel %vm606_vm0, %v1216_v11, 0.0 }
 0x73e   : > { %1218 = vadd.xlane.f32.xlu1 %v1217_v40 }
 0x7b1   : > { %v1219_v42 = vpop.xlane.xlu1 %1218 }
 0x7b2   : > { %v1220_v43 = vmul.f32 %v1219_v42, %v3917_v34  ;;  %v1301_v42 = vld [vmem:[#allocation10] sm:$0xff] }
 0x7b4   : > { %v1221_v44 = vsub.f32 %v1216_v11, %v1220_v43  ;;  %v1306_v43 = vld [vmem:[#allocation10 + $0x8] sm:$0xff] }
 0x7b6   : > { %v1222_v45 = vmul.f32 %v1221_v44, %v1221_v44 }
 0x7b8   : > { %v1223_v46 = vsel %vm606_vm0, %v1222_v45, 0.0 }
 0x7b9   : > { %1224 = vadd.xlane.f32.xlu0 %v1223_v46 }
 0x82c   : > { %v1225_v52 = vpop.xlane.xlu0 %1224 }
 0x82d   : > { %v1226_v53 = vmul.f32 %v1225_v52, %v3917_v34  ;;  %v1316_v52 = vld [vmem:[#allocation10 + $0x18] sm:$0xff] }
 0x82f   : > { %v1227_v55 = vadd.f32 1e-05, %v1226_v53 }
 0x831   : > { %3169 = vrsqrt.f32 %v1227_v55  ;;  %vm1234_vm14 = vweird.f32 %v1227_v55 }
 0x837   : > { %v3170_v56 = vpop.eup %3169 }
 0x838   : > { %v1229_v57 = vmul.f32 %v3170_v56, %v1227_v55  ;;  %vm1235_vm13 = vweird.f32 %v3170_v56 }
 0x839   : > { %vm1236_vm15 = vmor %vm1234_vm14, %vm1235_vm13 }
 0x83a   : > { %v1230_v58 = vmul.f32 %v3170_v56, %v1229_v57 }
 0x83c   : > { %v1231_v59 = vmul.f32 0.5, %v1230_v58 }
 0x83e   : > { %v1232_v61 = vsub.f32 1.5, %v1231_v59 }
 0x840   : > { %v1233_v62 = vmul.f32 %v3170_v56, %v1232_v61  ;;  %v1326_v61 = vld [vmem:[#allocation10 + $0x28] sm:$0xff] }
 0x842   : > { %v1237_v0 = vsel %vm1236_vm15, %v3170_v56, %v1233_v62  ;;  %v1321_v56 = vld [vmem:[#allocation10 + $0x20] sm:$0xff] }
 0x843   : > { %v1238_v3 = vmul.f32 %v1237_v0, %v1221_v44 }
 0x845   : > { %v1240_v4 = vmul.f32 %v1239_v63, %v1238_v3 }
 0x847   : > { %v3985_v7 = vadd.f32 %v1241_v1, %v1240_v4  ;;  %v1331_v1 = vld [vmem:[#allocation10 + $0x30] sm:$0xff] }
 0x849   : > { %v1244_v9 = vmul.f32 %v1243_v5, %v3985_v7 }
 0x84b   : > { %v1246_v10 = vadd.f32 %v1245_v8, %v1244_v9  ;;  %v1336_v8 = vld [vmem:[#allocation10 + $0x38] sm:$0xff] }
 0x84d   : > { %2928 = vmatmul.msk.f32.vlgmr.msrb.gmra.mxu2 %vm606_vm0, %v1246_v10 }
 0x8d0   : > { %v1272_v13 = vpop.f32.mrf.mxu2 }
 0x8d1   : > { %v1273_v15 = vadd.f32 %v1272_v13, %v1251_v41  ;;  %v1340_v41 = vperm.slane %v3980_v60, 5 }
 0x8d3   : > { %v1275_v16 = vsub.f32 0.0, %v1273_v15 }
 0x8d5   : > { %v1276_v17 = vmul.f32 1.442695, %v1275_v16 }
 0x8d7   : > { %3171 = vpow2.f32 %v1276_v17 }
 0x8dd   : > { %v3172_v18 = vpop.eup %3171 }
 0x8de   : > { %v1278_v19 = vadd.f32 1.0, %v3172_v18 }
 0x8e0   : > { %3173 = vrcp.f32 %v1278_v19  ;;  %v1290_v29 = vand.u32 2147483648, %v1278_v19  ;;  %v1288_v31 = vand.u32 2147483647, %v1278_v19  ;;  %vm1284_vm4 = vweird.f32 %v1278_v19 }
 0x8e2   : > { %v1291_v35 = vor.u32 1.1754944e-38, %v1290_v29  ;;  %vm1289_vm6 = vcmp.eq.f32.partialorder %v1288_v31, 8.507059e+37 }
 0x8e6   : > { %v3174_v21 = vpop.eup %3173 }
 0x8e7   : > { %v1280_v23 = vmul.f32 %v3174_v21, %v1278_v19  ;;  %vm1285_vm2 = vweird.f32 %v3174_v21 }
 0x8e8   : > { %vm1286_vm5 = vmor %vm1284_vm4, %vm1285_vm2 }
 0x8e9   : > { %v1281_v27 = vsub.f32 1.0, %v1280_v23 }
 0x8eb   : > { %v1282_v30 = vmul.f32 %v3174_v21, %v1281_v27 }
 0x8ed   : > { %v1283_v32 = vadd.f32 %v3174_v21, %v1282_v30 }
 0x8ef   : > { %v1287_v36 = vsel %vm1286_vm5, %v3174_v21, %v1283_v32 }
 0x8f0   : > { %v1292_v38 = vsel %vm1289_vm6, %v1291_v35, %v1287_v36 }
 0x8f1   : > { %v1294_v11 = vmul.f32 %v1292_v38, %v1273_v15 }
 0x8f3   : > { %v1300_v40 = vmul.f32 %v4027_v39, %v1294_v11 }
 0x8f5   : > { %v1302_v44 = vperm.slane %v1300_v40, 0  ;;  %v1307_v45 = vperm.slane %v1300_v40, 1  ;;  %v1312_v46 = vperm.slane %v1300_v40, 2  ;;  %v1317_v50 = vperm.slane %v1300_v40, 3 }
 0x8f6   : > { %v1322_v55 = vperm.slane %v1300_v40, 4  ;;  %v1327_v59 = vperm.slane %v1300_v40, 5  ;;  %v1332_v0 = vperm.slane %v1300_v40, 6  ;;  %v1337_v5 = vperm.slane %v1300_v40, 7 }
 0x8f7   : > { %v1303_v48 = vmul.f32 %v1302_v44, %v1301_v42  ;;  %v1308_v12 = vmul.f32 %v1307_v45, %v1306_v43  ;;  %v1313_v54 = vmul.f32 %v1312_v46, %v1311_v47  ;;  %v1318_v58 = vmul.f32 %v1317_v50, %v1316_v52 }
 0x8f8   : > { %v1323_v63 = vmul.f32 %v1322_v55, %v1321_v56  ;;  %v1328_v4 = vmul.f32 %v1327_v59, %v1326_v61  ;;  %v1333_v10 = vmul.f32 %v1332_v0, %v1331_v1  ;;  %v1338_v15 = vmul.f32 %v1337_v5, %v1336_v8  ;;  %v1508_v8 = vld [vmem:[#allocation8 + $0x30] sm:$0xff] }
 0x8f9   : > { %v1309_v53 = vadd.f32 %v1308_v12, %v1303_v48  ;;  %v1481_v1 = vperm.slane %v3980_v60, 6  ;;  %v1483_v5 = vperm.slane %v3980_v60, 7 }
 0x8fb   : > { %v1314_v57 = vadd.f32 %v1313_v54, %v1309_v53 }
 0x8fd   : > { %v1319_v62 = vadd.f32 %v1318_v58, %v1314_v57 }
 0x8ff   : > { %v1324_v3 = vadd.f32 %v1323_v63, %v1319_v62 }
 0x901   : > { %v1329_v9 = vadd.f32 %v1328_v4, %v1324_v3  ;;  %v1509_v3 = vld [vmem:[#allocation8 + $0x38] sm:$0xff] }
 0x902   : > { %1526 = vmatpush.msra.mxu0 %v1509_v3 }
 0x903   : > { %v1334_v13 = vadd.f32 %v1333_v10, %v1329_v9  ;;  %v1507_v10 = vld [vmem:[#allocation8 + $0x28] sm:$0xff] }
 0x904   : > { %1527 = vmatpush.msra.mxu0 %v1508_v8 }
 0x905   : > { %v1339_v16 = vadd.f32 %v1338_v15, %v1334_v13  ;;  %v1506_v13 = vld [vmem:[#allocation8 + $0x20] sm:$0xff] }
 0x906   : > { %1528 = vmatpush.msra.mxu0 %v1507_v10 }
 0x907   : > { %v1341_v17 = vadd.f32 %v1340_v41, %v1339_v16 }
 0x908   : > { %1529 = vmatpush.msra.mxu0 %v1506_v13 }
 0x909   : > { %v1342_v18 = vmul.f32 %v1341_v17, %v4027_v39 }
 0x90b   : > { %2929 = vmatmul.msk.f32.vlgmr.msrb.gmra.mxu3 %vm606_vm0, %v1342_v18  ;;  %v1373_v19 = vmul.f32 %v1342_v18, %v1342_v18 }
 0x90d   : > { %2930 = vmatmul.msk.f32.vlgmr.msrb.gmra.mxu0 %vm606_vm0, %v1373_v19 }
 0x98a   : > { %v1394_v21 = vpop.f32.mrf.mxu0 }
 0x98b   : > { %v1397_v23 = vsel %vm722_vm1, %v1394_v21, 0.0 }
 0x98c   : > { %v1398_v27 = vrot.slane %v1397_v23, 4 }
 0x98e   : > { %v1399_v29 = vadd.f32 %v1398_v27, %v1397_v23  ;;  %v1363_v30 = vpop.f32.mrf.mxu3 }
 0x98f   : > { %v1366_v31 = vsel %vm722_vm1, %v1363_v30, 0.0 }
 0x990   : > { %v1400_v32 = vrot.slane %v1399_v29, 2  ;;  %v1367_v35 = vrot.slane %v1366_v31, 4 }
 0x992   : > { %v1401_v36 = vadd.f32 %v1400_v32, %v1399_v29  ;;  %v1368_v38 = vadd.f32 %v1367_v35, %v1366_v31 }
 0x994   : > { %v1369_v11 = vrot.slane %v1368_v38, 2  ;;  %v1402_v40 = vrot.slane %v1401_v36, 1 }
 0x996   : > { %v1370_v42 = vadd.f32 %v1369_v11, %v1368_v38  ;;  %v1403_v44 = vadd.f32 %v1402_v40, %v1401_v36  ;;  %v4052_v38 = vld [vmem:[%s4472_s3 + $0x10] sm:$0xff] }
 0x997   : > { %v1510_v11 = vperm.slane %v4052_v38, 0  ;;  %v1559_v3 = vperm.slane %v4052_v38, 2  ;;  %v1575_v8 = vperm.slane %v4052_v38, 3  ;;  %v1577_v10 = vperm.slane %v4052_v38, 4 }
 0x998   : > { %v1371_v43 = vrot.slane %v1370_v42, 1  ;;  %v1405_v47 = vmul.f32 0.03125, %v1403_v44 }
 0x99a   : > { %v1372_v45 = vadd.f32 %v1371_v43, %v1370_v42 }
 0x99c   : > { %v1404_v46 = vmul.f32 0.03125, %v1372_v45 }
 0x99e   : > { %v1406_v48 = vmul.f32 %v1404_v46, %v1404_v46  ;;  %2935 = vmatmul.msk.f32.vlgmr.msra.gmra.mxu2 %vm722_vm1, %v1404_v46 }
 0x9a0   : > { %v1407_v12 = vsub.f32 %v1405_v47, %v1406_v48 }
 0x9a2   : > { %v1408_v50 = vadd.f32 1e-05, %v1407_v12 }
 0x9a4   : > { %3175 = vrsqrt.f32 %v1408_v50  ;;  %vm1415_vm8 = vweird.f32 %v1408_v50 }
 0x9aa   : > { %v3176_v52 = vpop.eup %3175 }
 0x9ab   : > { %v1410_v53 = vmul.f32 %v3176_v52, %v1408_v50  ;;  %vm1416_vm7 = vweird.f32 %v3176_v52  ;;  %v2945_v50 = vld [vmem:[%s4476_s7 + $0x38] sm:$0xff] }
 0x9ac   : > { %vm1417_vm9 = vmor %vm1415_vm8, %vm1416_vm7  ;;  %1595 = vmatpush.msrb.mxu1 %v2945_v50  ;;  %v1647_v50 = vperm.slane %v4052_v38, 5 }
 0x9ad   : > { %v1411_v54 = vmul.f32 %v3176_v52, %v1410_v53  ;;  %v2942_v53 = vld [vmem:[%s4476_s7 + $0x20] sm:$0xff] }
 0x9af   : > { %v1412_v55 = vmul.f32 0.5, %v1411_v54 }
 0x9b1   : > { %v1413_v56 = vsub.f32 1.5, %v1412_v55 }
 0x9b3   : > { %v1414_v57 = vmul.f32 %v3176_v52, %v1413_v56 }
 0x9b5   : > { %v1418_v58 = vsel %vm1417_vm9, %v3176_v52, %v1414_v57  ;;  %v2943_v52 = vld [vmem:[%s4476_s7 + $0x28] sm:$0xff] }
 0x9b6   : > { %2940 = vmatmul.msk.f32.vlgmr.msra.gmra.mxu3 %vm722_vm1, %v1418_v58 }
 0xa21   : > { %v1451_v59 = vpop.f32.mrf.mxu2 }
 0xa22   : > { %v1477_v61 = vperm.slane %v1451_v59, 0 }
 0xa24   : > { %v1478_v63 = vsub.f32 %v1342_v18, %v1477_v61 }
 0xa39   : > { %v1474_v62 = vpop.f32.mrf.mxu3 }
 0xa3a   : > { %v1479_v0 = vperm.slane %v1474_v62, 0 }
 0xa3c   : > { %v1480_v4 = vmul.f32 %v1479_v0, %v1478_v63  ;;  %v1557_v0 = vperm.slane %v4052_v38, 1 }
 0xa3e   : > { %v1482_v9 = vmul.f32 %v1481_v1, %v1480_v4 }
 0xa40   : > { %v1484_v41 = vadd.f32 %v1483_v5, %v1482_v9 }
 0xa42   : > { %v1485_v15 = vsub.f32 0.0, %v1484_v41 }
 0xa44   : > { %v1486_v16 = vmul.f32 1.442695, %v1485_v15  ;;  %v2953_v15 = vld [vmem:[%s4477_s8 + $0x78] sm:$0xff] }
 0xa45   : > { %1634 = vmatpush.msrb.mxu0 %v2953_v15  ;;  %v2960_v15 = vld [vmem:[%s4474_s5 + $0x88] sm:$0xff] }
 0xa46   : > { %3177 = vpow2.f32 %v1486_v16  ;;  %v2952_v16 = vld [vmem:[%s4477_s8 + $0x70] sm:$0xff] }
 0xa47   : > { %1635 = vmatpush.msrb.mxu0 %v2952_v16  ;;  %v2961_v16 = vld [vmem:[%s4474_s5 + $0x90] sm:$0xff] }
 0xa4c   : > { %v3178_v17 = vpop.eup %3177 }
 0xa4d   : > { %v1488_v18 = vadd.f32 1.0, %v3178_v17  ;;  %v2951_v17 = vld [vmem:[%s4477_s8 + $0x68] sm:$0xff] }
 0xa4e   : > { %1636 = vmatpush.msrb.mxu0 %v2951_v17  ;;  %v2974_v17 = vld [vmem:[%s4474_s5 + $0xf8] sm:$0xff] }
 0xa4f   : > { %3179 = vrcp.f32 %v1488_v18  ;;  %v1500_v27 = vand.u32 2147483648, %v1488_v18  ;;  %v1498_v29 = vand.u32 2147483647, %v1488_v18  ;;  %vm1494_vm11 = vweird.f32 %v1488_v18 }
 0xa51   : > { %v1501_v31 = vor.u32 1.1754944e-38, %v1500_v27  ;;  %vm1499_vm14 = vcmp.eq.f32.partialorder %v1498_v29, 8.507059e+37 }
 0xa55   : > { %v3180_v19 = vpop.eup %3179 }
 0xa56   : > { %v1490_v21 = vmul.f32 %v3180_v19, %v1488_v18  ;;  %vm1495_vm10 = vweird.f32 %v3180_v19  ;;  %v2950_v18 = vld [vmem:[%s4477_s8 + $0x60] sm:$0xff] }
 0xa57   : > { %vm1496_vm13 = vmor %vm1494_vm11, %vm1495_vm10  ;;  %1637 = vmatpush.msrb.mxu0 %v2950_v18  ;;  %v2970_v18 = vld [vmem:[%s4474_s5 + $0xd8] sm:$0xff] }
 0xa58   : > { %v1491_v23 = vsub.f32 1.0, %v1490_v21  ;;  %v1579_v21 = vperm.slane %v3948_v6, 1 }
 0xa5a   : > { %v1492_v60 = vmul.f32 %v3180_v19, %v1491_v23  ;;  %v2948_v23 = vld [vmem:[%s4477_s8 + $0x50] sm:$0xff] }
 0xa5c   : > { %v1493_v30 = vadd.f32 %v3180_v19, %v1492_v60  ;;  %v2947_v60 = vld [vmem:[%s4477_s8 + $0x48] sm:$0xff] }
 0xa5e   : > { %v1497_v32 = vsel %vm1496_vm13, %v3180_v19, %v1493_v30  ;;  %v2949_v19 = vld [vmem:[%s4477_s8 + $0x58] sm:$0xff]  ;;  %v2946_v30 = vld [vmem:[%s4477_s8 + $0x40] sm:$0xff] }
 0xa5f   : > { %v1502_v35 = vsel %vm1499_vm14, %v1501_v31, %v1497_v32  ;;  %1638 = vmatpush.msrb.mxu0 %v2949_v19  ;;  %v2966_v19 = vld [vmem:[%s4474_s5 + $0xb8] sm:$0xff] }
 0xa60   : > { %v1504_v36 = vmul.f32 %v1502_v35, %v1484_v41 }
 0xa61   : > { %1639 = vmatpush.msrb.mxu0 %v2948_v23 }
 0xa62   : > { %2941 = vmatmul.msk.f32.vlgmr.msra.gmra.mxu0 %vm606_vm0, %v1504_v36 }
 0xa63   : > { %1640 = vmatpush.msrb.mxu0 %v2947_v60 }
 0xa65   : > { %1641 = vmatpush.msrb.mxu0 %v2946_v30 }
 0xa67   : > { %2984 = vmatpush.xpose.msk.msra.mxu0 %vm606_vm0, %v3845_v49 }
 0xadf   : > { %v1531_v40 = vpop.f32.mrf.mxu0 }
 0xae0   : > { %v1532_v42 = vadd.f32 %v1531_v40, %v1510_v11 }
 0xae2   : > { %v1534_v43 = vadd.f32 %v1532_v42, %v3985_v7  ;;  %v2944_v7 = vld [vmem:[%s4476_s7 + $0x30] sm:$0xff] }
 0xae3   : > { %1596 = vmatpush.msrb.mxu1 %v2944_v7 }
 0xae4   : > { %v1535_v44 = vsel %vm606_vm0, %v1534_v43, 0.0 }
 0xae5   : > { %1536 = vadd.xlane.f32.xlu1 %v1535_v44  ;;  %1597 = vmatpush.msrb.mxu1 %v2943_v52 }
 0xae7   : > { %1598 = vmatpush.msrb.mxu1 %v2942_v53 }
 0xb58   : > { %v1537_v45 = vpop.xlane.xlu1 %1536 }
 0xb59   : > { %v1538_v46 = vmul.f32 %v1537_v45, %v3917_v34 }
 0xb5b   : > { %v1539_v47 = vsub.f32 %v1534_v43, %v1538_v46 }
 0xb5d   : > { %v1540_v48 = vmul.f32 %v1539_v47, %v1539_v47 }
 0xb5f   : > { %v1541_v12 = vsel %vm606_vm0, %v1540_v48, 0.0 }
 0xb60   : > { %1542 = vadd.xlane.f32.xlu0 %v1541_v12  ;;  %v4108_v12 = vld [vmem:[%s4481_s12 + $0x10] sm:$0xff] }
 0xbd3   : > { %v1543_v54 = vpop.xlane.xlu0 %1542 }
 0xbd4   : > { %v1544_v55 = vmul.f32 %v1543_v54, %v3917_v34 }
 0xbd6   : > { %v1545_v56 = vadd.f32 1e-05, %v1544_v55 }
 0xbd8   : > { %3181 = vrsqrt.f32 %v1545_v56  ;;  %vm1552_vm2 = vweird.f32 %v1545_v56 }
 0xbde   : > { %v3182_v57 = vpop.eup %3181 }
 0xbdf   : > { %v1547_v58 = vmul.f32 %v3182_v57, %v1545_v56  ;;  %vm1553_vm15 = vweird.f32 %v3182_v57 }
 0xbe0   : > { %vm1554_vm4 = vmor %vm1552_vm2, %vm1553_vm15 }
 0xbe1   : > { %v1548_v59 = vmul.f32 %v3182_v57, %v1547_v58 }
 0xbe3   : > { %v1549_v61 = vmul.f32 0.5, %v1548_v59 }
 0xbe5   : > { %v1550_v62 = vsub.f32 1.5, %v1549_v61 }
 0xbe7   : > { %v1551_v63 = vmul.f32 %v3182_v57, %v1550_v62  ;;  %v2971_v62 = vld [vmem:[%s4474_s5 + $0xe0] sm:$0xff] }
 0xbe8   : > { %1731 = vmatpush.msra.mxu1 %v2971_v62  ;;  %v3234_v62 = vld [vmem:[%s4481_s12 + $0x8] sm:$0xff] }
 0xbe9   : > { %v1555_v1 = vsel %vm1554_vm4, %v3182_v57, %v1551_v63  ;;  %v2972_v63 = vld [vmem:[%s4474_s5 + $0xe8] sm:$0xff] }
 0xbea   : > { %v1556_v4 = vmul.f32 %v1555_v1, %v1539_v47  ;;  %1751 = vmatpush.msrb.mxu2 %v2972_v63 }
 0xbec   : > { %v1558_v5 = vmul.f32 %v1557_v0, %v1556_v4  ;;  %v2973_v0 = vld [vmem:[%s4474_s5 + $0xf0] sm:$0xff]  ;;  %v2968_v4 = vld [vmem:[%s4474_s5 + $0xc8] sm:$0xff] }
 0xbed   : > { %1771 = vmatpush.msrb.mxu3 %v2973_v0  ;;  %1752 = vmatpush.msrb.mxu2 %v2968_v4 }
 0xbee   : > { %v1560_v9 = vadd.f32 %v1559_v3, %v1558_v5  ;;  %v2967_v3 = vld [vmem:[%s4474_s5 + $0xc0] sm:$0xff]  ;;  %v2969_v5 = vld [vmem:[%s4474_s5 + $0xd0] sm:$0xff] }
 0xbef   : > { %1732 = vmatpush.msra.mxu1 %v2967_v3  ;;  %1772 = vmatpush.msrb.mxu3 %v2969_v5 }
 0xbf0   : > { %v1576_v41 = vmul.f32 %v1575_v8, %v1560_v9  ;;  %v2963_v8 = vld [vmem:[%s4474_s5 + $0xa0] sm:$0xff] }
 0xbf1   : > { %1733 = vmatpush.msra.mxu1 %v2963_v8 }
 0xbf2   : > { %v1578_v13 = vadd.f32 %v1577_v10, %v1576_v41  ;;  %v2965_v41 = vld [vmem:[%s4474_s5 + $0xb0] sm:$0xff] }
 0xbf3   : > { %1773 = vmatpush.msrb.mxu3 %v2965_v41 }
 0xbf4   : > { %2954 = vmatmul.msk.f32.vlgmr.msrb.gmra.mxu1 %vm606_vm0, %v1578_v13  ;;  %v2959_v13 = vld [vmem:[%s4474_s5 + $0x80] sm:$0xff] }
 0xbf5   : > { %1734 = vmatpush.msra.mxu1 %v2959_v13  ;;  %1774 = vmatpush.msrb.mxu3 %v2961_v16 }
 0xbf7   : > { %1791 = vmatpush.msrb.mxu1 %v2974_v17 }
 0xbf9   : > { %1792 = vmatpush.msrb.mxu1 %v2970_v18 }
 0xbfb   : > { %1793 = vmatpush.msrb.mxu1 %v2966_v19 }
 0xc71   : > { %v1600_v27 = vpop.f32.mrf.mxu1 }
 0xc72   : > { %v1601_v29 = vadd.f32 %v1600_v27, %v1579_v21  ;;  %v2962_v27 = vld [vmem:[%s4474_s5 + $0x98] sm:$0xff] }
 0xc73   : > { %1794 = vmatpush.msrb.mxu1 %v2962_v27 }
 0xc74   : > { %v1603_v31 = vsub.f32 0.0, %v1601_v29 }
 0xc76   : > { %v1604_v6 = vmul.f32 1.442695, %v1603_v31 }
 0xc78   : > { %3183 = vpow2.f32 %v1604_v6  ;;  %v1671_v6 = vperm.slane %v4052_v38, 6 }
 0xc7e   : > { %v3184_v32 = vpop.eup %3183 }
 0xc7f   : > { %v1606_v35 = vadd.f32 1.0, %v3184_v32 }
 0xc81   : > { %3185 = vrcp.f32 %v1606_v35  ;;  %v1618_v42 = vand.u32 2147483648, %v1606_v35  ;;  %v1616_v44 = vand.u32 2147483647, %v1606_v35  ;;  %vm1612_vm6 = vweird.f32 %v1606_v35 }
 0xc83   : > { %v1619_v46 = vor.u32 1.1754944e-38, %v1618_v42  ;;  %vm1617_vm8 = vcmp.eq.f32.partialorder %v1616_v44, 8.507059e+37  ;;  %v4172_v42 = vld [vmem:[%s4472_s3 + $0x18] sm:$0xff] }
 0xc87   : > { %v3186_v36 = vpop.eup %3185 }
 0xc88   : > { %v1608_v11 = vmul.f32 %v3186_v36, %v1606_v35  ;;  %vm1613_vm5 = vweird.f32 %v3186_v36  ;;  %v1673_v35 = vperm.slane %v4052_v38, 7 }
 0xc89   : > { %vm1614_vm7 = vmor %vm1612_vm6, %vm1613_vm5 }
 0xc8a   : > { %v1609_v40 = vsub.f32 1.0, %v1608_v11 }
 0xc8c   : > { %v1610_v43 = vmul.f32 %v3186_v36, %v1609_v40 }
 0xc8e   : > { %v1611_v45 = vadd.f32 %v3186_v36, %v1610_v43  ;;  %v3232_v43 = vld [vmem:[%s3700_s11] sm:$0xff] }
 0xc90   : > { %v1615_v47 = vsel %vm1614_vm7, %v3186_v36, %v1611_v45 }
 0xc91   : > { %v1620_v48 = vsel %vm1617_vm8, %v1619_v46, %v1615_v47  ;;  %v1684_v46 = vperm.slane %v4172_v42, 0 }
 0xc92   : > { %v1622_v49 = vmul.f32 %v1620_v48, %v1601_v29  ;;  %v1686_v48 = vperm.slane %v4172_v42, 1 }
 0xc94   : > { %2955 = vmatmul.msk.f32.vlgmr.msrb.gmra.mxu0 %vm1190_vm12, %v1622_v49 }
 0xc95   : > { %2990 = vmatpush.xpose.msk.msrb.mxu0 %vm606_vm0, %v4108_v12 }
 0xd11   : > { %v1643_v7 = vpop.f32.mrf.mxu0 }
 0xd12   : > { %v1646_v52 = vadd.f32 %v1643_v7, %v1560_v9  ;;  %v2964_v9 = vld [vmem:[%s4474_s5 + $0xa8] sm:$0xff] }
 0xd13   : > { %1753 = vmatpush.msrb.mxu2 %v2964_v9 }
 0xd14   : > { %v1648_v53 = vadd.f32 %v1647_v50, %v1646_v52  ;;  %v2975_v50 = vld [vmem:[%s4475_s6 + $0x4] sm:$0xf] }
 0xd15   : > { %1754 = vmatpush.msrb.mxu2 %v2960_v15  ;;  %v1708_v7 = vperm.slane %v2975_v50, 0 }
 0xd16   : > { %v1649_v54 = vsel %vm606_vm0, %v1648_v53, 0.0 }
 0xd17   : > { %1650 = vadd.xlane.f32.xlu1 %v1649_v54  ;;  %2980 = vmatpush.xpose.msk.msra.mxu2 %vm606_vm0, %v4108_v12 }
 0xd8a   : > { %v1651_v55 = vpop.xlane.xlu1 %1650 }
 0xd8b   : > { %v1652_v56 = vmul.f32 %v1651_v55, %v3917_v34  ;;  %v1711_v55 = vperm.slane %v2975_v50, 3 }
 0xd8d   : > { %v1653_v57 = vsub.f32 %v1648_v53, %v1652_v56  ;;  %v1709_v53 = vperm.slane %v2975_v50, 1 }
 0xd8f   : > { %v1654_v58 = vmul.f32 %v1653_v57, %v1653_v57 }
 0xd91   : > { %v1655_v59 = vsel %vm606_vm0, %v1654_v58, 0.0  ;;  %v3233_v58 = vld [vmem:[%s4481_s12] sm:$0xff] }
 0xd92   : > { %1656 = vadd.xlane.f32.xlu0 %v1655_v59 }
 0xe05   : > { %v1657_v61 = vpop.xlane.xlu0 %1656 }
 0xe06   : > { %v1658_v1 = vmul.f32 %v1657_v61, %v3917_v34 }
 0xe08   : > { %v1659_v10 = vadd.f32 1e-05, %v1658_v1 }
 0xe0a   : > { %3187 = vrsqrt.f32 %v1659_v10  ;;  %vm1666_vm10 = vweird.f32 %v1659_v10 }
 0xe10   : > { %v3188_v21 = vpop.eup %3187 }
 0xe11   : > { %v1661_v23 = vmul.f32 %v3188_v21, %v1659_v10  ;;  %vm1667_vm9 = vweird.f32 %v3188_v21 }
 0xe12   : > { %vm1668_vm11 = vmor %vm1666_vm10, %vm1667_vm9 }
 0xe13   : > { %v1662_v60 = vmul.f32 %v3188_v21, %v1661_v23 }
 0xe15   : > { %v1663_v29 = vmul.f32 0.5, %v1662_v60 }
 0xe17   : > { %v1664_v30 = vsub.f32 1.5, %v1663_v29 }
 0xe19   : > { %v1665_v31 = vmul.f32 %v3188_v21, %v1664_v30 }
 0xe1b   : > { %v1669_v32 = vsel %vm1668_vm11, %v3188_v21, %v1665_v31 }
 0xe1c   : > { %v1670_v36 = vmul.f32 %v1669_v32, %v1653_v57 }
 0xe1e   : > { %v1672_v11 = vmul.f32 %v1671_v6, %v1670_v36 }
 0xe20   : > { %v1674_v40 = vadd.f32 %v1673_v35, %v1672_v11 }
 0xe22   : > { %v1675_v44 = vadd.f32 %v3232_v43, %v1674_v40 }
 0xe24   : > { %v1676_v45 = vmul.f32 %v1675_v44, %v4027_v39 }
 0xe26   : > { %v4177_v47 = vmul.f32 0.70710677, %v1676_v45 }
 0xe28   : > { %v1685_v38 = vmul.f32 %v1684_v46, %v4177_v47 }
 0xe2a   : > { %v1687_v49 = vadd.f32 %v1686_v48, %v1685_v38 }
 0xe2c   : > { %2976 = vmatmul.msk.f32.vlgmr.msra.gmra.mxu1 %vm606_vm0, %v1687_v49  ;;  %2977 = vmatmul.msk.f32.vlgmr.msrb.gmra.mxu2 %vm606_vm0, %v1687_v49 }
 0xe2d   : > { %2978 = vmatmul.msk.f32.vlgmr.msrb.gmra.mxu3 %vm606_vm0, %v1687_v49 }
 0xe34   : > { %2979 = vmatmul.msk.f32.vlgmr.msrb.gmra.mxu1 %vm606_vm0, %v1687_v49 }
 0xea9   : > { %v1736_v52 = vpop.f32.mrf.mxu1 }
 0xeaa   : > { %v1737_v54 = vadd.f32 %v1736_v52, %v1708_v7 }
 0xeac   : > { %v1799_v59 = vmul.f32 %v3233_v58, %v1737_v54  ;;  %v1984_v1 = vmul.f32 %v1737_v54, %v3805_v26  ;;  %v2080_v4 = vmul.f32 %v1737_v54, %v3854_v51  ;;  %v1865_v13 = vmul.f32 %v1737_v54, %v3800_v24 }
 0xead   : > { %v1710_v26 = vperm.slane %v2975_v50, 2 }
 0xeaf   : > { %v1756_v56 = vpop.f32.mrf.mxu2 }
 0xeb0   : > { %v1757_v57 = vadd.f32 %v1756_v56, %v1709_v53 }
 0xeb1   : > { %v1796_v61 = vpop.f32.mrf.mxu1 }
 0xeb2   : > { %v1800_v63 = vmul.f32 %v3234_v62, %v1757_v57  ;;  %v1797_v0 = vadd.f32 %v1796_v61, %v1711_v55  ;;  %v1985_v3 = vmul.f32 %v1757_v57, %v3817_v37  ;;  %v2081_v5 = vmul.f32 %v1757_v57, %v3879_v14  ;;  %v1776_v37 = vpop.f32.mrf.mxu3 }
 0xeb3   : > { %v1866_v41 = vmul.f32 %v1757_v57, %v3811_v33  ;;  %v4206_v51 = vadd.f32 %v1776_v37, %v1710_v26 }
 0xeb4   : > { %v1801_v8 = vadd.f32 %v1800_v63, %v1799_v59  ;;  %1826 = vrot.lane.b32.xlu1 %v1797_v0, %s3478_s20  ;;  %v1986_v9 = vadd.f32 %v1985_v3, %v1984_v1  ;;  %v2082_v10 = vadd.f32 %v2081_v5, %v2080_v4 }
 0xeb5   : > { %v1867_v15 = vadd.f32 %v1866_v41, %v1865_v13 }
 0xeb6   : > { %2981 = vmatmul.msk.f32.vlgmr.msra.gmra.mxu2 %vm606_vm0, %v1801_v8 }
 0xebc   : > { %1869 = vrot.lane.b32.xlu1 %v1867_v15, %s3478_s20 }
 0xec4   : > { %2014 = vrot.lane.b32.xlu1 %v1797_v0, %s3482_s21 }
 0xecc   : > { %2012 = vrot.lane.b32.xlu1 %v1797_v0, %s3485_s18 }
 0xed4   : > { %2108 = vrot.lane.b32.xlu1 %v1797_v0, %s3481_s22  ;;  %s4522_s22 = smov 32  }
 0xf26   : > { %v1827_v14 = vpop.permute.xlu1 %1826 }
 0xf27   : > { %2982 = vmatpush.xpose.msk.msra.mxu3 %vm722_vm1, %v1827_v14 }
 0xf2a   : > { %2983 = vmatmul.msk.f32.vlgmr.msra.gmra.mxu3 %vm722_vm1, %v1797_v0 }
 0xf2b   : > { %1979 = vmatpush.msrb.mxu3 %v4206_v51 }
 0xf2d   : > { %2995 = vmatpush.xpose.msk.msra.mxu3 %vm606_vm0, %v4108_v12 }
 0xf2e   : > { %v1870_v24 = vpop.permute.xlu1 %1869 }
 0xf2f   : > { %2985 = vmatmul.msk.f32.vlgmr.msra.gmra.mxu0 %vm606_vm0, %v1870_v24 }
 0xf36   : > { %v2015_v31 = vpop.permute.xlu1 %2014 }
 0xf39   : > { %v1822_v33 = vpop.f32.mrf.mxu2 }
 0xf3e   : > { %v2013_v32 = vpop.permute.xlu1 %2012 }
 0xf46   : > { %v2109_v44 = vpop.permute.xlu1 %2108 }
 0xfac   : > { %v1890_v46 = vpop.f32.mrf.mxu0 }
 0xfad   : > { %v1849_v16 = vpop.f32.mrf.mxu3 }
 0xfae   : > { %v1850_v17 = vadd.f32 %v1849_v16, %v1822_v33 }
 0xfb0   : > { %v1852_v18 = vmul.f32 0.35355338, %v1850_v17 }
 0xfb2   : > { %v1853_v19 = vsel %vm3869_vm3, -1e+09, %v1852_v18 }
 0xfb3   : > { %v1854_v21 = vsel %vm722_vm1, %v1853_v19, -inf }
 0xfb4   : > { %1855 = vmax.xlane.f32.xlu0 %v1854_v21 }
 0xfc8   : > { %1895 = vrot.lane.b32.xlu0 %v1797_v0, %s3479_s23  ;;  %s4523_s23 = smov 72  }
 0xfd0   : > { %1893 = vrot.lane.b32.xlu0 %v1797_v0, %s3480_s4  ;;  %s3409_s4 = scalar_lea.hbm %s4524_s9, 16 }
 0xfd8   : > { %1988 = vrot.lane.b32.xlu0 %v1986_v9, %s3477_s16 }
 0xfe0   : > { %2084 = vrot.lane.b32.xlu0 %v2082_v10, %s4522_s22 }
0x1027   : > { %v1856_v12 = vpop.xlane.xlu0 %1855 }
0x1028   : > { %v1857_v23 = vsub.f32 %v1853_v19, %v1856_v12 }
0x102a   : > { %v1858_v27 = vmul.f32 1.442695, %v1857_v23 }
0x102c   : > { %3189 = vpow2.f32 %v1858_v27 }
0x1032   : > { %v3190_v60 = vpop.eup %3189 }
0x1033   : > { %v1860_v29 = vsel %vm722_vm1, %v3190_v60, 0.0 }
0x1034   : > { %1861 = vadd.xlane.f32.xlu2 %v1860_v29 }
0x103a   : > { %v1896_v30 = vpop.permute.xlu0 %1895 }
0x103b   : > { %2986 = vmatpush.xpose.msk.msra.mxu1 %vm722_vm1, %v1896_v30 }
0x103f   : > { %2992 = vmatpush.xpose.msk.msrb.mxu1 %vm722_vm1, %v2015_v31 }
0x1042   : > { %v1894_v6 = vpop.permute.xlu0 %1893 }
0x1043   : > { %2987 = vmatmul.msk.f32.vlgmr.msra.gmra.mxu1 %vm722_vm1, %v1894_v6 }
0x104a   : > { %v1989_v35 = vpop.permute.xlu0 %1988 }
0x104b   : > { %2991 = vmatmul.msk.f32.vlgmr.msrb.gmra.mxu0 %vm606_vm0, %v1989_v35  ;;  %2993 = vmatmul.msk.f32.vlgmr.msrb.gmra.mxu1 %vm722_vm1, %v2013_v32 }
0x104c   : > { %2110 = vrot.lane.b32.xlu2 %v1797_v0, %s4523_s23 }
0x1052   : > { %v2085_v45 = vpop.permute.xlu0 %2084 }
0x10a7   : > { %v1862_v36 = vpop.xlane.xlu2 %1861 }
0x10a8   : > { %3191 = vrcp.f32 %v1862_v36 }
0x10ae   : > { %v3192_v11 = vpop.eup %3191 }
0x10af   : > { %v1864_v40 = vmul.f32 %v3192_v11, %v3190_v60  ;;  %v2111_v43 = vpop.permute.xlu2 %2110 }
0x10b0   : > { %2997 = vmatpush.xpose.msk.msra.mxu0 %vm722_vm1, %v2111_v43 }
0x10b1   : > { %2989 = vmatmul.msk.f32.vlgmr.msrb.gmra.mxu3 %vm722_vm1, %v1864_v40  ;;  %v2177_v40 = vperm.slane %v4172_v42, 2 }
0x10b3   : > { %2998 = vmatmul.msk.f32.vlgmr.msra.gmra.mxu0 %vm722_vm1, %v2109_v44 }
0x10b9   : > { %2996 = vmatmul.msk.f32.vlgmr.msra.gmra.mxu3 %vm606_vm0, %v2085_v45 }
0x10c0   : > { %v1918_v48 = vpop.f32.mrf.mxu1 }
0x10c1   : > { %v1919_v38 = vadd.f32 %v1918_v48, %v1890_v46 }
0x10c3   : > { %v1921_v49 = vmul.f32 0.35355338, %v1919_v38 }
0x10c5   : > { %v1922_v50 = vsel %vm3869_vm3, -1e+09, %v1921_v49 }
0x10c6   : > { %v1923_v7 = vsel %vm722_vm1, %v1922_v50, -inf }
0x10c7   : > { %1924 = vmax.xlane.f32.xlu0 %v1923_v7  ;;  %v3003_v7 = vld [vmem:[%s4476_s7 + $0x58] sm:$0xff] }
0x10c8   : > { %v2009_v52 = vpop.f32.mrf.mxu0  ;;  %v2037_v53 = vpop.f32.mrf.mxu1 }
0x10c9   : > { %v2038_v54 = vadd.f32 %v2037_v53, %v2009_v52  ;;  %v3002_v52 = vld [vmem:[%s4476_s7 + $0x50] sm:$0xff]  ;;  %v3001_v53 = vld [vmem:[%s4476_s7 + $0x48] sm:$0xff] }
0x10cb   : > { %v2040_v55 = vmul.f32 0.35355338, %v2038_v54  ;;  %v3000_v54 = vld [vmem:[%s4476_s7 + $0x40] sm:$0xff] }
0x10cd   : > { %v2041_v56 = vsel %vm3869_vm3, -1e+09, %v2040_v55 }
0x10ce   : > { %v2042_v57 = vsel %vm722_vm1, %v2041_v56, -inf }
0x10cf   : > { %2043 = vmax.xlane.f32.xlu1 %v2042_v57 }
0x1130   : > { %v2133_v62 = vpop.f32.mrf.mxu0 }
0x1134   : > { %v4238_v58 = vpop.f32.mrf.mxu3 }
0x113a   : > { %v1925_v59 = vpop.xlane.xlu0 %1924 }
0x113b   : > { %v1926_v61 = vsub.f32 %v1922_v50, %v1925_v59 }
0x113c   : > { %v2105_v63 = vpop.f32.mrf.mxu3 }
0x113d   : > { %v1927_v0 = vmul.f32 1.442695, %v1926_v61  ;;  %v2134_v1 = vadd.f32 %v2133_v62, %v2105_v63 }
0x113f   : > { %3193 = vpow2.f32 %v1927_v0  ;;  %v2136_v3 = vmul.f32 0.35355338, %v2134_v1  ;;  %v2201_v1 = vperm.slane %v4172_v42, 3 }
0x1141   : > { %v2137_v4 = vsel %vm3869_vm3, -1e+09, %v2136_v3  ;;  %v2203_v3 = vperm.slane %v4172_v42, 4 }
0x1142   : > { %v2044_v5 = vpop.xlane.xlu1 %2043  ;;  %v2138_v8 = vsel %vm722_vm1, %v2137_v4, -inf }
0x1143   : > { %v2045_v9 = vsub.f32 %v2041_v56, %v2044_v5  ;;  %2139 = vmax.xlane.f32.xlu2 %v2138_v8 }
0x1145   : > { %v3194_v10 = vpop.eup %3193  ;;  %v2046_v41 = vmul.f32 1.442695, %v2045_v9 }
0x1146   : > { %v1929_v13 = vsel %vm722_vm1, %v3194_v10, 0.0 }
0x1147   : > { %3195 = vpow2.f32 %v2046_v41  ;;  %1930 = vadd.xlane.f32.xlu0 %v1929_v13  ;;  %v3010_v41 = vld [vmem:[%s4477_s8 + $0xb0] sm:$0xff]  ;;  %v3009_v13 = vld [vmem:[%s4477_s8 + $0xa8] sm:$0xff] }
0x114d   : > { %v3196_v15 = vpop.eup %3195 }
0x114e   : > { %v2048_v26 = vsel %vm722_vm1, %v3196_v15, 0.0 }
0x114f   : > { %2049 = vadd.xlane.f32.xlu1 %v2048_v26  ;;  %v3008_v26 = vld [vmem:[%s4477_s8 + $0xa0] sm:$0xff] }
0x115b   : > { %2053 = vrot.lane.b32.xlu2 %v4206_v51, %s3477_s16  ;;  %1935 = vrot.lane.b32.xlu0 %v4206_v51, %s3478_s20 }
0x11b6   : > { %v2140_v2 = vpop.xlane.xlu2 %2139 }
0x11b7   : > { %v2141_v37 = vsub.f32 %v2137_v4, %v2140_v2  ;;  %v3007_v2 = vld [vmem:[%s4477_s8 + $0x98] sm:$0xff] }
0x11b9   : > { %v2142_v14 = vmul.f32 1.442695, %v2141_v37 }
0x11ba   : > { %v1931_v33 = vpop.xlane.xlu0 %1930 }
0x11bb   : > { %3197 = vpow2.f32 %v2142_v14  ;;  %v3006_v14 = vld [vmem:[%s4477_s8 + $0x90] sm:$0xff] }
0x11bc   : > { %3199 = vrcp.f32 %v1931_v33  ;;  %v3005_v33 = vld [vmem:[%s4477_s8 + $0x88] sm:$0xff] }
0x11be   : > { %v2054_v12 = vpop.permute.xlu2 %2053 }
0x11c1   : > { %v3198_v24 = vpop.eup %3197 }
0x11c2   : > { %v2144_v16 = vsel %vm722_vm1, %v3198_v24, 0.0  ;;  %v2050_v17 = vpop.xlane.xlu1 %2049  ;;  %v3200_v18 = vpop.eup %3199 }
0x11c3   : > { %2145 = vadd.xlane.f32.xlu1 %v2144_v16  ;;  %3201 = vrcp.f32 %v2050_v17  ;;  %v1933_v19 = vmul.f32 %v3200_v18, %v3194_v10  ;;  %v3011_v10 = vld [vmem:[%s4477_s8 + $0xb8] sm:$0xff]  ;;  %v3004_v17 = vld [vmem:[%s4477_s8 + $0x80] sm:$0xff] }
0x11c4   : > { %2278 = vmatpush.msrb.mxu3 %v3011_v10 }
0x11c6   : > { %2279 = vmatpush.msrb.mxu3 %v3010_v41 }
0x11c8   : > { %2280 = vmatpush.msrb.mxu3 %v3009_v13 }
0x11c9   : > { %v3202_v23 = vpop.eup %3201 }
0x11ca   : > { %v2052_v27 = vmul.f32 %v3202_v23, %v3196_v15  ;;  %v4304_v15 = vld [vmem:[#allocation7 + $0x2] sm:$0x3]  ;;  %2281 = vmatpush.msrb.mxu3 %v3008_v26 }
0x11cb   : > { %v2223_v37 = vperm.slane %v4304_v15, 0 }
0x11cc   : > { %2282 = vmatpush.msrb.mxu3 %v3007_v2 }
0x11cd   : > { %v1936_v21 = vpop.permute.xlu0 %1935 }
0x11ce   : > { %1956 = vmatpush.msrb.mxu2 %v1936_v21  ;;  %2283 = vmatpush.msrb.mxu3 %v3006_v14 }
0x11cf   : > { %2988 = vmatmul.msk.f32.vlgmr.msrb.gmra.mxu2 %vm722_vm1, %v1933_v19 }
0x11d0   : > { %2074 = vmatpush.msra.mxu2 %v2054_v12  ;;  %2284 = vmatpush.msrb.mxu3 %v3005_v33 }
0x11d2   : > { %2239 = vmatpush.msrb.mxu2 %v3003_v7  ;;  %2285 = vmatpush.msrb.mxu3 %v3004_v17  ;;  %v2327_v7 = vld [vmem:[#allocation8 + $0x58] sm:$0xff] }
0x11d3   : > { %2344 = vmatpush.msrb.mxu0 %v2327_v7  ;;  %v2394_v7 = vld [vmem:[#allocation10 + $0x60] sm:$0xff] }
0x11d4   : > { %2240 = vmatpush.msrb.mxu2 %v3002_v52  ;;  %v2326_v52 = vld [vmem:[#allocation8 + $0x50] sm:$0xff] }
0x11d5   : > { %2345 = vmatpush.msrb.mxu0 %v2326_v52 }
0x11d6   : > { %2241 = vmatpush.msrb.mxu2 %v3001_v53  ;;  %v2325_v53 = vld [vmem:[#allocation8 + $0x48] sm:$0xff] }
0x11d7   : > { %2994 = vmatmul.msk.f32.vlgmr.msra.gmra.mxu2 %vm722_vm1, %v2052_v27  ;;  %2346 = vmatpush.msrb.mxu0 %v2325_v53 }
0x11d8   : > { %2242 = vmatpush.msrb.mxu2 %v3000_v54 }
0x11da   : > { %2462 = vmatpush.msra.mxu2 %v3994_v20 }
0x11dc   : > { %2149 = vrot.lane.b32.xlu1 %v4206_v51, %s4522_s22  ;;  %2463 = vmatpush.msra.mxu2 %v4001_v22  ;;  %s3403_s22 = sshra.s32 %s2756_s28, 4  ;;  %s3404_s22 = int_to_ptr.hbm [resolvable:$true] %s3403_s22 }
0x11dd   : > { %s3405_s23 = scalar_lea.hbm %s3404_s22, 8  ;;  %p3410_p9 = scmp.lt.s32.totalorder %s3404_s22, %s4524_s9 }
0x11de   : > { %2464 = vmatpush.msra.mxu2 %v4010_v25  ;;  %p3406_p3 = scmp.ne.s32.totalorder %s3404_s22, %s3405_s23  ;;  %p3411_p8 = scmp.lt.s32.totalorder %s3409_s4, %s3405_s23 }
0x11e0   : > { %2465 = vmatpush.msra.mxu2 %v4016_v28  ;;  %p3407_p13 = pnand %p3406_p3, %p3637_p0  ;;  %p3412_p10 = por %p3411_p8, %p3410_p9 }
0x11e2   : > { %p3408_p7 = pneg %p3407_p13 }
0x11e4   : > { %p3413_p11 = pnand %p3412_p10, %p3408_p7 }
0x1236   : > { %v2146_v60 = vpop.xlane.xlu1 %2145 }
0x1237   : > { %3203 = vrcp.f32 %v2146_v60 }
0x123d   : > { %v3204_v29 = vpop.eup %3203 }
0x123e   : > { %v2148_v30 = vmul.f32 %v3204_v29, %v3198_v24 }
0x124e   : > { %v2150_v31 = vpop.permute.xlu1 %2149 }
0x124f   : > { %2170 = vmatpush.msra.mxu1 %v2150_v31 }
0x1250   : > { %2999 = vmatmul.msk.f32.vlgmr.msra.gmra.mxu1 %vm722_vm1, %v2148_v30 }
0x1251   : > { %2431 = vmatpush.msrb.mxu1 %v3994_v20 }
0x1252   : > { %v1958_v51 = vpop.f32.mrf.mxu2 }
0x1253   : > { %2432 = vmatpush.msrb.mxu1 %v4001_v22  ;;  %v1982_v32 = vadd.f32 %v4238_v58, %v1958_v51 }
0x1255   : > { %2433 = vmatpush.msrb.mxu1 %v4010_v25 }
0x1257   : > { %2434 = vmatpush.msrb.mxu1 %v4016_v28 }
0x1259   : > { %3022 = vmatpush.xpose.msk.msra.mxu1 %vm722_vm1, %v3994_v20 }
0x125a   : > { %v2076_v6 = vpop.f32.mrf.mxu2 }
0x125b   : > { %v2079_v35 = vadd.f32 %v2076_v6, %v1982_v32 }
0x125d   : > { %3023 = vmatpush.xpose.msk.msra.mxu1 %vm722_vm1, %v4001_v22 }
0x1261   : > { %3024 = vmatpush.xpose.msk.msra.mxu1 %vm722_vm1, %v4010_v25  ;;  %v2219_v25 = vperm.slane %v4172_v42, 5 }
0x1265   : > { %3025 = vmatpush.xpose.msk.msra.mxu1 %vm722_vm1, %v4016_v28  ;;  %v2221_v28 = vperm.slane %v4172_v42, 6 }
0x12cd   : > { %v2172_v36 = vpop.f32.mrf.mxu1 }
0x12ce   : > { %v2175_v11 = vadd.f32 %v2172_v36, %v2079_v35 }
0x12d0   : > { %v2176_v43 = vadd.f32 %v2175_v11, %v4177_v47  ;;  %v2291_v11 = vperm.slane %v4172_v42, 7  ;;  %v2324_v42 = vld [vmem:[#allocation8 + $0x40] sm:$0xff] }
0x12d1   : > { %2347 = vmatpush.msrb.mxu0 %v2324_v42 }
0x12d2   : > { %v2178_v44 = vadd.f32 %v2177_v40, %v2176_v43 }
0x12d4   : > { %v2179_v45 = vsel %vm606_vm0, %v2178_v44, 0.0 }
0x12d5   : > { %2180 = vadd.xlane.f32.xlu0 %v2179_v45 }
0x1348   : > { %v2181_v46 = vpop.xlane.xlu0 %2180 }
0x1349   : > { %v2182_v48 = vmul.f32 %v2181_v46, %v3917_v34 }
0x134b   : > { %v2183_v38 = vsub.f32 %v2178_v44, %v2182_v48 }
0x134d   : > { %v2184_v49 = vmul.f32 %v2183_v38, %v2183_v38 }
0x134f   : > { %v2185_v50 = vsel %vm606_vm0, %v2184_v49, 0.0 }
0x1350   : > { %2186 = vadd.xlane.f32.xlu2 %v2185_v50 }
0x13c3   : > { %v2187_v55 = vpop.xlane.xlu2 %2186 }
0x13c4   : > { %v2188_v56 = vmul.f32 %v2187_v55, %v3917_v34 }
0x13c6   : > { %v2189_v57 = vadd.f32 1e-05, %v2188_v56  ;;  %v3235_v56 = vld [vmem:[%s4521_s30 + $0x18] sm:$0xff] }
0x13c7   : > { %3017 = vmatpush.xpose.msk.msra.mxu0 %vm722_vm1, %v3235_v56 }
0x13c8   : > { %3205 = vrsqrt.f32 %v2189_v57  ;;  %vm2196_vm13 = vweird.f32 %v2189_v57 }
0x13ce   : > { %v3206_v58 = vpop.eup %3205 }
0x13cf   : > { %v2191_v59 = vmul.f32 %v3206_v58, %v2189_v57  ;;  %vm2197_vm3 = vweird.f32 %v3206_v58 }
0x13d0   : > { %vm2198_vm14 = vmor %vm2196_vm13, %vm2197_vm3 }
0x13d1   : > { %v2192_v61 = vmul.f32 %v3206_v58, %v2191_v59  ;;  %v3237_v59 = vld [vmem:[%s4521_s30 + $0x8] sm:$0xff] }
0x13d3   : > { %v2193_v62 = vmul.f32 0.5, %v2192_v61 }
0x13d5   : > { %v2194_v63 = vsub.f32 1.5, %v2193_v62 }
0x13d7   : > { %v2195_v0 = vmul.f32 %v3206_v58, %v2194_v63 }
0x13d9   : > { %v2199_v20 = vsel %vm2198_vm14, %v3206_v58, %v2195_v0  ;;  %v3236_v58 = vld [vmem:[%s4521_s30 + $0x10] sm:$0xff]  ;;  %v3238_v0 = vld [vmem:[%s4521_s30] sm:$0xff] }
0x13da   : > { %v2200_v22 = vmul.f32 %v2199_v20, %v2183_v38  ;;  %3018 = vmatpush.xpose.msk.msra.mxu0 %vm722_vm1, %v3236_v58  ;;  %v4347_v20 = vld [vmem:[%s4472_s3 + $0x20] sm:$0xff] }
0x13db   : > { %v2321_v41 = vperm.slane %v4347_v20, 3  ;;  %v2328_v2 = vperm.slane %v4347_v20, 4  ;;  %v2404_v58 = vld [vmem:[#allocation10 + $0x70] sm:$0xff] }
0x13dc   : > { %v2202_v4 = vmul.f32 %v2201_v1, %v2200_v22 }
0x13de   : > { %v2204_v5 = vadd.f32 %v2203_v3, %v2202_v4  ;;  %3019 = vmatpush.xpose.msk.msra.mxu0 %vm722_vm1, %v3237_v59  ;;  %v2315_v4 = vperm.slane %v4347_v20, 0 }
0x13e0   : > { %v2220_v8 = vmul.f32 %v2219_v25, %v2204_v5 }
0x13e2   : > { %v2222_v9 = vadd.f32 %v2221_v28, %v2220_v8  ;;  %3020 = vmatpush.xpose.msk.msra.mxu0 %vm722_vm1, %v3238_v0 }
0x13e4   : > { %3012 = vmatmul.msk.f32.vlgmr.msrb.gmra.mxu2 %vm606_vm0, %v2222_v9  ;;  %v2319_v9 = vperm.slane %v4347_v20, 2 }
0x1467   : > { %v2244_v24 = vpop.f32.mrf.mxu2 }
0x1468   : > { %v2245_v16 = vadd.f32 %v2244_v24, %v2223_v37 }
0x146a   : > { %v2247_v18 = vsub.f32 0.0, %v2245_v16 }
0x146c   : > { %v2248_v19 = vmul.f32 1.442695, %v2247_v18 }
0x146e   : > { %3207 = vpow2.f32 %v2248_v19 }
0x1474   : > { %v3208_v21 = vpop.eup %3207 }
0x1475   : > { %v2250_v12 = vadd.f32 1.0, %v3208_v21 }
0x1477   : > { %3209 = vrcp.f32 %v2250_v12  ;;  %v2262_v29 = vand.u32 2147483648, %v2250_v12  ;;  %v2260_v31 = vand.u32 2147483647, %v2250_v12  ;;  %vm2256_vm2 = vweird.f32 %v2250_v12 }
0x1479   : > { %v2263_v6 = vor.u32 1.1754944e-38, %v2262_v29  ;;  %vm2261_vm5 = vcmp.eq.f32.partialorder %v2260_v31, 8.507059e+37 }
0x147d   : > { %v3210_v23 = vpop.eup %3209 }
0x147e   : > { %v2252_v27 = vmul.f32 %v3210_v23, %v2250_v12  ;;  %vm2257_vm15 = vweird.f32 %v3210_v23 }
0x147f   : > { %vm2258_vm4 = vmor %vm2256_vm2, %vm2257_vm15 }
0x1480   : > { %v2253_v60 = vsub.f32 1.0, %v2252_v27 }
0x1482   : > { %v2254_v30 = vmul.f32 %v3210_v23, %v2253_v60 }
0x1484   : > { %v2255_v51 = vadd.f32 %v3210_v23, %v2254_v30 }
0x1486   : > { %v2259_v32 = vsel %vm2258_vm4, %v3210_v23, %v2255_v51 }
0x1487   : > { %v2264_v35 = vsel %vm2261_vm5, %v2263_v6, %v2259_v32  ;;  %v2374_v32 = vld [vmem:[#allocation10 + $0x40] sm:$0xff] }
0x1488   : > { %v2266_v36 = vmul.f32 %v2264_v35, %v2245_v16  ;;  %v2379_v35 = vld [vmem:[#allocation10 + $0x48] sm:$0xff] }
0x148a   : > { %3013 = vmatmul.msk.f32.vlgmr.msrb.gmra.mxu3 %vm1190_vm12, %v2266_v36 }
0x150d   : > { %v2287_v40 = vpop.f32.mrf.mxu3 }
0x150e   : > { %v2290_v43 = vadd.f32 %v2287_v40, %v2204_v5  ;;  %v2317_v5 = vperm.slane %v4347_v20, 1 }
0x1510   : > { %v2292_v44 = vadd.f32 %v2291_v11, %v2290_v43  ;;  %v2384_v43 = vld [vmem:[#allocation10 + $0x50] sm:$0xff] }
0x1512   : > { %v2293_v45 = vsel %vm606_vm0, %v2292_v44, 0.0 }
0x1513   : > { %2294 = vadd.xlane.f32.xlu1 %v2293_v45 }
0x1586   : > { %v2295_v46 = vpop.xlane.xlu1 %2294 }
0x1587   : > { %v2296_v48 = vmul.f32 %v2295_v46, %v3917_v34 }
0x1589   : > { %v2297_v38 = vsub.f32 %v2292_v44, %v2296_v48  ;;  %v2389_v48 = vld [vmem:[#allocation10 + $0x58] sm:$0xff] }
0x158b   : > { %v2298_v49 = vmul.f32 %v2297_v38, %v2297_v38 }
0x158d   : > { %v2299_v50 = vsel %vm606_vm0, %v2298_v49, 0.0 }
0x158e   : > { %2300 = vadd.xlane.f32.xlu0 %v2299_v50 }
0x1601   : > { %v2301_v54 = vpop.xlane.xlu0 %2300 }
0x1602   : > { %v2302_v55 = vmul.f32 %v2301_v54, %v3917_v34  ;;  %v2399_v54 = vld [vmem:[#allocation10 + $0x68] sm:$0xff] }
0x1604   : > { %v2303_v57 = vadd.f32 1e-05, %v2302_v55 }
0x1606   : > { %3211 = vrsqrt.f32 %v2303_v57  ;;  %vm2310_vm7 = vweird.f32 %v2303_v57 }
0x160c   : > { %v3212_v61 = vpop.eup %3211 }
0x160d   : > { %v2305_v62 = vmul.f32 %v3212_v61, %v2303_v57  ;;  %vm2311_vm6 = vweird.f32 %v3212_v61 }
0x160e   : > { %vm2312_vm8 = vmor %vm2310_vm7, %vm2311_vm6 }
0x160f   : > { %v2306_v63 = vmul.f32 %v3212_v61, %v2305_v62 }
0x1611   : > { %v2307_v1 = vmul.f32 0.5, %v2306_v63  ;;  %v2409_v63 = vld [vmem:[#allocation10 + $0x78] sm:$0xff] }
0x1613   : > { %v2308_v3 = vsub.f32 1.5, %v2307_v1 }
0x1615   : > { %v2309_v22 = vmul.f32 %v3212_v61, %v2308_v3 }
0x1617   : > { %v2313_v25 = vsel %vm2312_vm8, %v3212_v61, %v2309_v22 }
0x1618   : > { %v2314_v28 = vmul.f32 %v2313_v25, %v2297_v38 }
0x161a   : > { %v2316_v8 = vmul.f32 %v2315_v4, %v2314_v28  ;;  %v2413_v4 = vperm.slane %v4347_v20, 5 }
0x161c   : > { %v4352_v10 = vadd.f32 %v2317_v5, %v2316_v8 }
0x161e   : > { %v2320_v13 = vmul.f32 %v2319_v9, %v4352_v10 }
0x1620   : > { %v2322_v26 = vadd.f32 %v2321_v41, %v2320_v13 }
0x1622   : > { %3014 = vmatmul.msk.f32.vlgmr.msrb.gmra.mxu0 %vm606_vm0, %v2322_v26 }
0x169f   : > { %v2349_v37 = vpop.f32.mrf.mxu0 }
0x16a0   : > { %v2350_v14 = vadd.f32 %v2349_v37, %v2328_v2 }
0x16a2   : > { %v2352_v24 = vsub.f32 0.0, %v2350_v14 }
0x16a4   : > { %v2353_v33 = vmul.f32 1.442695, %v2352_v24 }
0x16a6   : > { %3213 = vpow2.f32 %v2353_v33 }
0x16ac   : > { %v3214_v16 = vpop.eup %3213 }
0x16ad   : > { %v2355_v17 = vadd.f32 1.0, %v3214_v16 }
0x16af   : > { %3215 = vrcp.f32 %v2355_v17  ;;  %v2367_v12 = vand.u32 2147483648, %v2355_v17  ;;  %v2365_v27 = vand.u32 2147483647, %v2355_v17  ;;  %vm2361_vm10 = vweird.f32 %v2355_v17 }
0x16b1   : > { %v2368_v29 = vor.u32 1.1754944e-38, %v2367_v12  ;;  %vm2366_vm3 = vcmp.eq.f32.partialorder %v2365_v27, 8.507059e+37 }
0x16b5   : > { %v3216_v18 = vpop.eup %3215 }
0x16b6   : > { %v2357_v19 = vmul.f32 %v3216_v18, %v2355_v17  ;;  %vm2362_vm9 = vweird.f32 %v3216_v18 }
0x16b7   : > { %vm2363_vm11 = vmor %vm2361_vm10, %vm2362_vm9 }
0x16b8   : > { %v2358_v21 = vsub.f32 1.0, %v2357_v19 }
0x16ba   : > { %v2359_v23 = vmul.f32 %v3216_v18, %v2358_v21 }
0x16bc   : > { %v2360_v60 = vadd.f32 %v3216_v18, %v2359_v23 }
0x16be   : > { %v2364_v30 = vsel %vm2363_vm11, %v3216_v18, %v2360_v60 }
0x16bf   : > { %v2369_v31 = vsel %vm2366_vm3, %v2368_v29, %v2364_v30 }
0x16c0   : > { %v2371_v51 = vmul.f32 %v2369_v31, %v2350_v14 }
0x16c2   : > { %v2372_v6 = vmul.f32 %v2371_v51, %v4027_v39 }
0x16c4   : > { %v2375_v36 = vperm.slane %v2372_v6, 0  ;;  %v2380_v11 = vperm.slane %v2372_v6, 1  ;;  %v2385_v40 = vperm.slane %v2372_v6, 2  ;;  %v2390_v46 = vperm.slane %v2372_v6, 3 }
0x16c5   : > { %v2395_v50 = vperm.slane %v2372_v6, 4  ;;  %v2400_v42 = vperm.slane %v2372_v6, 5  ;;  %v2405_v57 = vperm.slane %v2372_v6, 6  ;;  %v2410_v62 = vperm.slane %v2372_v6, 7 }
0x16c6   : > { %v2376_v44 = vmul.f32 %v2375_v36, %v2374_v32  ;;  %v2381_v45 = vmul.f32 %v2380_v11, %v2379_v35  ;;  %v2386_v49 = vmul.f32 %v2385_v40, %v2384_v43  ;;  %v2391_v53 = vmul.f32 %v2390_v46, %v2389_v48 }
0x16c7   : > { %v2396_v56 = vmul.f32 %v2395_v50, %v2394_v7  ;;  %v2401_v61 = vmul.f32 %v2400_v42, %v2399_v54  ;;  %v2406_v1 = vmul.f32 %v2405_v57, %v2404_v58  ;;  %v2411_v22 = vmul.f32 %v2410_v62, %v2409_v63  ;;  %v2568_v42 = vld [vmem:[#allocation8 + $0x68] sm:$0xff] }
0x16c8   : > { %v2382_v38 = vadd.f32 %v2381_v45, %v2376_v44  ;;  %v2544_v7 = vperm.slane %v4347_v20, 7 }
0x16ca   : > { %v2387_v52 = vadd.f32 %v2386_v49, %v2382_v38  ;;  %v2542_v38 = vperm.slane %v4347_v20, 6  ;;  %v2570_v49 = vld [vmem:[#allocation8 + $0x78] sm:$0xff] }
0x16cb   : > { %2587 = vmatpush.msrb.mxu2 %v2570_v49  ;;  %v3036_v49 = vld [vmem:[%s4477_s8 + $0xe0] sm:$0xff] }
0x16cc   : > { %v2392_v55 = vadd.f32 %v2391_v53, %v2387_v52  ;;  %v2569_v52 = vld [vmem:[#allocation8 + $0x70] sm:$0xff] }
0x16cd   : > { %2588 = vmatpush.msrb.mxu2 %v2569_v52  ;;  %v3034_v52 = vld [vmem:[%s4477_s8 + $0xd0] sm:$0xff] }
0x16ce   : > { %v2397_v59 = vadd.f32 %v2396_v56, %v2392_v55  ;;  %v2567_v55 = vld [vmem:[#allocation8 + $0x60] sm:$0xff] }
0x16cf   : > { %2589 = vmatpush.msrb.mxu2 %v2568_v42  ;;  %v3033_v42 = vld [vmem:[%s4477_s8 + $0xc8] sm:$0xff] }
0x16d0   : > { %v2402_v0 = vadd.f32 %v2401_v61, %v2397_v59 }
0x16d1   : > { %2590 = vmatpush.msrb.mxu2 %v2567_v55  ;;  %v3032_v55 = vld [vmem:[%s4477_s8 + $0xc0] sm:$0xff] }
0x16d2   : > { %v2407_v3 = vadd.f32 %v2406_v1, %v2402_v0 }
0x16d4   : > { %v2412_v25 = vadd.f32 %v2411_v22, %v2407_v3 }
0x16d6   : > { %v2414_v5 = vadd.f32 %v2413_v4, %v2412_v25 }
0x16d8   : > { %v2415_v28 = vmul.f32 %v2414_v5, %v4027_v39 }
0x16da   : > { %3015 = vmatmul.msk.f32.vlgmr.msrb.gmra.mxu1 %vm606_vm0, %v2415_v28  ;;  %v2446_v8 = vmul.f32 %v2415_v28, %v2415_v28 }
0x16dc   : > { %3016 = vmatmul.msk.f32.vlgmr.msra.gmra.mxu2 %vm606_vm0, %v2446_v8 }
0x1757   : > { %v2436_v9 = vpop.f32.mrf.mxu1 }
0x1758   : > { %v2439_v41 = vsel %vm722_vm1, %v2436_v9, 0.0 }
0x1759   : > { %v2440_v13 = vrot.slane %v2439_v41, 4 }
0x175b   : > { %v2441_v26 = vadd.f32 %v2440_v13, %v2439_v41 }
0x175d   : > { %v2442_v2 = vrot.slane %v2441_v26, 2 }
0x175f   : > { %v2443_v37 = vadd.f32 %v2442_v2, %v2441_v26  ;;  %v2467_v14 = vpop.f32.mrf.mxu2 }
0x1760   : > { %v2470_v24 = vsel %vm722_vm1, %v2467_v14, 0.0 }
0x1761   : > { %v2444_v33 = vrot.slane %v2443_v37, 1  ;;  %v2471_v16 = vrot.slane %v2470_v24, 4 }
0x1763   : > { %v2445_v17 = vadd.f32 %v2444_v33, %v2443_v37  ;;  %v2472_v18 = vadd.f32 %v2471_v16, %v2470_v24  ;;  %v3031_v16 = vld [vmem:[%s4476_s7 + $0x78] sm:$0xff] }
0x1764   : > { %2656 = vmatpush.msra.mxu3 %v3031_v16 }
0x1765   : > { %v2477_v19 = vmul.f32 0.03125, %v2445_v17  ;;  %v2473_v21 = vrot.slane %v2472_v18, 2  ;;  %v3029_v17 = vld [vmem:[%s4476_s7 + $0x68] sm:$0xff] }
0x1767   : > { %v2474_v12 = vadd.f32 %v2473_v21, %v2472_v18  ;;  %3021 = vmatmul.msk.f32.vlgmr.msra.gmra.mxu0 %vm722_vm1, %v2477_v19  ;;  %v2479_v60 = vmul.f32 %v2477_v19, %v2477_v19  ;;  %v3028_v18 = vld [vmem:[%s4476_s7 + $0x60] sm:$0xff] }
0x1769   : > { %v2475_v23 = vrot.slane %v2474_v12, 1 }
0x176b   : > { %v2476_v27 = vadd.f32 %v2475_v23, %v2474_v12 }
0x176d   : > { %v2478_v29 = vmul.f32 0.03125, %v2476_v27 }
0x176f   : > { %v2480_v30 = vsub.f32 %v2478_v29, %v2479_v60 }
0x1771   : > { %v2481_v31 = vadd.f32 1e-05, %v2480_v30 }
0x1773   : > { %3217 = vrsqrt.f32 %v2481_v31  ;;  %vm2488_vm14 = vweird.f32 %v2481_v31 }
0x1779   : > { %v3218_v51 = vpop.eup %3217 }
0x177a   : > { %v2483_v6 = vmul.f32 %v3218_v51, %v2481_v31  ;;  %vm2489_vm13 = vweird.f32 %v3218_v51 }
0x177b   : > { %vm2490_vm15 = vmor %vm2488_vm14, %vm2489_vm13 }
0x177c   : > { %v2484_v32 = vmul.f32 %v3218_v51, %v2483_v6 }
0x177e   : > { %v2485_v35 = vmul.f32 0.5, %v2484_v32 }
0x1780   : > { %v2486_v36 = vsub.f32 1.5, %v2485_v35 }
0x1782   : > { %v2487_v11 = vmul.f32 %v3218_v51, %v2486_v36 }
0x1784   : > { %v2491_v40 = vsel %vm2490_vm15, %v3218_v51, %v2487_v11 }
0x1785   : > { %3026 = vmatmul.msk.f32.vlgmr.msra.gmra.mxu1 %vm722_vm1, %v2491_v40 }
0x17e4   : > { %v2512_v43 = vpop.f32.mrf.mxu0 }
0x17e5   : > { %v2538_v44 = vperm.slane %v2512_v43, 0 }
0x17e7   : > { %v2539_v46 = vsub.f32 %v2415_v28, %v2538_v44  ;;  %v4373_v28 = vld [vmem:[%s4472_s3 + $0x28] sm:$0xff] }
0x17e8   : > { %v2571_v8 = vperm.slane %v4373_v28, 0  ;;  %v2618_v51 = vperm.slane %v4373_v28, 1  ;;  %v2620_v32 = vperm.slane %v4373_v28, 2  ;;  %v2636_v11 = vperm.slane %v4373_v28, 3 }
0x17e9   : > { %v2638_v43 = vperm.slane %v4373_v28, 4 }
0x1802   : > { %v2535_v45 = vpop.f32.mrf.mxu1 }
0x1803   : > { %v2540_v48 = vperm.slane %v2535_v45, 0 }
0x1805   : > { %v2541_v50 = vmul.f32 %v2540_v48, %v2539_v46  ;;  %v3039_v46 = vld [vmem:[%s4477_s8 + $0xf8] sm:$0xff]  ;;  %v3038_v48 = vld [vmem:[%s4477_s8 + $0xf0] sm:$0xff] }
0x1806   : > { %2695 = vmatpush.msra.mxu2 %v3039_v46 }
0x1807   : > { %v2543_v53 = vmul.f32 %v2542_v38, %v2541_v50  ;;  %v3037_v38 = vld [vmem:[%s4477_s8 + $0xe8] sm:$0xff]  ;;  %v3035_v50 = vld [vmem:[%s4477_s8 + $0xd8] sm:$0xff] }
0x1808   : > { %2696 = vmatpush.msra.mxu2 %v3038_v48 }
0x1809   : > { %v2545_v54 = vadd.f32 %v2544_v7, %v2543_v53  ;;  %v2640_v7 = vperm.slane %v4304_v15, 1 }
0x180a   : > { %2697 = vmatpush.msra.mxu2 %v3037_v38 }
0x180b   : > { %v2546_v56 = vsub.f32 0.0, %v2545_v54 }
0x180c   : > { %2698 = vmatpush.msra.mxu2 %v3036_v49 }
0x180d   : > { %v2547_v57 = vmul.f32 1.442695, %v2546_v56 }
0x180e   : > { %2699 = vmatpush.msra.mxu2 %v3035_v50 }
0x180f   : > { %3219 = vpow2.f32 %v2547_v57 }
0x1810   : > { %2700 = vmatpush.msra.mxu2 %v3034_v52 }
0x1812   : > { %2701 = vmatpush.msra.mxu2 %v3033_v42 }
0x1814   : > { %2702 = vmatpush.msra.mxu2 %v3032_v55 }
0x1815   : > { %v3220_v58 = vpop.eup %3219 }
0x1816   : > { %v2549_v59 = vadd.f32 1.0, %v3220_v58 }
0x1818   : > { %3221 = vrcp.f32 %v2549_v59  ;;  %v2561_v0 = vand.u32 2147483648, %v2549_v59  ;;  %v2559_v1 = vand.u32 2147483647, %v2549_v59  ;;  %vm2555_vm2 = vweird.f32 %v2549_v59 }
0x181a   : > { %v2562_v22 = vor.u32 1.1754944e-38, %v2561_v0  ;;  %vm2560_vm5 = vcmp.eq.f32.partialorder %v2559_v1, 8.507059e+37 }
0x181e   : > { %v3222_v61 = vpop.eup %3221 }
0x181f   : > { %v2551_v62 = vmul.f32 %v3222_v61, %v2549_v59  ;;  %vm2556_vm1 = vweird.f32 %v3222_v61 }
0x1820   : > { %vm2557_vm4 = vmor %vm2555_vm2, %vm2556_vm1 }
0x1821   : > { %v2552_v63 = vsub.f32 1.0, %v2551_v62 }
0x1823   : > { %v2553_v20 = vmul.f32 %v3222_v61, %v2552_v63 }
0x1825   : > { %v2554_v3 = vadd.f32 %v3222_v61, %v2553_v20 }
0x1827   : > { %v2558_v4 = vsel %vm2557_vm4, %v3222_v61, %v2554_v3 }
0x1828   : > { %v2563_v25 = vsel %vm2560_vm5, %v2562_v22, %v2558_v4 }
0x1829   : > { %v2565_v5 = vmul.f32 %v2563_v25, %v2545_v54 }
0x182b   : > { %3027 = vmatmul.msk.f32.vlgmr.msrb.gmra.mxu2 %vm606_vm0, %v2565_v5  ;;  %v2708_v5 = vperm.slane %v4373_v28, 5 }
0x18ae   : > { %v2592_v9 = vpop.f32.mrf.mxu2 }
0x18af   : > { %v2593_v41 = vadd.f32 %v2592_v9, %v2571_v8 }
0x18b1   : > { %v2595_v13 = vadd.f32 %v2593_v41, %v4352_v10  ;;  %v3030_v10 = vld [vmem:[%s4476_s7 + $0x70] sm:$0xff] }
0x18b2   : > { %2657 = vmatpush.msra.mxu3 %v3030_v10 }
0x18b3   : > { %v2596_v26 = vsel %vm606_vm0, %v2595_v13, 0.0 }
0x18b4   : > { %2597 = vadd.xlane.f32.xlu0 %v2596_v26  ;;  %2658 = vmatpush.msra.mxu3 %v3029_v17 }
0x18b6   : > { %2659 = vmatpush.msra.mxu3 %v3028_v18 }
0x1927   : > { %v2598_v2 = vpop.xlane.xlu0 %2597 }
0x1928   : > { %v2599_v37 = vmul.f32 %v2598_v2, %v3917_v34 }
0x192a   : > { %v2600_v14 = vsub.f32 %v2595_v13, %v2599_v37 }
0x192c   : > { %v2601_v24 = vmul.f32 %v2600_v14, %v2600_v14 }
0x192e   : > { %v2602_v33 = vsel %vm606_vm0, %v2601_v24, 0.0 }
0x192f   : > { %2603 = vadd.xlane.f32.xlu2 %v2602_v33 }
0x19a2   : > { %v2604_v19 = vpop.xlane.xlu2 %2603 }
0x19a3   : > { %v2605_v21 = vmul.f32 %v2604_v19, %v3917_v34 }
0x19a5   : > { %v2606_v12 = vadd.f32 1e-05, %v2605_v21 }
0x19a7   : > { %3223 = vrsqrt.f32 %v2606_v12  ;;  %vm2613_vm7 = vweird.f32 %v2606_v12 }
0x19ad   : > { %v3224_v23 = vpop.eup %3223 }
0x19ae   : > { %v2608_v27 = vmul.f32 %v3224_v23, %v2606_v12  ;;  %vm2614_vm6 = vweird.f32 %v3224_v23 }
0x19af   : > { %vm2615_vm8 = vmor %vm2613_vm7, %vm2614_vm6 }
0x19b0   : > { %v2609_v60 = vmul.f32 %v3224_v23, %v2608_v27  ;;  %v2732_v27 = vperm.slane %v4373_v28, 6 }
0x19b2   : > { %v2610_v29 = vmul.f32 0.5, %v2609_v60 }
0x19b4   : > { %v2611_v30 = vsub.f32 1.5, %v2610_v29  ;;  %v2734_v29 = vperm.slane %v4373_v28, 7 }
0x19b6   : > { %v2612_v31 = vmul.f32 %v3224_v23, %v2611_v30 }
0x19b8   : > { %v2616_v6 = vsel %vm2615_vm8, %v3224_v23, %v2612_v31 }
0x19b9   : > { %v2617_v35 = vmul.f32 %v2616_v6, %v2600_v14 }
0x19bb   : > { %v2619_v36 = vmul.f32 %v2618_v51, %v2617_v35 }
0x19bd   : > { %v2621_v40 = vadd.f32 %v2620_v32, %v2619_v36 }
0x19bf   : > { %v2637_v44 = vmul.f32 %v2636_v11, %v2621_v40 }
0x19c1   : > { %v2639_v45 = vadd.f32 %v2638_v43, %v2637_v44 }
0x19c3   : > { %3040 = vmatmul.msk.f32.vlgmr.msra.gmra.mxu3 %vm606_vm0, %v2639_v45 }
0x1a46   : > { %v2661_v53 = vpop.f32.mrf.mxu3 }
0x1a47   : > { %v2662_v54 = vadd.f32 %v2661_v53, %v2640_v7 }
0x1a49   : > { %v2664_v56 = vsub.f32 0.0, %v2662_v54 }
0x1a4b   : > { %v2665_v15 = vmul.f32 1.442695, %v2664_v56 }
0x1a4d   : > { %3225 = vpow2.f32 %v2665_v15 }
0x1a53   : > { %v3226_v57 = vpop.eup %3225 }
0x1a54   : > { %v2667_v58 = vadd.f32 1.0, %v3226_v57 }
0x1a56   : > { %3227 = vrcp.f32 %v2667_v58  ;;  %v2679_v63 = vand.u32 2147483648, %v2667_v58  ;;  %v2677_v20 = vand.u32 2147483647, %v2667_v58  ;;  %vm2673_vm10 = vweird.f32 %v2667_v58 }
0x1a58   : > { %v2680_v3 = vor.u32 1.1754944e-38, %v2679_v63  ;;  %vm2678_vm3 = vcmp.eq.f32.partialorder %v2677_v20, 8.507059e+37 }
0x1a5c   : > { %v3228_v59 = vpop.eup %3227 }
0x1a5d   : > { %v2669_v61 = vmul.f32 %v3228_v59, %v2667_v58  ;;  %vm2674_vm9 = vweird.f32 %v3228_v59 }
0x1a5e   : > { %vm2675_vm11 = vmor %vm2673_vm10, %vm2674_vm9 }
0x1a5f   : > { %v2670_v62 = vsub.f32 1.0, %v2669_v61 }
0x1a61   : > { %v2671_v0 = vmul.f32 %v3228_v59, %v2670_v62 }
0x1a63   : > { %v2672_v1 = vadd.f32 %v3228_v59, %v2671_v0 }
0x1a65   : > { %v2676_v22 = vsel %vm2675_vm11, %v3228_v59, %v2672_v1 }
0x1a66   : > { %v2681_v4 = vsel %vm2678_vm3, %v2680_v3, %v2676_v22 }
0x1a67   : > { %v2683_v25 = vmul.f32 %v2681_v4, %v2662_v54 }
0x1a69   : > { %3041 = vmatmul.msk.f32.vlgmr.msra.gmra.mxu2 %vm1190_vm12, %v2683_v25 }
0x1aec   : > { %v2704_v8 = vpop.f32.mrf.mxu2 }
0x1aed   : > { %v2707_v9 = vadd.f32 %v2704_v8, %v2621_v40 }
0x1aef   : > { %v2709_v41 = vadd.f32 %v2708_v5, %v2707_v9 }
0x1af1   : > { %v2710_v13 = vsel %vm606_vm0, %v2709_v41, 0.0 }
0x1af2   : > { %2711 = vadd.xlane.f32.xlu0 %v2710_v13 }
0x1b65   : > { %v2712_v26 = vpop.xlane.xlu0 %2711 }
0x1b66   : > { %v2713_v2 = vmul.f32 %v2712_v26, %v3917_v34 }
0x1b68   : > { %v2714_v37 = vsub.f32 %v2709_v41, %v2713_v2 }
0x1b6a   : > { %v2715_v14 = vmul.f32 %v2714_v37, %v2714_v37 }
0x1b6c   : > { %v2716_v24 = vsel %vm606_vm0, %v2715_v14, 0.0 }
0x1b6d   : > { %2717 = vadd.xlane.f32.xlu1 %v2716_v24 }
0x1be0   : > { %v2718_v33 = vpop.xlane.xlu1 %2717 }
0x1be1   : > { %v2719_v16 = vmul.f32 %v2718_v33, %v3917_v34 }
0x1be3   : > { %v2720_v10 = vadd.f32 1e-05, %v2719_v16 }
0x1be5   : > { %3229 = vrsqrt.f32 %v2720_v10  ;;  %vm2727_vm13 = vweird.f32 %v2720_v10 }
0x1beb   : > { %v3230_v17 = vpop.eup %3229 }
0x1bec   : > { %v2722_v18 = vmul.f32 %v3230_v17, %v2720_v10  ;;  %vm2728_vm12 = vweird.f32 %v3230_v17 }
0x1bed   : > { %vm2729_vm14 = vmor %vm2727_vm13, %vm2728_vm12 }
0x1bee   : > { %v2723_v19 = vmul.f32 %v3230_v17, %v2722_v18 }
0x1bf0   : > { %v2724_v21 = vmul.f32 0.5, %v2723_v19 }
0x1bf2   : > { %v2725_v12 = vsub.f32 1.5, %v2724_v21 }
0x1bf4   : > { %v2726_v23 = vmul.f32 %v3230_v17, %v2725_v12 }
0x1bf6   : > { %v2730_v60 = vsel %vm2729_vm14, %v3230_v17, %v2726_v23 }
0x1bf7   : > { %v2731_v34 = vmul.f32 %v2730_v60, %v2714_v37 }
0x1bf9   : > { %v2733_v30 = vmul.f32 %v2732_v27, %v2731_v34 }
0x1bfb   : > { %v2735_v31 = vadd.f32 %v2734_v29, %v2733_v30 }
0x1bfd   : > { %v2736_v51 = vadd.f32 %v2735_v31, %v4177_v47 }
0x1bff   : > { %v2737_v6 = vmul.f32 %v2736_v51, %v4027_v39 }
0x1c01   : > { %v2738_v32 = vmul.f32 0.70710677, %v2737_v6 }
0x1c03   : > { %2739 = vst.msk [vmem:[%s554_s14] sm:$0xff] %vm606_vm0, %v2738_v32 }
0x1c04   : > { %3416 = shalt.err (!%p3413_p11)
}
0x1c05   : > { %3062 = dma.vmem_to_hbm [thread:$0]  (%p3637_p0), %s2754_s29, 128, %s2756_s28, %s2741_s15  }
0x1c06 PF: > { %s4527_s25 = sld [smem:[#allocation17_spill]] }
0x1c07   : > { %s4529_s13 = sld [smem:[#allocation19_spill]] }
0x1c0c   : > { %s2767_s10 = sand.u32 1, %s4527_s25  }
0x1c0d   : > { %p4530_p5 = scmp.ge.s32.totalorder %s4529_s13, 2  ;;  %s2768_s27 = scalar_lea.sflag [#allocation4], %s2767_s10 }
0x1c0f   : > { %p3082_p12 = pnand %p4530_p5, %p3645_p6 }
0x1c11   : > { %p3083_p2 = pneg %p3082_p12 }
0x1c13   : > { %3450 = dma.done.wait (%p3083_p2), %s2768_s27, 128  }
0x1c14   : > { %3452 = vsyncadd (%p3083_p2), %s2768_s27, 4294967168  ;;  %s4531_s28 = sld [smem:[#allocation20_spill]]  ;;  %s4534_s25 = smov %s3459_s26 }
0x1c15   : > { %s4532_s19 = sld [smem:[#allocation18_spill]] }
0x1c16   : > { %s4533_s27 = sld [smem:[#allocation21_spill]] }
0x1c1a   : > { %p30_p4 = scmp.ge.s32.totalorder %s4531_s28, 4  }
0x1c1b   : > { %s4535_s26 = smov %s4532_s19 }
0x1c1c   :  { %32 = sbr.rel (!%p30_p4) target bundleno = 14 (0xe), region = 175 }
0x1c21   :  { %2774 = vsyncpa [#allocation3], 1 }
0x1c22   :  { %2776 = vsyncpa [#allocation3 + $0x1], 1 }
0x1c23   :  { %2777 = vsyncpa [#allocation6], 1 }
0x1c24   :  { %2779 = vsyncpa [#allocation6 + $0x1], 1 }
0x1c25   :  { %2780 = vsyncpa [#allocation9], 1 }
0x1c26   :  { %2781 = vsyncpa [#allocation4], 1 }
0x1c27   :  { %2783 = vsyncpa [#allocation4 + $0x1], 1 }

</bundles_post_ra>
